<compile_context>
chip_gen: v7x
topology: tpu7x:2x2x1
jax: 0.10.0
libtpu: 0.0.40
codegen_flags: <defaults>
</compile_context>

<pallas_src>
import functools

import numpy as np
import jax
import jax.numpy as jnp
from jax import lax
from jax.experimental import pallas as pl
from jax.experimental.pallas import tpu as pltpu

LANES = 128  # channel padding target = TPU lane width


# ------------------------------ fused kernel -------------------------------

def _resnet1d_kernel(*refs, plan, bblk, cdt):
    """Entire ResNet1D forward for one batch tile.

    Activations are values in a flat per-sample zero-padded layout:
      row b*(L+2)         : zero halo
      rows b*(L+2)+1..+L  : sample b activation (channels padded to 128 lanes)
      row b*(L+2)+L+1     : zero halo
    so a k=3 'same' conv over every sample is ONE im2col dot built from three
    contiguous shifted slices concatenated along the lane axis.
    """
    x_ref = refs[0]
    o_ref = refs[-1]
    params = refs[1:-1]
    idx = 0

    def take(n):
        nonlocal idx
        grp = params[idx:idx + n]
        idx += n
        return grp

    def conv3_same(a, w_ref):
        # a: (N, 128) flat padded activation; w_ref: (3*128, 128) im2col weight.
        n = a.shape[0]
        z = jnp.zeros((1, LANES), a.dtype)
        ap = jnp.concatenate([z, a, z], axis=0)                       # (N+2, 128)
        taps = jnp.concatenate(
            [ap[0:n, :], ap[1:n + 1, :], ap[2:n + 2, :]], axis=1)     # (N, 384)
        return jnp.dot(taps, w_ref[...], preferred_element_type=jnp.float32)

    def halo_mask(l):
        # (bblk*(l+2), 1) f32 mask: 0 on per-sample halo rows, 1 elsewhere.
        z = jnp.zeros((1, 1), jnp.float32)
        o = jnp.ones((l, 1), jnp.float32)
        return jnp.concatenate([z, o, z] * bblk, axis=0)

    # Build the flat padded input from the (bblk, L0, 128) input block.
    zrow = jnp.zeros((1, LANES), cdt)
    pieces = []
    for b in range(bblk):
        pieces += [zrow, x_ref[b], zrow]
    a = jnp.concatenate(pieces, axis=0)                               # (bblk*(L0+2), 128)

    for op, cfg in plan:
        if op == "stem":
            w, s, bias = take(3)
            y = conv3_same(a, w)
            y = jnp.maximum(y * s[...] + bias[...], 0.0) * halo_mask(cfg["l"])
            a = y.astype(cdt)

        elif op == "block":
            w1, s1, b1, w2, s2, b2 = take(6)
            wd = sd = bd = sel = None
            if cfg["has_ds"]:
                wd, sd, bd = take(3)
            if cfg["stride"] == 2:
                (sel,) = take(1)
            mask = halo_mask(cfg["l_out"])

            # conv1 (+ stride-2 row selection) + bn1 + relu
            y1 = conv3_same(a, w1)
            if sel is not None:
                y1 = jnp.dot(sel[...], y1, preferred_element_type=jnp.float32)
            y1 = jnp.maximum(y1 * s1[...] + b1[...], 0.0) * mask
            a1 = y1.astype(cdt)

            # conv2 + bn2
            y2 = conv3_same(a1, w2) * s2[...] + b2[...]

            # shortcut: identity or 1x1 conv (+ stride-2 selection) + bn
            if cfg["has_ds"]:
                sc = jnp.dot(a, wd[...], preferred_element_type=jnp.float32)
                if sel is not None:
                    sc = jnp.dot(sel[...], sc, preferred_element_type=jnp.float32)
                sc = sc * sd[...] + bd[...]
            else:
                sc = a.astype(jnp.float32)

            a = (jnp.maximum(y2 + sc, 0.0) * mask).astype(cdt)

        else:  # "head": avg-pool over L (0/(1/L) matmul) + FC, lane-dense store
            pool, wfc, bfc = take(3)
            pooled = jnp.dot(pool[...], a.astype(jnp.float32),
                             preferred_element_type=jnp.float32)      # (bblk, 128)
            logits = jnp.dot(pooled, wfc[...],
                             preferred_element_type=jnp.float32) + bfc[...]
            o_ref[...] = logits.astype(o_ref.dtype)


# ------------------------------ wrapper ------------------------------------

def _pick_batch_block(batch):
    # Output block sublane dim must equal B or be a multiple of 8; split big
    # batches so both v7x TensorCores get grid work, else whole batch per step.
    if batch > 8 and batch % 8 == 0:
        return 8
    return batch


def _make_stride2_select(bblk, l_in, l_out):
    n_in, n_out = bblk * (l_in + 2), bblk * (l_out + 2)
    s = np.zeros((n_out, n_in), np.float32)
    for b in range(bblk):
        for o in range(l_out):
            s[b * (l_out + 2) + 1 + o, b * (l_in + 2) + 1 + 2 * o] = 1.0
    return jnp.asarray(s)


def _make_pool(bblk, l):
    n = bblk * (l + 2)
    p = np.zeros((bblk, n), np.float32)
    for b in range(bblk):
        p[b, b * (l + 2) + 1: b * (l + 2) + 1 + l] = 1.0 / l
    return jnp.asarray(p)


def _bcast_spec(arr):
    nd = arr.ndim
    return pl.BlockSpec(arr.shape, lambda b, _nd=nd: (0,) * _nd)


def resnet1d_forward(prepped, x_ncl, *, num_classes, compute_dtype=jnp.float32):
    """x_ncl: (B, C_in, L) PyTorch-convention input."""
    batch, c_in, l0 = x_ncl.shape
    bblk = _pick_batch_block(batch)
    assert batch % bblk == 0

    # NCL -> NLC once, zero-pad channels to the 128-lane width (input is tiny).
    x = jnp.transpose(x_ncl, (0, 2, 1))
    x = jnp.pad(x, ((0, 0), (0, 0), (0, LANES - c_in))).astype(compute_dtype)

    inputs = [x]
    specs = [pl.BlockSpec((bblk, l0, LANES), lambda b: (b, 0, 0))]
    plan = []

    def add(arrs):
        inputs.extend(arrs)
        specs.extend(_bcast_spec(a) for a in arrs)

    add([prepped["stem_w"], prepped["stem_s"], prepped["stem_b"]])
    plan.append(("stem", {"l": l0}))

    l_cur = l0
    for layer in prepped["layers"]:
        for blk in layer:
            stride = blk["stride"]
            has_ds = "ds_w" in blk
            assert stride == 1 or has_ds
            l_out = (l_cur - 1) // stride + 1
            group = [blk["w1"], blk["s1"], blk["b1"],
                     blk["w2"], blk["s2"], blk["b2"]]
            if has_ds:
                group += [blk["ds_w"], blk["ds_s"], blk["ds_b"]]
            if stride == 2:
                group += [_make_stride2_select(bblk, l_cur, l_out)]
            add(group)
            plan.append(("block", {"stride": stride, "has_ds": has_ds,
                                   "l_out": l_out}))
            l_cur = l_out

    add([_make_pool(bblk, l_cur), prepped["fc_w"], prepped["fc_b"]])
    plan.append(("head", {"l": l_cur}))

    kern = functools.partial(_resnet1d_kernel, plan=tuple(plan),
                             bblk=bblk, cdt=compute_dtype)
    out = pl.pallas_call(
        kern,
        out_shape=jax.ShapeDtypeStruct((batch, LANES), jnp.float32),
        grid=(batch // bblk,),
        in_specs=specs,
        out_specs=pl.BlockSpec((bblk, LANES), lambda b: (b, 0)),
        compiler_params=pltpu.CompilerParams(
            dimension_semantics=("parallel",),
            # Per-step working set (< 2 MiB here) is far below this; 32 MiB is
            # safe on v5e/v6e (128 MiB phys) and v7x (64 MiB phys).
            vmem_limit_bytes=32 * 1024 * 1024,
        ),
    )(*inputs)
    return out[:, :num_classes]


# ------------------------- parameter preprocessing --------------------------

def preprocess_params(params, compute_dtype=jnp.float32):
    """One-time prep: channels-last im2col weight layout, zero-pad channels to
    128 lanes, f32 folded-BN scale/bias, MXU-dtype weight cast."""
    def conv_im2col(w):                        # (Cout, Cin, K) -> (K*128, 128)
        cout, cin, k = w.shape
        w = jnp.transpose(w, (2, 1, 0))        # (K, Cin, Cout)
        w = jnp.pad(w, ((0, 0), (0, LANES - cin), (0, LANES - cout)))
        return w.reshape(k * LANES, LANES).astype(compute_dtype)

    def bn_pad(sb):
        s, b = sb                              # each (1, C), already folded
        pad = ((0, 0), (0, LANES - s.shape[1]))
        return (jnp.pad(s, pad).astype(jnp.float32),
                jnp.pad(b, pad).astype(jnp.float32))

    out = {"stem_w": conv_im2col(params["stem_w"])}
    out["stem_s"], out["stem_b"] = bn_pad(params["stem_bn"])
    out["layers"] = []
    for layer in params["layers"]:
        blocks = []
        for p in layer:
            blk = {"stride": p["stride"],
                   "w1": conv_im2col(p["conv1_w"]),
                   "w2": conv_im2col(p["conv2_w"])}
            blk["s1"], blk["b1"] = bn_pad(p["bn1"])
            blk["s2"], blk["b2"] = bn_pad(p["bn2"])
            if "ds_w" in p:
                blk["ds_w"] = conv_im2col(p["ds_w"])   # (128, 128)
                blk["ds_s"], blk["ds_b"] = bn_pad(p["ds_bn"])
            blocks.append(blk)
        out["layers"].append(blocks)
    c, n = params["fc_w"].shape
    out["fc_w"] = jnp.pad(params["fc_w"],
                          ((0, LANES - c), (0, LANES - n))).astype(jnp.float32)
    out["fc_b"] = jnp.pad(params["fc_b"],
                          ((0, 0), (0, LANES - n))).astype(jnp.float32)
    return out


# --------------------------- parameter creation ----------------------------

def _fold_bn(gamma, beta, mean, var, eps=1e-5):
    scale = gamma / jnp.sqrt(var + eps)
    bias = beta - mean * scale
    return scale.reshape(1, -1), bias.reshape(1, -1)


def _bn_init(key, c):
    k1, k2, k3, k4 = jax.random.split(key, 4)
    gamma = 1.0 + 0.1 * jax.random.normal(k1, (c,), jnp.float32)
    beta = 0.1 * jax.random.normal(k2, (c,), jnp.float32)
    mean = 0.1 * jax.random.normal(k3, (c,), jnp.float32)
    var = 1.0 + 0.1 * jnp.abs(jax.random.normal(k4, (c,), jnp.float32))
    return _fold_bn(gamma, beta, mean, var)


def _conv_init(key, cout, cin, k):
    return 0.2 * jax.random.normal(key, (cout, cin, k), jnp.float32)


def init_params(key, channels=(4, 16, 32, 64), layers=(1, 1, 1), num_classes=10):
    keys = iter(jax.random.split(key, 64))
    params = {
        "stem_w": _conv_init(next(keys), channels[1], channels[0], 3),
        "stem_bn": _bn_init(next(keys), channels[1]),
        "layers": [],
    }
    in_c = channels[1]
    for li, n_blocks in enumerate(layers):
        out_c = channels[1 + li]
        stride = 1 if li == 0 else 2
        blocks = []
        for bi in range(n_blocks):
            s = stride if bi == 0 else 1
            blk = {
                "stride": s,
                "conv1_w": _conv_init(next(keys), out_c, in_c, 3),
                "bn1": _bn_init(next(keys), out_c),
                "conv2_w": _conv_init(next(keys), out_c, out_c, 3),
                "bn2": _bn_init(next(keys), out_c),
            }
            if s != 1 or in_c != out_c:
                blk["ds_w"] = _conv_init(next(keys), out_c, in_c, 1)
                blk["ds_bn"] = _bn_init(next(keys), out_c)
            blocks.append(blk)
            in_c = out_c
        params["layers"].append(blocks)
    params["fc_w"] = 0.2 * jax.random.normal(next(keys),
                                             (channels[3], num_classes), jnp.float32)
    params["fc_b"] = 0.1 * jax.random.normal(next(keys),
                                             (1, num_classes), jnp.float32)
    return params


# --------------------------- pure-JAX reference ----------------------------

def ref_forward(params, x_ncl):
    x = jnp.transpose(x_ncl, (0, 2, 1))

    def cba(x, w, sb, stride, relu_, residual=None):
        k = w.shape[2]
        pad = (k - 1) // 2
        y = lax.conv_general_dilated(
            x, jnp.transpose(w, (2, 1, 0)), (stride,), [(pad, pad)],
            dimension_numbers=("NWC", "WIO", "NWC"))
        y = y * sb[0] + sb[1]
        if residual is not None:
            y = y + residual
        return jnp.maximum(y, 0.0) if relu_ else y

    x = cba(x, params["stem_w"], params["stem_bn"], 1, True)
    for layer in params["layers"]:
        for p in layer:
            s = p["stride"]
            out = cba(x, p["conv1_w"], p["bn1"], s, True)
            sc = cba(x, p["ds_w"], p["ds_bn"], s, False) if "ds_w" in p else x
            x = cba(out, p["conv2_w"], p["bn2"], 1, True, residual=sc)
    pooled = jnp.mean(x, axis=1)
    return pooled @ params["fc_w"] + params["fc_b"][0]


# ----------------------------------- main -----------------------------------

if __name__ == "__main__":
    key = jax.random.PRNGKey(0)
    k_param, k_x = jax.random.split(key)
    params = init_params(k_param, channels=(4, 16, 32, 64),
                         layers=(1, 1, 1), num_classes=10)
    # PyTorch-convention input: (batch=2, channels=4, length=16)
    x = jax.random.normal(k_x, (2, 4, 16), jnp.float32)

    ref = jax.block_until_ready(ref_forward(params, x))

    # f32 MXU-operand path: tight check against the XLA reference.
    prepped_f32 = preprocess_params(params, jnp.float32)
    fwd_f32 = jax.jit(lambda xx: resnet1d_forward(
        prepped_f32, xx, num_classes=10, compute_dtype=jnp.float32))
    out = jax.block_until_ready(fwd_f32(x))
    assert out.shape == (2, 10), out.shape
    assert jnp.allclose(out, ref, rtol=1e-3, atol=1e-3), (out, ref)

    # bf16 MXU-operand path (f32 accumulation + f32 epilogue): looser check.
    prepped_bf16 = preprocess_params(params, jnp.bfloat16)
    fwd_bf16 = jax.jit(lambda xx: resnet1d_forward(
        prepped_bf16, xx, num_classes=10, compute_dtype=jnp.bfloat16))
    out_bf16 = jax.block_until_ready(fwd_bf16(x))
    assert jnp.allclose(out_bf16, ref, rtol=1e-1, atol=1e-1), (out_bf16, ref)

    print("KERNEL_OK")
</pallas_src>

<mosaic_0001>
module attributes {stable_mosaic.version = 11 : i64} {
  func.func @_resnet1d_kernel(%arg0: i32, %arg1: memref<2x16x128xf32, #tpu.memory_space<vmem>>, %arg2: memref<384x128xf32, #tpu.memory_space<vmem>>, %arg3: memref<1x128xf32, #tpu.memory_space<vmem>>, %arg4: memref<1x128xf32, #tpu.memory_space<vmem>>, %arg5: memref<384x128xf32, #tpu.memory_space<vmem>>, %arg6: memref<1x128xf32, #tpu.memory_space<vmem>>, %arg7: memref<1x128xf32, #tpu.memory_space<vmem>>, %arg8: memref<384x128xf32, #tpu.memory_space<vmem>>, %arg9: memref<1x128xf32, #tpu.memory_space<vmem>>, %arg10: memref<1x128xf32, #tpu.memory_space<vmem>>, %arg11: memref<384x128xf32, #tpu.memory_space<vmem>>, %arg12: memref<1x128xf32, #tpu.memory_space<vmem>>, %arg13: memref<1x128xf32, #tpu.memory_space<vmem>>, %arg14: memref<384x128xf32, #tpu.memory_space<vmem>>, %arg15: memref<1x128xf32, #tpu.memory_space<vmem>>, %arg16: memref<1x128xf32, #tpu.memory_space<vmem>>, %arg17: memref<128x128xf32, #tpu.memory_space<vmem>>, %arg18: memref<1x128xf32, #tpu.memory_space<vmem>>, %arg19: memref<1x128xf32, #tpu.memory_space<vmem>>, %arg20: memref<20x36xf32, #tpu.memory_space<vmem>>, %arg21: memref<384x128xf32, #tpu.memory_space<vmem>>, %arg22: memref<1x128xf32, #tpu.memory_space<vmem>>, %arg23: memref<1x128xf32, #tpu.memory_space<vmem>>, %arg24: memref<384x128xf32, #tpu.memory_space<vmem>>, %arg25: memref<1x128xf32, #tpu.memory_space<vmem>>, %arg26: memref<1x128xf32, #tpu.memory_space<vmem>>, %arg27: memref<128x128xf32, #tpu.memory_space<vmem>>, %arg28: memref<1x128xf32, #tpu.memory_space<vmem>>, %arg29: memref<1x128xf32, #tpu.memory_space<vmem>>, %arg30: memref<12x20xf32, #tpu.memory_space<vmem>>, %arg31: memref<2x12xf32, #tpu.memory_space<vmem>>, %arg32: memref<128x128xf32, #tpu.memory_space<vmem>>, %arg33: memref<1x128xf32, #tpu.memory_space<vmem>>, %arg34: memref<2x128xf32, #tpu.memory_space<vmem>>) attributes {dimension_semantics = [#tpu.dimension_semantics<parallel>], iteration_bounds = array<i64: 1>, scalar_prefetch = 0 : i64, scratch_operands = 0 : i64, tpu.core_type = #tpu.core_type<tc>, window_params = [{transform_indices = @transform_0, window_bounds = array<i64: 2, 16, 128>}, {pipeline_mode = #tpu.pipeline_mode<synchronous>, transform_indices = @transform_1, window_bounds = array<i64: 384, 128>}, {pipeline_mode = #tpu.pipeline_mode<synchronous>, transform_indices = @transform_2, window_bounds = array<i64: 1, 128>}, {pipeline_mode = #tpu.pipeline_mode<synchronous>, transform_indices = @transform_3, window_bounds = array<i64: 1, 128>}, {pipeline_mode = #tpu.pipeline_mode<synchronous>, transform_indices = @transform_4, window_bounds = array<i64: 384, 128>}, {pipeline_mode = #tpu.pipeline_mode<synchronous>, transform_indices = @transform_5, window_bounds = array<i64: 1, 128>}, {pipeline_mode = #tpu.pipeline_mode<synchronous>, transform_indices = @transform_6, window_bounds = array<i64: 1, 128>}, {pipeline_mode = #tpu.pipeline_mode<synchronous>, transform_indices = @transform_7, window_bounds = array<i64: 384, 128>}, {pipeline_mode = #tpu.pipeline_mode<synchronous>, transform_indices = @transform_8, window_bounds = array<i64: 1, 128>}, {pipeline_mode = #tpu.pipeline_mode<synchronous>, transform_indices = @transform_9, window_bounds = array<i64: 1, 128>}, {pipeline_mode = #tpu.pipeline_mode<synchronous>, transform_indices = @transform_10, window_bounds = array<i64: 384, 128>}, {pipeline_mode = #tpu.pipeline_mode<synchronous>, transform_indices = @transform_11, window_bounds = array<i64: 1, 128>}, {pipeline_mode = #tpu.pipeline_mode<synchronous>, transform_indices = @transform_12, window_bounds = array<i64: 1, 128>}, {pipeline_mode = #tpu.pipeline_mode<synchronous>, transform_indices = @transform_13, window_bounds = array<i64: 384, 128>}, {pipeline_mode = #tpu.pipeline_mode<synchronous>, transform_indices = @transform_14, window_bounds = array<i64: 1, 128>}, {pipeline_mode = #tpu.pipeline_mode<synchronous>, transform_indices = @transform_15, window_bounds = array<i64: 1, 128>}, {pipeline_mode = #tpu.pipeline_mode<synchronous>, transform_indices = @transform_16, window_bounds = array<i64: 128, 128>}, {pipeline_mode = #tpu.pipeline_mode<synchronous>, transform_indices = @transform_17, window_bounds = array<i64: 1, 128>}, {pipeline_mode = #tpu.pipeline_mode<synchronous>, transform_indices = @transform_18, window_bounds = array<i64: 1, 128>}, {pipeline_mode = #tpu.pipeline_mode<synchronous>, transform_indices = @transform_19, window_bounds = array<i64: 20, 36>}, {pipeline_mode = #tpu.pipeline_mode<synchronous>, transform_indices = @transform_20, window_bounds = array<i64: 384, 128>}, {pipeline_mode = #tpu.pipeline_mode<synchronous>, transform_indices = @transform_21, window_bounds = array<i64: 1, 128>}, {pipeline_mode = #tpu.pipeline_mode<synchronous>, transform_indices = @transform_22, window_bounds = array<i64: 1, 128>}, {pipeline_mode = #tpu.pipeline_mode<synchronous>, transform_indices = @transform_23, window_bounds = array<i64: 384, 128>}, {pipeline_mode = #tpu.pipeline_mode<synchronous>, transform_indices = @transform_24, window_bounds = array<i64: 1, 128>}, {pipeline_mode = #tpu.pipeline_mode<synchronous>, transform_indices = @transform_25, window_bounds = array<i64: 1, 128>}, {pipeline_mode = #tpu.pipeline_mode<synchronous>, transform_indices = @transform_26, window_bounds = array<i64: 128, 128>}, {pipeline_mode = #tpu.pipeline_mode<synchronous>, transform_indices = @transform_27, window_bounds = array<i64: 1, 128>}, {pipeline_mode = #tpu.pipeline_mode<synchronous>, transform_indices = @transform_28, window_bounds = array<i64: 1, 128>}, {pipeline_mode = #tpu.pipeline_mode<synchronous>, transform_indices = @transform_29, window_bounds = array<i64: 12, 20>}, {pipeline_mode = #tpu.pipeline_mode<synchronous>, transform_indices = @transform_30, window_bounds = array<i64: 2, 12>}, {pipeline_mode = #tpu.pipeline_mode<synchronous>, transform_indices = @transform_31, window_bounds = array<i64: 128, 128>}, {pipeline_mode = #tpu.pipeline_mode<synchronous>, transform_indices = @transform_32, window_bounds = array<i64: 1, 128>}, {transform_indices = @transform_33, window_bounds = array<i64: 2, 128>}]} {
    %cst = arith.constant 0.000000e+00 : f32
    %0 = vector.broadcast %cst : f32 to vector<1x128xf32>
    %c0 = arith.constant 0 : index
    %c0_0 = arith.constant 0 : index
    %c0_1 = arith.constant 0 : index
    %1 = vector.load %arg1[%c0, %c0_0, %c0_1] : memref<2x16x128xf32, #tpu.memory_space<vmem>>, vector<1x16x128xf32>
    %2 = vector.shape_cast %1 : vector<1x16x128xf32> to vector<16x128xf32>
    %c1 = arith.constant 1 : index
    %c0_2 = arith.constant 0 : index
    %c0_3 = arith.constant 0 : index
    %3 = vector.load %arg1[%c1, %c0_2, %c0_3] : memref<2x16x128xf32, #tpu.memory_space<vmem>>, vector<1x16x128xf32>
    %4 = vector.shape_cast %3 : vector<1x16x128xf32> to vector<16x128xf32>
    %5 = tpu.concatenate %0, %2, %0, %0, %4, %0 in 0 : vector<1x128xf32>, vector<16x128xf32>, vector<1x128xf32>, vector<1x128xf32>, vector<16x128xf32>, vector<1x128xf32> -> vector<36x128xf32>
    %cst_4 = arith.constant 0.000000e+00 : f32
    %6 = vector.broadcast %cst_4 : f32 to vector<1x128xf32>
    %7 = tpu.concatenate %6, %5, %6 in 0 : vector<1x128xf32>, vector<36x128xf32>, vector<1x128xf32> -> vector<38x128xf32>
    %8 = vector.extract_strided_slice %7 {offsets = [0, 0], sizes = [36, 128], strides = [1, 1]} : vector<38x128xf32> to vector<36x128xf32>
    %9 = vector.extract_strided_slice %7 {offsets = [1, 0], sizes = [36, 128], strides = [1, 1]} : vector<38x128xf32> to vector<36x128xf32>
    %10 = vector.extract_strided_slice %7 {offsets = [2, 0], sizes = [36, 128], strides = [1, 1]} : vector<38x128xf32> to vector<36x128xf32>
    %11 = tpu.concatenate %8, %9, %10 in 1 : vector<36x128xf32>, vector<36x128xf32>, vector<36x128xf32> -> vector<36x384xf32>
    %c0_5 = arith.constant 0 : index
    %c0_6 = arith.constant 0 : index
    %12 = vector.load %arg2[%c0_5, %c0_6] : memref<384x128xf32, #tpu.memory_space<vmem>>, vector<384x128xf32>
    %cst_7 = arith.constant dense<0.000000e+00> : vector<36x128xf32>
    %13 = tpu.matmul %11, %12, %cst_7 {dimension_numbers = #tpu.dot_dimension_numbers<[1], [0], [0], [1], [0, 0, 1, 1], [], []>} : vector<36x384xf32>, vector<384x128xf32>, vector<36x128xf32> -> vector<36x128xf32>
    %c0_8 = arith.constant 0 : index
    %c0_9 = arith.constant 0 : index
    %14 = vector.load %arg3[%c0_8, %c0_9] : memref<1x128xf32, #tpu.memory_space<vmem>>, vector<1x128xf32>
    %15 = vector.broadcast %14 : vector<1x128xf32> to vector<36x128xf32>
    %16 = arith.mulf %13, %15 : vector<36x128xf32>
    %c0_10 = arith.constant 0 : index
    %c0_11 = arith.constant 0 : index
    %17 = vector.load %arg4[%c0_10, %c0_11] : memref<1x128xf32, #tpu.memory_space<vmem>>, vector<1x128xf32>
    %18 = vector.broadcast %17 : vector<1x128xf32> to vector<36x128xf32>
    %19 = arith.addf %16, %18 : vector<36x128xf32>
    %cst_12 = arith.constant 0.000000e+00 : f32
    %20 = vector.broadcast %cst_12 : f32 to vector<36x128xf32>
    %21 = arith.maximumf %19, %20 : vector<36x128xf32>
    %cst_13 = arith.constant 0.000000e+00 : f32
    %22 = vector.broadcast %cst_13 : f32 to vector<1x1xf32>
    %cst_14 = arith.constant 1.000000e+00 : f32
    %23 = vector.broadcast %cst_14 : f32 to vector<16x1xf32>
    %24 = tpu.concatenate %22, %23, %22, %22, %23, %22 in 0 : vector<1x1xf32>, vector<16x1xf32>, vector<1x1xf32>, vector<1x1xf32>, vector<16x1xf32>, vector<1x1xf32> -> vector<36x1xf32>
    %25 = vector.broadcast %24 : vector<36x1xf32> to vector<36x128xf32>
    %26 = arith.mulf %21, %25 : vector<36x128xf32>
    %cst_15 = arith.constant 0.000000e+00 : f32
    %27 = vector.broadcast %cst_15 : f32 to vector<1x1xf32>
    %cst_16 = arith.constant 1.000000e+00 : f32
    %28 = vector.broadcast %cst_16 : f32 to vector<16x1xf32>
    %29 = tpu.concatenate %27, %28, %27, %27, %28, %27 in 0 : vector<1x1xf32>, vector<16x1xf32>, vector<1x1xf32>, vector<1x1xf32>, vector<16x1xf32>, vector<1x1xf32> -> vector<36x1xf32>
    %cst_17 = arith.constant 0.000000e+00 : f32
    %30 = vector.broadcast %cst_17 : f32 to vector<1x128xf32>
    %31 = tpu.concatenate %30, %26, %30 in 0 : vector<1x128xf32>, vector<36x128xf32>, vector<1x128xf32> -> vector<38x128xf32>
    %32 = vector.extract_strided_slice %31 {offsets = [0, 0], sizes = [36, 128], strides = [1, 1]} : vector<38x128xf32> to vector<36x128xf32>
    %33 = vector.extract_strided_slice %31 {offsets = [1, 0], sizes = [36, 128], strides = [1, 1]} : vector<38x128xf32> to vector<36x128xf32>
    %34 = vector.extract_strided_slice %31 {offsets = [2, 0], sizes = [36, 128], strides = [1, 1]} : vector<38x128xf32> to vector<36x128xf32>
    %35 = tpu.concatenate %32, %33, %34 in 1 : vector<36x128xf32>, vector<36x128xf32>, vector<36x128xf32> -> vector<36x384xf32>
    %c0_18 = arith.constant 0 : index
    %c0_19 = arith.constant 0 : index
    %36 = vector.load %arg5[%c0_18, %c0_19] : memref<384x128xf32, #tpu.memory_space<vmem>>, vector<384x128xf32>
    %cst_20 = arith.constant dense<0.000000e+00> : vector<36x128xf32>
    %37 = tpu.matmul %35, %36, %cst_20 {dimension_numbers = #tpu.dot_dimension_numbers<[1], [0], [0], [1], [0, 0, 1, 1], [], []>} : vector<36x384xf32>, vector<384x128xf32>, vector<36x128xf32> -> vector<36x128xf32>
    %c0_21 = arith.constant 0 : index
    %c0_22 = arith.constant 0 : index
    %38 = vector.load %arg6[%c0_21, %c0_22] : memref<1x128xf32, #tpu.memory_space<vmem>>, vector<1x128xf32>
    %39 = vector.broadcast %38 : vector<1x128xf32> to vector<36x128xf32>
    %40 = arith.mulf %37, %39 : vector<36x128xf32>
    %c0_23 = arith.constant 0 : index
    %c0_24 = arith.constant 0 : index
    %41 = vector.load %arg7[%c0_23, %c0_24] : memref<1x128xf32, #tpu.memory_space<vmem>>, vector<1x128xf32>
    %42 = vector.broadcast %41 : vector<1x128xf32> to vector<36x128xf32>
    %43 = arith.addf %40, %42 : vector<36x128xf32>
    %cst_25 = arith.constant 0.000000e+00 : f32
    %44 = vector.broadcast %cst_25 : f32 to vector<36x128xf32>
    %45 = arith.maximumf %43, %44 : vector<36x128xf32>
    %46 = vector.broadcast %29 : vector<36x1xf32> to vector<36x128xf32>
    %47 = arith.mulf %45, %46 : vector<36x128xf32>
    %cst_26 = arith.constant 0.000000e+00 : f32
    %48 = vector.broadcast %cst_26 : f32 to vector<1x128xf32>
    %49 = tpu.concatenate %48, %47, %48 in 0 : vector<1x128xf32>, vector<36x128xf32>, vector<1x128xf32> -> vector<38x128xf32>
    %50 = vector.extract_strided_slice %49 {offsets = [0, 0], sizes = [36, 128], strides = [1, 1]} : vector<38x128xf32> to vector<36x128xf32>
    %51 = vector.extract_strided_slice %49 {offsets = [1, 0], sizes = [36, 128], strides = [1, 1]} : vector<38x128xf32> to vector<36x128xf32>
    %52 = vector.extract_strided_slice %49 {offsets = [2, 0], sizes = [36, 128], strides = [1, 1]} : vector<38x128xf32> to vector<36x128xf32>
    %53 = tpu.concatenate %50, %51, %52 in 1 : vector<36x128xf32>, vector<36x128xf32>, vector<36x128xf32> -> vector<36x384xf32>
    %c0_27 = arith.constant 0 : index
    %c0_28 = arith.constant 0 : index
    %54 = vector.load %arg8[%c0_27, %c0_28] : memref<384x128xf32, #tpu.memory_space<vmem>>, vector<384x128xf32>
    %cst_29 = arith.constant dense<0.000000e+00> : vector<36x128xf32>
    %55 = tpu.matmul %53, %54, %cst_29 {dimension_numbers = #tpu.dot_dimension_numbers<[1], [0], [0], [1], [0, 0, 1, 1], [], []>} : vector<36x384xf32>, vector<384x128xf32>, vector<36x128xf32> -> vector<36x128xf32>
    %c0_30 = arith.constant 0 : index
    %c0_31 = arith.constant 0 : index
    %56 = vector.load %arg9[%c0_30, %c0_31] : memref<1x128xf32, #tpu.memory_space<vmem>>, vector<1x128xf32>
    %57 = vector.broadcast %56 : vector<1x128xf32> to vector<36x128xf32>
    %58 = arith.mulf %55, %57 : vector<36x128xf32>
    %c0_32 = arith.constant 0 : index
    %c0_33 = arith.constant 0 : index
    %59 = vector.load %arg10[%c0_32, %c0_33] : memref<1x128xf32, #tpu.memory_space<vmem>>, vector<1x128xf32>
    %60 = vector.broadcast %59 : vector<1x128xf32> to vector<36x128xf32>
    %61 = arith.addf %58, %60 : vector<36x128xf32>
    %62 = arith.addf %61, %26 : vector<36x128xf32>
    %cst_34 = arith.constant 0.000000e+00 : f32
    %63 = vector.broadcast %cst_34 : f32 to vector<36x128xf32>
    %64 = arith.maximumf %62, %63 : vector<36x128xf32>
    %65 = vector.broadcast %29 : vector<36x1xf32> to vector<36x128xf32>
    %66 = arith.mulf %64, %65 : vector<36x128xf32>
    %cst_35 = arith.constant 0.000000e+00 : f32
    %67 = vector.broadcast %cst_35 : f32 to vector<1x1xf32>
    %cst_36 = arith.constant 1.000000e+00 : f32
    %68 = vector.broadcast %cst_36 : f32 to vector<8x1xf32>
    %69 = tpu.concatenate %67, %68, %67, %67, %68, %67 in 0 : vector<1x1xf32>, vector<8x1xf32>, vector<1x1xf32>, vector<1x1xf32>, vector<8x1xf32>, vector<1x1xf32> -> vector<20x1xf32>
    %cst_37 = arith.constant 0.000000e+00 : f32
    %70 = vector.broadcast %cst_37 : f32 to vector<1x128xf32>
    %71 = tpu.concatenate %70, %66, %70 in 0 : vector<1x128xf32>, vector<36x128xf32>, vector<1x128xf32> -> vector<38x128xf32>
    %72 = vector.extract_strided_slice %71 {offsets = [0, 0], sizes = [36, 128], strides = [1, 1]} : vector<38x128xf32> to vector<36x128xf32>
    %73 = vector.extract_strided_slice %71 {offsets = [1, 0], sizes = [36, 128], strides = [1, 1]} : vector<38x128xf32> to vector<36x128xf32>
    %74 = vector.extract_strided_slice %71 {offsets = [2, 0], sizes = [36, 128], strides = [1, 1]} : vector<38x128xf32> to vector<36x128xf32>
    %75 = tpu.concatenate %72, %73, %74 in 1 : vector<36x128xf32>, vector<36x128xf32>, vector<36x128xf32> -> vector<36x384xf32>
    %c0_38 = arith.constant 0 : index
    %c0_39 = arith.constant 0 : index
    %76 = vector.load %arg11[%c0_38, %c0_39] : memref<384x128xf32, #tpu.memory_space<vmem>>, vector<384x128xf32>
    %cst_40 = arith.constant dense<0.000000e+00> : vector<36x128xf32>
    %77 = tpu.matmul %75, %76, %cst_40 {dimension_numbers = #tpu.dot_dimension_numbers<[1], [0], [0], [1], [0, 0, 1, 1], [], []>} : vector<36x384xf32>, vector<384x128xf32>, vector<36x128xf32> -> vector<36x128xf32>
    %c0_41 = arith.constant 0 : index
    %c0_42 = arith.constant 0 : index
    %78 = vector.load %arg20[%c0_41, %c0_42] : memref<20x36xf32, #tpu.memory_space<vmem>>, vector<20x36xf32>
    %cst_43 = arith.constant dense<0.000000e+00> : vector<20x128xf32>
    %79 = tpu.matmul %78, %77, %cst_43 {dimension_numbers = #tpu.dot_dimension_numbers<[1], [0], [0], [1], [0, 0, 1, 1], [], []>} : vector<20x36xf32>, vector<36x128xf32>, vector<20x128xf32> -> vector<20x128xf32>
    %c0_44 = arith.constant 0 : index
    %c0_45 = arith.constant 0 : index
    %80 = vector.load %arg12[%c0_44, %c0_45] : memref<1x128xf32, #tpu.memory_space<vmem>>, vector<1x128xf32>
    %81 = vector.broadcast %80 : vector<1x128xf32> to vector<20x128xf32>
    %82 = arith.mulf %79, %81 : vector<20x128xf32>
    %c0_46 = arith.constant 0 : index
    %c0_47 = arith.constant 0 : index
    %83 = vector.load %arg13[%c0_46, %c0_47] : memref<1x128xf32, #tpu.memory_space<vmem>>, vector<1x128xf32>
    %84 = vector.broadcast %83 : vector<1x128xf32> to vector<20x128xf32>
    %85 = arith.addf %82, %84 : vector<20x128xf32>
    %cst_48 = arith.constant 0.000000e+00 : f32
    %86 = vector.broadcast %cst_48 : f32 to vector<20x128xf32>
    %87 = arith.maximumf %85, %86 : vector<20x128xf32>
    %88 = vector.broadcast %69 : vector<20x1xf32> to vector<20x128xf32>
    %89 = arith.mulf %87, %88 : vector<20x128xf32>
    %cst_49 = arith.constant 0.000000e+00 : f32
    %90 = vector.broadcast %cst_49 : f32 to vector<1x128xf32>
    %91 = tpu.concatenate %90, %89, %90 in 0 : vector<1x128xf32>, vector<20x128xf32>, vector<1x128xf32> -> vector<22x128xf32>
    %92 = vector.extract_strided_slice %91 {offsets = [0, 0], sizes = [20, 128], strides = [1, 1]} : vector<22x128xf32> to vector<20x128xf32>
    %93 = vector.extract_strided_slice %91 {offsets = [1, 0], sizes = [20, 128], strides = [1, 1]} : vector<22x128xf32> to vector<20x128xf32>
    %94 = vector.extract_strided_slice %91 {offsets = [2, 0], sizes = [20, 128], strides = [1, 1]} : vector<22x128xf32> to vector<20x128xf32>
    %95 = tpu.concatenate %92, %93, %94 in 1 : vector<20x128xf32>, vector<20x128xf32>, vector<20x128xf32> -> vector<20x384xf32>
    %c0_50 = arith.constant 0 : index
    %c0_51 = arith.constant 0 : index
    %96 = vector.load %arg14[%c0_50, %c0_51] : memref<384x128xf32, #tpu.memory_space<vmem>>, vector<384x128xf32>
    %cst_52 = arith.constant dense<0.000000e+00> : vector<20x128xf32>
    %97 = tpu.matmul %95, %96, %cst_52 {dimension_numbers = #tpu.dot_dimension_numbers<[1], [0], [0], [1], [0, 0, 1, 1], [], []>} : vector<20x384xf32>, vector<384x128xf32>, vector<20x128xf32> -> vector<20x128xf32>
    %c0_53 = arith.constant 0 : index
    %c0_54 = arith.constant 0 : index
    %98 = vector.load %arg15[%c0_53, %c0_54] : memref<1x128xf32, #tpu.memory_space<vmem>>, vector<1x128xf32>
    %99 = vector.broadcast %98 : vector<1x128xf32> to vector<20x128xf32>
    %100 = arith.mulf %97, %99 : vector<20x128xf32>
    %c0_55 = arith.constant 0 : index
    %c0_56 = arith.constant 0 : index
    %101 = vector.load %arg16[%c0_55, %c0_56] : memref<1x128xf32, #tpu.memory_space<vmem>>, vector<1x128xf32>
    %102 = vector.broadcast %101 : vector<1x128xf32> to vector<20x128xf32>
    %103 = arith.addf %100, %102 : vector<20x128xf32>
    %c0_57 = arith.constant 0 : index
    %c0_58 = arith.constant 0 : index
    %104 = vector.load %arg17[%c0_57, %c0_58] : memref<128x128xf32, #tpu.memory_space<vmem>>, vector<128x128xf32>
    %cst_59 = arith.constant dense<0.000000e+00> : vector<36x128xf32>
    %105 = tpu.matmul %66, %104, %cst_59 {dimension_numbers = #tpu.dot_dimension_numbers<[1], [0], [0], [1], [0, 0, 1, 1], [], []>} : vector<36x128xf32>, vector<128x128xf32>, vector<36x128xf32> -> vector<36x128xf32>
    %c0_60 = arith.constant 0 : index
    %c0_61 = arith.constant 0 : index
    %106 = vector.load %arg20[%c0_60, %c0_61] : memref<20x36xf32, #tpu.memory_space<vmem>>, vector<20x36xf32>
    %cst_62 = arith.constant dense<0.000000e+00> : vector<20x128xf32>
    %107 = tpu.matmul %106, %105, %cst_62 {dimension_numbers = #tpu.dot_dimension_numbers<[1], [0], [0], [1], [0, 0, 1, 1], [], []>} : vector<20x36xf32>, vector<36x128xf32>, vector<20x128xf32> -> vector<20x128xf32>
    %c0_63 = arith.constant 0 : index
    %c0_64 = arith.constant 0 : index
    %108 = vector.load %arg18[%c0_63, %c0_64] : memref<1x128xf32, #tpu.memory_space<vmem>>, vector<1x128xf32>
    %109 = vector.broadcast %108 : vector<1x128xf32> to vector<20x128xf32>
    %110 = arith.mulf %107, %109 : vector<20x128xf32>
    %c0_65 = arith.constant 0 : index
    %c0_66 = arith.constant 0 : index
    %111 = vector.load %arg19[%c0_65, %c0_66] : memref<1x128xf32, #tpu.memory_space<vmem>>, vector<1x128xf32>
    %112 = vector.broadcast %111 : vector<1x128xf32> to vector<20x128xf32>
    %113 = arith.addf %110, %112 : vector<20x128xf32>
    %114 = arith.addf %103, %113 : vector<20x128xf32>
    %cst_67 = arith.constant 0.000000e+00 : f32
    %115 = vector.broadcast %cst_67 : f32 to vector<20x128xf32>
    %116 = arith.maximumf %114, %115 : vector<20x128xf32>
    %117 = vector.broadcast %69 : vector<20x1xf32> to vector<20x128xf32>
    %118 = arith.mulf %116, %117 : vector<20x128xf32>
    %cst_68 = arith.constant 0.000000e+00 : f32
    %119 = vector.broadcast %cst_68 : f32 to vector<1x1xf32>
    %cst_69 = arith.constant 1.000000e+00 : f32
    %120 = vector.broadcast %cst_69 : f32 to vector<4x1xf32>
    %121 = tpu.concatenate %119, %120, %119, %119, %120, %119 in 0 : vector<1x1xf32>, vector<4x1xf32>, vector<1x1xf32>, vector<1x1xf32>, vector<4x1xf32>, vector<1x1xf32> -> vector<12x1xf32>
    %cst_70 = arith.constant 0.000000e+00 : f32
    %122 = vector.broadcast %cst_70 : f32 to vector<1x128xf32>
    %123 = tpu.concatenate %122, %118, %122 in 0 : vector<1x128xf32>, vector<20x128xf32>, vector<1x128xf32> -> vector<22x128xf32>
    %124 = vector.extract_strided_slice %123 {offsets = [0, 0], sizes = [20, 128], strides = [1, 1]} : vector<22x128xf32> to vector<20x128xf32>
    %125 = vector.extract_strided_slice %123 {offsets = [1, 0], sizes = [20, 128], strides = [1, 1]} : vector<22x128xf32> to vector<20x128xf32>
    %126 = vector.extract_strided_slice %123 {offsets = [2, 0], sizes = [20, 128], strides = [1, 1]} : vector<22x128xf32> to vector<20x128xf32>
    %127 = tpu.concatenate %124, %125, %126 in 1 : vector<20x128xf32>, vector<20x128xf32>, vector<20x128xf32> -> vector<20x384xf32>
    %c0_71 = arith.constant 0 : index
    %c0_72 = arith.constant 0 : index
    %128 = vector.load %arg21[%c0_71, %c0_72] : memref<384x128xf32, #tpu.memory_space<vmem>>, vector<384x128xf32>
    %cst_73 = arith.constant dense<0.000000e+00> : vector<20x128xf32>
    %129 = tpu.matmul %127, %128, %cst_73 {dimension_numbers = #tpu.dot_dimension_numbers<[1], [0], [0], [1], [0, 0, 1, 1], [], []>} : vector<20x384xf32>, vector<384x128xf32>, vector<20x128xf32> -> vector<20x128xf32>
    %c0_74 = arith.constant 0 : index
    %c0_75 = arith.constant 0 : index
    %130 = vector.load %arg30[%c0_74, %c0_75] : memref<12x20xf32, #tpu.memory_space<vmem>>, vector<12x20xf32>
    %cst_76 = arith.constant dense<0.000000e+00> : vector<12x128xf32>
    %131 = tpu.matmul %130, %129, %cst_76 {dimension_numbers = #tpu.dot_dimension_numbers<[1], [0], [0], [1], [0, 0, 1, 1], [], []>} : vector<12x20xf32>, vector<20x128xf32>, vector<12x128xf32> -> vector<12x128xf32>
    %c0_77 = arith.constant 0 : index
    %c0_78 = arith.constant 0 : index
    %132 = vector.load %arg22[%c0_77, %c0_78] : memref<1x128xf32, #tpu.memory_space<vmem>>, vector<1x128xf32>
    %133 = vector.broadcast %132 : vector<1x128xf32> to vector<12x128xf32>
    %134 = arith.mulf %131, %133 : vector<12x128xf32>
    %c0_79 = arith.constant 0 : index
    %c0_80 = arith.constant 0 : index
    %135 = vector.load %arg23[%c0_79, %c0_80] : memref<1x128xf32, #tpu.memory_space<vmem>>, vector<1x128xf32>
    %136 = vector.broadcast %135 : vector<1x128xf32> to vector<12x128xf32>
    %137 = arith.addf %134, %136 : vector<12x128xf32>
    %cst_81 = arith.constant 0.000000e+00 : f32
    %138 = vector.broadcast %cst_81 : f32 to vector<12x128xf32>
    %139 = arith.maximumf %137, %138 : vector<12x128xf32>
    %140 = vector.broadcast %121 : vector<12x1xf32> to vector<12x128xf32>
    %141 = arith.mulf %139, %140 : vector<12x128xf32>
    %cst_82 = arith.constant 0.000000e+00 : f32
    %142 = vector.broadcast %cst_82 : f32 to vector<1x128xf32>
    %143 = tpu.concatenate %142, %141, %142 in 0 : vector<1x128xf32>, vector<12x128xf32>, vector<1x128xf32> -> vector<14x128xf32>
    %144 = vector.extract_strided_slice %143 {offsets = [0, 0], sizes = [12, 128], strides = [1, 1]} : vector<14x128xf32> to vector<12x128xf32>
    %145 = vector.extract_strided_slice %143 {offsets = [1, 0], sizes = [12, 128], strides = [1, 1]} : vector<14x128xf32> to vector<12x128xf32>
    %146 = vector.extract_strided_slice %143 {offsets = [2, 0], sizes = [12, 128], strides = [1, 1]} : vector<14x128xf32> to vector<12x128xf32>
    %147 = tpu.concatenate %144, %145, %146 in 1 : vector<12x128xf32>, vector<12x128xf32>, vector<12x128xf32> -> vector<12x384xf32>
    %c0_83 = arith.constant 0 : index
    %c0_84 = arith.constant 0 : index
    %148 = vector.load %arg24[%c0_83, %c0_84] : memref<384x128xf32, #tpu.memory_space<vmem>>, vector<384x128xf32>
    %cst_85 = arith.constant dense<0.000000e+00> : vector<12x128xf32>
    %149 = tpu.matmul %147, %148, %cst_85 {dimension_numbers = #tpu.dot_dimension_numbers<[1], [0], [0], [1], [0, 0, 1, 1], [], []>} : vector<12x384xf32>, vector<384x128xf32>, vector<12x128xf32> -> vector<12x128xf32>
    %c0_86 = arith.constant 0 : index
    %c0_87 = arith.constant 0 : index
    %150 = vector.load %arg25[%c0_86, %c0_87] : memref<1x128xf32, #tpu.memory_space<vmem>>, vector<1x128xf32>
    %151 = vector.broadcast %150 : vector<1x128xf32> to vector<12x128xf32>
    %152 = arith.mulf %149, %151 : vector<12x128xf32>
    %c0_88 = arith.constant 0 : index
    %c0_89 = arith.constant 0 : index
    %153 = vector.load %arg26[%c0_88, %c0_89] : memref<1x128xf32, #tpu.memory_space<vmem>>, vector<1x128xf32>
    %154 = vector.broadcast %153 : vector<1x128xf32> to vector<12x128xf32>
    %155 = arith.addf %152, %154 : vector<12x128xf32>
    %c0_90 = arith.constant 0 : index
    %c0_91 = arith.constant 0 : index
    %156 = vector.load %arg27[%c0_90, %c0_91] : memref<128x128xf32, #tpu.memory_space<vmem>>, vector<128x128xf32>
    %cst_92 = arith.constant dense<0.000000e+00> : vector<20x128xf32>
    %157 = tpu.matmul %118, %156, %cst_92 {dimension_numbers = #tpu.dot_dimension_numbers<[1], [0], [0], [1], [0, 0, 1, 1], [], []>} : vector<20x128xf32>, vector<128x128xf32>, vector<20x128xf32> -> vector<20x128xf32>
    %c0_93 = arith.constant 0 : index
    %c0_94 = arith.constant 0 : index
    %158 = vector.load %arg30[%c0_93, %c0_94] : memref<12x20xf32, #tpu.memory_space<vmem>>, vector<12x20xf32>
    %cst_95 = arith.constant dense<0.000000e+00> : vector<12x128xf32>
    %159 = tpu.matmul %158, %157, %cst_95 {dimension_numbers = #tpu.dot_dimension_numbers<[1], [0], [0], [1], [0, 0, 1, 1], [], []>} : vector<12x20xf32>, vector<20x128xf32>, vector<12x128xf32> -> vector<12x128xf32>
    %c0_96 = arith.constant 0 : index
    %c0_97 = arith.constant 0 : index
    %160 = vector.load %arg28[%c0_96, %c0_97] : memref<1x128xf32, #tpu.memory_space<vmem>>, vector<1x128xf32>
    %161 = vector.broadcast %160 : vector<1x128xf32> to vector<12x128xf32>
    %162 = arith.mulf %159, %161 : vector<12x128xf32>
    %c0_98 = arith.constant 0 : index
    %c0_99 = arith.constant 0 : index
    %163 = vector.load %arg29[%c0_98, %c0_99] : memref<1x128xf32, #tpu.memory_space<vmem>>, vector<1x128xf32>
    %164 = vector.broadcast %163 : vector<1x128xf32> to vector<12x128xf32>
    %165 = arith.addf %162, %164 : vector<12x128xf32>
    %166 = arith.addf %155, %165 : vector<12x128xf32>
    %cst_100 = arith.constant 0.000000e+00 : f32
    %167 = vector.broadcast %cst_100 : f32 to vector<12x128xf32>
    %168 = arith.maximumf %166, %167 : vector<12x128xf32>
    %169 = vector.broadcast %121 : vector<12x1xf32> to vector<12x128xf32>
    %170 = arith.mulf %168, %169 : vector<12x128xf32>
    %c0_101 = arith.constant 0 : index
    %c0_102 = arith.constant 0 : index
    %171 = vector.load %arg31[%c0_101, %c0_102] : memref<2x12xf32, #tpu.memory_space<vmem>>, vector<2x12xf32>
    %cst_103 = arith.constant dense<0.000000e+00> : vector<2x128xf32>
    %172 = tpu.matmul %171, %170, %cst_103 {dimension_numbers = #tpu.dot_dimension_numbers<[1], [0], [0], [1], [0, 0, 1, 1], [], []>} : vector<2x12xf32>, vector<12x128xf32>, vector<2x128xf32> -> vector<2x128xf32>
    %c0_104 = arith.constant 0 : index
    %c0_105 = arith.constant 0 : index
    %173 = vector.load %arg32[%c0_104, %c0_105] : memref<128x128xf32, #tpu.memory_space<vmem>>, vector<128x128xf32>
    %cst_106 = arith.constant dense<0.000000e+00> : vector<2x128xf32>
    %174 = tpu.matmul %172, %173, %cst_106 {dimension_numbers = #tpu.dot_dimension_numbers<[1], [0], [0], [1], [0, 0, 1, 1], [], []>} : vector<2x128xf32>, vector<128x128xf32>, vector<2x128xf32> -> vector<2x128xf32>
    %c0_107 = arith.constant 0 : index
    %c0_108 = arith.constant 0 : index
    %175 = vector.load %arg33[%c0_107, %c0_108] : memref<1x128xf32, #tpu.memory_space<vmem>>, vector<1x128xf32>
    %176 = vector.broadcast %175 : vector<1x128xf32> to vector<2x128xf32>
    %177 = arith.addf %174, %176 : vector<2x128xf32>
    %c0_109 = arith.constant 0 : index
    %c0_110 = arith.constant 0 : index
    %178 = vector.load %arg34[%c0_109, %c0_110] : memref<2x128xf32, #tpu.memory_space<vmem>>, vector<2x128xf32>
    tpu.vector_store %arg34[%c0_109, %c0_110], %177 {strides = array<i32>} : memref<2x128xf32, #tpu.memory_space<vmem>>, vector<2x128xf32>,
    return
  }
  func.func @transform_0(%arg0: i32) -> (i32, i32, i32) {
    %c0_i32 = arith.constant 0 : i32
    %c0_i32_0 = arith.constant 0 : i32
    %c0_i32_1 = arith.constant 0 : i32
    return %arg0, %c0_i32, %c0_i32_0 : i32, i32, i32
  }
  func.func @transform_1(%arg0: i32) -> (i32, i32) {
    %c0_i32 = arith.constant 0 : i32
    %c0_i32_0 = arith.constant 0 : i32
    %c0_i32_1 = arith.constant 0 : i32
    return %c0_i32, %c0_i32_0 : i32, i32
  }
  func.func @transform_2(%arg0: i32) -> (i32, i32) {
    %c0_i32 = arith.constant 0 : i32
    %c0_i32_0 = arith.constant 0 : i32
    %c0_i32_1 = arith.constant 0 : i32
    return %c0_i32, %c0_i32_0 : i32, i32
  }
  func.func @transform_3(%arg0: i32) -> (i32, i32) {
    %c0_i32 = arith.constant 0 : i32
    %c0_i32_0 = arith.constant 0 : i32
    %c0_i32_1 = arith.constant 0 : i32
    return %c0_i32, %c0_i32_0 : i32, i32
  }
  func.func @transform_4(%arg0: i32) -> (i32, i32) {
    %c0_i32 = arith.constant 0 : i32
    %c0_i32_0 = arith.constant 0 : i32
    %c0_i32_1 = arith.constant 0 : i32
    return %c0_i32, %c0_i32_0 : i32, i32
  }
  func.func @transform_5(%arg0: i32) -> (i32, i32) {
    %c0_i32 = arith.constant 0 : i32
    %c0_i32_0 = arith.constant 0 : i32
    %c0_i32_1 = arith.constant 0 : i32
    return %c0_i32, %c0_i32_0 : i32, i32
  }
  func.func @transform_6(%arg0: i32) -> (i32, i32) {
    %c0_i32 = arith.constant 0 : i32
    %c0_i32_0 = arith.constant 0 : i32
    %c0_i32_1 = arith.constant 0 : i32
    return %c0_i32, %c0_i32_0 : i32, i32
  }
  func.func @transform_7(%arg0: i32) -> (i32, i32) {
    %c0_i32 = arith.constant 0 : i32
    %c0_i32_0 = arith.constant 0 : i32
    %c0_i32_1 = arith.constant 0 : i32
    return %c0_i32, %c0_i32_0 : i32, i32
  }
  func.func @transform_8(%arg0: i32) -> (i32, i32) {
    %c0_i32 = arith.constant 0 : i32
    %c0_i32_0 = arith.constant 0 : i32
    %c0_i32_1 = arith.constant 0 : i32
    return %c0_i32, %c0_i32_0 : i32, i32
  }
  func.func @transform_9(%arg0: i32) -> (i32, i32) {
    %c0_i32 = arith.constant 0 : i32
    %c0_i32_0 = arith.constant 0 : i32
    %c0_i32_1 = arith.constant 0 : i32
    return %c0_i32, %c0_i32_0 : i32, i32
  }
  func.func @transform_10(%arg0: i32) -> (i32, i32) {
    %c0_i32 = arith.constant 0 : i32
    %c0_i32_0 = arith.constant 0 : i32
    %c0_i32_1 = arith.constant 0 : i32
    return %c0_i32, %c0_i32_0 : i32, i32
  }
  func.func @transform_11(%arg0: i32) -> (i32, i32) {
    %c0_i32 = arith.constant 0 : i32
    %c0_i32_0 = arith.constant 0 : i32
    %c0_i32_1 = arith.constant 0 : i32
    return %c0_i32, %c0_i32_0 : i32, i32
  }
  func.func @transform_12(%arg0: i32) -> (i32, i32) {
    %c0_i32 = arith.constant 0 : i32
    %c0_i32_0 = arith.constant 0 : i32
    %c0_i32_1 = arith.constant 0 : i32
    return %c0_i32, %c0_i32_0 : i32, i32
  }
  func.func @transform_13(%arg0: i32) -> (i32, i32) {
    %c0_i32 = arith.constant 0 : i32
    %c0_i32_0 = arith.constant 0 : i32
    %c0_i32_1 = arith.constant 0 : i32
    return %c0_i32, %c0_i32_0 : i32, i32
  }
  func.func @transform_14(%arg0: i32) -> (i32, i32) {
    %c0_i32 = arith.constant 0 : i32
    %c0_i32_0 = arith.constant 0 : i32
    %c0_i32_1 = arith.constant 0 : i32
    return %c0_i32, %c0_i32_0 : i32, i32
  }
  func.func @transform_15(%arg0: i32) -> (i32, i32) {
    %c0_i32 = arith.constant 0 : i32
    %c0_i32_0 = arith.constant 0 : i32
    %c0_i32_1 = arith.constant 0 : i32
    return %c0_i32, %c0_i32_0 : i32, i32
  }
  func.func @transform_16(%arg0: i32) -> (i32, i32) {
    %c0_i32 = arith.constant 0 : i32
    %c0_i32_0 = arith.constant 0 : i32
    %c0_i32_1 = arith.constant 0 : i32
    return %c0_i32, %c0_i32_0 : i32, i32
  }
  func.func @transform_17(%arg0: i32) -> (i32, i32) {
    %c0_i32 = arith.constant 0 : i32
    %c0_i32_0 = arith.constant 0 : i32
    %c0_i32_1 = arith.constant 0 : i32
    return %c0_i32, %c0_i32_0 : i32, i32
  }
  func.func @transform_18(%arg0: i32) -> (i32, i32) {
    %c0_i32 = arith.constant 0 : i32
    %c0_i32_0 = arith.constant 0 : i32
    %c0_i32_1 = arith.constant 0 : i32
    return %c0_i32, %c0_i32_0 : i32, i32
  }
  func.func @transform_19(%arg0: i32) -> (i32, i32) {
    %c0_i32 = arith.constant 0 : i32
    %c0_i32_0 = arith.constant 0 : i32
    %c0_i32_1 = arith.constant 0 : i32
    return %c0_i32, %c0_i32_0 : i32, i32
  }
  func.func @transform_20(%arg0: i32) -> (i32, i32) {
    %c0_i32 = arith.constant 0 : i32
    %c0_i32_0 = arith.constant 0 : i32
    %c0_i32_1 = arith.constant 0 : i32
    return %c0_i32, %c0_i32_0 : i32, i32
  }
  func.func @transform_21(%arg0: i32) -> (i32, i32) {
    %c0_i32 = arith.constant 0 : i32
    %c0_i32_0 = arith.constant 0 : i32
    %c0_i32_1 = arith.constant 0 : i32
    return %c0_i32, %c0_i32_0 : i32, i32
  }
  func.func @transform_22(%arg0: i32) -> (i32, i32) {
    %c0_i32 = arith.constant 0 : i32
    %c0_i32_0 = arith.constant 0 : i32
    %c0_i32_1 = arith.constant 0 : i32
    return %c0_i32, %c0_i32_0 : i32, i32
  }
  func.func @transform_23(%arg0: i32) -> (i32, i32) {
    %c0_i32 = arith.constant 0 : i32
    %c0_i32_0 = arith.constant 0 : i32
    %c0_i32_1 = arith.constant 0 : i32
    return %c0_i32, %c0_i32_0 : i32, i32
  }
  func.func @transform_24(%arg0: i32) -> (i32, i32) {
    %c0_i32 = arith.constant 0 : i32
    %c0_i32_0 = arith.constant 0 : i32
    %c0_i32_1 = arith.constant 0 : i32
    return %c0_i32, %c0_i32_0 : i32, i32
  }
  func.func @transform_25(%arg0: i32) -> (i32, i32) {
    %c0_i32 = arith.constant 0 : i32
    %c0_i32_0 = arith.constant 0 : i32
    %c0_i32_1 = arith.constant 0 : i32
    return %c0_i32, %c0_i32_0 : i32, i32
  }
  func.func @transform_26(%arg0: i32) -> (i32, i32) {
    %c0_i32 = arith.constant 0 : i32
    %c0_i32_0 = arith.constant 0 : i32
    %c0_i32_1 = arith.constant 0 : i32
    return %c0_i32, %c0_i32_0 : i32, i32
  }
  func.func @transform_27(%arg0: i32) -> (i32, i32) {
    %c0_i32 = arith.constant 0 : i32
    %c0_i32_0 = arith.constant 0 : i32
    %c0_i32_1 = arith.constant 0 : i32
    return %c0_i32, %c0_i32_0 : i32, i32
  }
  func.func @transform_28(%arg0: i32) -> (i32, i32) {
    %c0_i32 = arith.constant 0 : i32
    %c0_i32_0 = arith.constant 0 : i32
    %c0_i32_1 = arith.constant 0 : i32
    return %c0_i32, %c0_i32_0 : i32, i32
  }
  func.func @transform_29(%arg0: i32) -> (i32, i32) {
    %c0_i32 = arith.constant 0 : i32
    %c0_i32_0 = arith.constant 0 : i32
    %c0_i32_1 = arith.constant 0 : i32
    return %c0_i32, %c0_i32_0 : i32, i32
  }
  func.func @transform_30(%arg0: i32) -> (i32, i32) {
    %c0_i32 = arith.constant 0 : i32
    %c0_i32_0 = arith.constant 0 : i32
    %c0_i32_1 = arith.constant 0 : i32
    return %c0_i32, %c0_i32_0 : i32, i32
  }
  func.func @transform_31(%arg0: i32) -> (i32, i32) {
    %c0_i32 = arith.constant 0 : i32
    %c0_i32_0 = arith.constant 0 : i32
    %c0_i32_1 = arith.constant 0 : i32
    return %c0_i32, %c0_i32_0 : i32, i32
  }
  func.func @transform_32(%arg0: i32) -> (i32, i32) {
    %c0_i32 = arith.constant 0 : i32
    %c0_i32_0 = arith.constant 0 : i32
    %c0_i32_1 = arith.constant 0 : i32
    return %c0_i32, %c0_i32_0 : i32, i32
  }
  func.func @transform_33(%arg0: i32) -> (i32, i32) {
    %c0_i32 = arith.constant 0 : i32
    %c0_i32_0 = arith.constant 0 : i32
    return %arg0, %c0_i32 : i32, i32
  }
}

</mosaic_0001>

<bundles_post_ra>
// kernel: _lambda_.1
= control target key start
LH: loop header
LB: loop body
LE: loop exit
PB: predicated region body
PF: predicated region fallthrough
CT: control target
= control target key end

     0   :  { %s5016_s6 = smov 1   ;;  %s5017_s10 = smov 2   ;;  %s5838_s0 = inlined_call_operand.smem [shape: u32[34], index: -1, kind: input, shape index: {}] }
   0x1   :  { %s5075_s5 = sld [smem:[%s5838_s0]]   ;;  %s5018_s14 = smov 3  }
   0x2   :  { %s5080_s9 = sld [smem:[%s5838_s0 + %s5016_s6]]   ;;  %s5019_s18 = smov 4  }
   0x3   :  { %s5085_s13 = sld [smem:[%s5838_s0 + %s5017_s10]]   ;;  %s5020_s22 = smov 5  }
   0x4   :  { %s5090_s17 = sld [smem:[%s5838_s0 + %s5018_s14]]   ;;  %s5021_s26 = smov 6  }
   0x5   :  { %s5095_s21 = sld [smem:[%s5838_s0 + %s5019_s18]]   ;;  %s5022_s30 = smov 7  }
   0x6   :  { %s5100_s25 = sld [smem:[%s5838_s0 + %s5020_s22]]   ;;  %s5023_s4 = smov 8  }
   0x7   :  { %s5105_s29 = sld [smem:[%s5838_s0 + %s5021_s26]]   ;;  %s5024_s10 = smov 9  }
   0x8   :  { %s5110_s3 = sld [smem:[%s5838_s0 + %s5022_s30]]   ;;  %s5025_s15 = smov 10  }
   0x9   :  { %s5115_s8 = sld [smem:[%s5838_s0 + %s5023_s4]]   ;;  %s5026_s20 = smov 11  }
   0xa   :  { %s5120_s14 = sld [smem:[%s5838_s0 + %s5024_s10]]   ;;  %s5027_s26 = smov 12  }
   0xb   :  { %s5125_s19 = sld [smem:[%s5838_s0 + %s5025_s15]]   ;;  %s5028_s1 = smov 13  }
   0xc   :  { %s5130_s24 = sld [smem:[%s5838_s0 + %s5026_s20]]   ;;  %s5029_s7 = smov 14  }
   0xd   :  { %s5135_s30 = sld [smem:[%s5838_s0 + %s5027_s26]]   ;;  %s5030_s15 = smov 15  }
   0xe   :  { %s5140_s6 = sld [smem:[%s5838_s0 + %s5028_s1]]   ;;  %s5031_s22 = smov 16  }
   0xf   :  { %5841 = sst [smem:[#allocation24_spill]] %s5115_s8  ;;  %s5032_s28 = smov 17  }
  0x10   :  { %5842 = sst [smem:[#allocation25_spill]] %s5120_s14 }
  0x11   :  { %s5145_s12 = sld [smem:[%s5838_s0 + %s5029_s7]]   ;;  %s5033_s7 = smov 18  }
  0x12   :  { %5843 = sst [smem:[#allocation26_spill]] %s5130_s24 }
  0x13   :  { %5844 = sst [smem:[#allocation27_spill]] %s5135_s30 }
  0x14   :  { %s5150_s20 = sld [smem:[%s5838_s0 + %s5030_s15]]   ;;  %s5034_s15 = smov 19  }
  0x15   :  { %s5155_s27 = sld [smem:[%s5838_s0 + %s5031_s22]]   ;;  %s5035_s22 = smov 20  }
  0x16   :  { %s5160_s4 = sld [smem:[%s5838_s0 + %s5032_s28]]   ;;  %s5036_s28 = smov 21  }
  0x17   :  { %5845 = sst [smem:[#allocation28_spill]] %s5145_s12 }
  0x18   :  { %s5165_s12 = sld [smem:[%s5838_s0 + %s5033_s7]]   ;;  %s5037_s7 = smov 22  }
  0x19   :  { %s5175_s30 = sld [smem:[%s5838_s0 + %s5035_s22]]   ;;  %s5039_s22 = smov 24  }
  0x1a   :  { %5846 = sst [smem:[#allocation29_spill]] %s5150_s20 }
  0x1b   :  { %s5170_s20 = sld [smem:[%s5838_s0 + %s5034_s15]]   ;;  %s5038_s15 = smov 23  }
  0x1c   :  { %5847 = sst [smem:[#allocation30_spill]] %s5160_s4 }
  0x1d   :  { %s5180_s4 = sld [smem:[%s5838_s0 + %s5036_s28]]   ;;  %s5040_s28 = smov 25  }
  0x1e   :  { %5848 = sst [smem:[#allocation31_spill]] %s5165_s12 }
  0x1f   :  { %s5185_s12 = sld [smem:[%s5838_s0 + %s5037_s7]]   ;;  %s5041_s7 = smov 26  }
  0x20   :  { %s5190_s24 = sld [smem:[%s5838_s0 + %s5038_s15]]   ;;  %s5042_s15 = smov 27  }
  0x21   :  { %5849 = sst [smem:[#allocation32_spill]] %s5170_s20 }
  0x22   :  { %s5195_s20 = sld [smem:[%s5838_s0 + %s5039_s22]]   ;;  %s5043_s22 = smov 28  }
  0x23   :  { %5850 = sst [smem:[#allocation33_spill]] %s5180_s4 }
  0x24   :  { %s5200_s4 = sld [smem:[%s5838_s0 + %s5040_s28]]   ;;  %s5044_s28 = smov 29  }
  0x25   :  { %5851 = sst [smem:[#allocation34_spill]] %s5185_s12 }
  0x26   :  { %s5205_s12 = sld [smem:[%s5838_s0 + %s5041_s7]]   ;;  %s5045_s7 = smov 30  }
  0x27   :  { %s5210_s14 = sld [smem:[%s5838_s0 + %s5042_s15]]   ;;  %s5046_s15 = smov 31  }
  0x28   :  { %5852 = sst [smem:[#allocation35_spill]] %s5195_s20 }
  0x29   :  { %s5215_s20 = sld [smem:[%s5838_s0 + %s5043_s22]]   ;;  %s5047_s22 = smov 32  }
  0x2a   :  { %5853 = sst [smem:[#allocation36_spill]] %s5200_s4 }
  0x2b   :  { %s5220_s4 = sld [smem:[%s5838_s0 + %s5044_s28]]   ;;  %s5048_s28 = smov 33  }
  0x2c   :  { %s5225_s8 = sld [smem:[%s5838_s0 + %s5045_s7]]  }
  0x2d   :  { %5854 = sst [smem:[#allocation37_spill]] %s5210_s14 }
  0x2e   :  { %s5230_s14 = sld [smem:[%s5838_s0 + %s5046_s15]]  }
  0x2f   :  { %5855 = sst [smem:[#allocation38_spill]] %s5215_s20 }
  0x30   :  { %s5235_s20 = sld [smem:[%s5838_s0 + %s5047_s22]]  }
  0x31   :  { %5856 = sst [smem:[#allocation39_spill]] %s5220_s4 }
  0x32   :  { %s5240_s4 = sld [smem:[%s5838_s0 + %s5048_s28]]  }
  0x33   :  { %72 = vsyncpa [#allocation3], 0 }
  0x34   :  { %73 = vsyncpa [#allocation6], 0 }
  0x35   :  { %74 = vsyncpa [#allocation9], 0 }
  0x36   :  { %75 = vsyncpa [#allocation12], 0 }
  0x37   :  { %76 = vsyncpa [#allocation15], 0 }
  0x38   :  { %77 = vsyncpa [#allocation4], 0  ;;  %s5049_s7 = smov [#allocation5]   ;;  %s5050_s11 = smov [#allocation8]  }
  0x39   :  { %s101_s10 = sshll.u32 %s5049_s7, 4  ;;  %s133_s15 = sshll.u32 %s5050_s11, 4  ;;  %s102_s10 = int_to_ptr.vmem [resolvable:$true] %s101_s10  ;;  %s5242_s15 = int_to_ptr.vmem [resolvable:$true] %s133_s15 }
  0x3a   :  { %s4784_s16 = scalar_lea.hbm %s5095_s21, 6144 }
  0x3b   :  { %p4785_p0 = scmp.ne.s32.totalorder %s5095_s21, %s4784_s16  ;;  %p4788_p1 = scmp.lt.u32.totalorder %s4784_s16, %s5095_s21 }
  0x3d   :  { %p4790_p2 = pnand %p4788_p1, %p4785_p0 }
  0x3f   :  { %4793 = shalt.err (!%p4790_p2)
}
  0x40   :  { %s4794_s0 = scalar_lea.vmem %s102_s10, 6144  ;;  %p4799_p4 = scmp.lt.s32.totalorder %s102_s10, %s102_s10 }
  0x41   :  { %p4795_p3 = scmp.ne.s32.totalorder %s102_s10, %s4794_s0  ;;  %p4800_p5 = scmp.lt.s32.totalorder %s4794_s0, %s4794_s0 }
  0x43   :  { %p4801_p6 = por %p4800_p5, %p4799_p4 }
  0x45   :  { %p4802_p7 = pnand %p4801_p6, %p4795_p3 }
  0x47   :  { %4805 = shalt.err (!%p4802_p7)
}
  0x48   :  { %s5051_s18 = smov 128   ;;  %s5052_s22 = smov 8  }
  0x49   :  { %107 = dma.hbm_to_vmem [thread:$0]  %s5095_s21, 6144, %s102_s10, [#allocation6], %s5051_s18, %s5051_s18, %s5052_s22  }
  0x4a   :  { %s4806_s23 = scalar_lea.hbm %s5125_s19, 6144 }
  0x4b   :  { %p4807_p8 = scmp.ne.s32.totalorder %s5125_s19, %s4806_s23  ;;  %p4810_p9 = scmp.lt.u32.totalorder %s4806_s23, %s5125_s19 }
  0x4d   :  { %p4812_p10 = pnand %p4810_p9, %p4807_p8 }
  0x4f   :  { %4815 = shalt.err (!%p4812_p10)
}
  0x50   :  { %s4816_s26 = scalar_lea.vmem %s5242_s15, 6144  ;;  %p4821_p12 = scmp.lt.s32.totalorder %s5242_s15, %s5242_s15 }
  0x51   :  { %p4817_p11 = scmp.ne.s32.totalorder %s5242_s15, %s4816_s26  ;;  %p4822_p13 = scmp.lt.s32.totalorder %s4816_s26, %s4816_s26 }
  0x53   :  { %p4823_p0 = por %p4822_p13, %p4821_p12 }
  0x55   :  { %p4824_p1 = pnand %p4823_p0, %p4817_p11 }
  0x57   :  { %4827 = shalt.err (!%p4824_p1)
}
  0x58   :  { %139 = dma.hbm_to_vmem [thread:$0]  %s5125_s19, 6144, %s5242_s15, [#allocation9], %s5051_s18, %s5051_s18, %s5052_s22  }
  0x59   :  { %s5053_s21 = smov [#allocation11]   ;;  %s5054_s1 = smov [#allocation14]  }
  0x5a   :  { %s165_s28 = sshll.u32 %s5053_s21, 4  ;;  %s199_s2 = sshll.u32 %s5054_s1, 4  ;;  %s166_s28 = int_to_ptr.vmem [resolvable:$true] %s165_s28  ;;  %s5263_s2 = int_to_ptr.vmem [resolvable:$true] %s199_s2 }
  0x5b   :  { %s4828_s7 = scalar_lea.hbm %s5155_s27, 2048 }
  0x5c   :  { %p4829_p2 = scmp.ne.s32.totalorder %s5155_s27, %s4828_s7  ;;  %p4832_p3 = scmp.lt.u32.totalorder %s4828_s7, %s5155_s27 }
  0x5e   :  { %p4834_p4 = pnand %p4832_p3, %p4829_p2 }
  0x60   :  { %4837 = shalt.err (!%p4834_p4)
}
  0x61   :  { %s4838_s10 = scalar_lea.vmem %s166_s28, 2048  ;;  %p4843_p6 = scmp.lt.s32.totalorder %s166_s28, %s166_s28 }
  0x62   :  { %p4839_p5 = scmp.ne.s32.totalorder %s166_s28, %s4838_s10  ;;  %p4844_p7 = scmp.lt.s32.totalorder %s4838_s10, %s4838_s10 }
  0x64   :  { %p4845_p8 = por %p4844_p7, %p4843_p6 }
  0x66   :  { %p4846_p9 = pnand %p4845_p8, %p4839_p5 }
  0x68   :  { %4849 = shalt.err (!%p4846_p9)
}
  0x69   :  { %171 = dma.hbm_to_vmem [thread:$0]  %s5155_s27, 2048, %s166_s28, [#allocation12], %s5051_s18, %s5051_s18, %s5052_s22  }
  0x6a   :  { %s4850_s19 = scalar_lea.hbm %s5190_s24, 6144 }
  0x6b   :  { %p4851_p10 = scmp.ne.s32.totalorder %s5190_s24, %s4850_s19  ;;  %p4854_p11 = scmp.lt.u32.totalorder %s4850_s19, %s5190_s24 }
  0x6d   :  { %p4856_p12 = pnand %p4854_p11, %p4851_p10 }
  0x6f   :  { %4859 = shalt.err (!%p4856_p12)
}
  0x70   :  { %s4860_s11 = scalar_lea.vmem %s5263_s2, 6144  ;;  %p4865_p0 = scmp.lt.s32.totalorder %s5263_s2, %s5263_s2 }
  0x71   :  { %p4861_p13 = scmp.ne.s32.totalorder %s5263_s2, %s4860_s11  ;;  %p4866_p1 = scmp.lt.s32.totalorder %s4860_s11, %s4860_s11 }
  0x73   :  { %p4867_p2 = por %p4866_p1, %p4865_p0 }
  0x75   :  { %p4868_p3 = pnand %p4867_p2, %p4861_p13 }
  0x77   :  { %4871 = shalt.err (!%p4868_p3)
}
  0x78   :  { %205 = dma.hbm_to_vmem [thread:$0]  %s5190_s24, 6144, %s5263_s2, [#allocation15], %s5051_s18, %s5051_s18, %s5052_s22  }
  0x79   :  { %s5055_s27 = smov [#allocation2]   ;;  %s5056_s16 = smov [#allocation7]  }
  0x7a   :  { %s85_s15 = sshll.u32 %s5055_s27, 4  ;;  %s117_s0 = sshll.u32 %s5056_s16, 4  ;;  %s86_s15 = int_to_ptr.vmem [resolvable:$true] %s85_s15  ;;  %s5284_s0 = int_to_ptr.vmem [resolvable:$true] %s117_s0 }
  0x7b   :  { %s4872_s23 = scalar_lea.hbm %s5080_s9, 6144 }
  0x7c   :  { %p4873_p4 = scmp.ne.s32.totalorder %s5080_s9, %s4872_s23  ;;  %p4876_p5 = scmp.lt.u32.totalorder %s4872_s23, %s5080_s9 }
  0x7e   :  { %p4878_p6 = pnand %p4876_p5, %p4873_p4 }
  0x80   :  { %4881 = shalt.err (!%p4878_p6)
}
  0x81   :  { %s4882_s26 = scalar_lea.vmem %s86_s15, 6144  ;;  %p4887_p8 = scmp.lt.s32.totalorder %s86_s15, %s86_s15 }
  0x82   :  { %p4883_p7 = scmp.ne.s32.totalorder %s86_s15, %s4882_s26  ;;  %p4888_p9 = scmp.lt.s32.totalorder %s4882_s26, %s4882_s26 }
  0x84   :  { %p4889_p10 = por %p4888_p9, %p4887_p8 }
  0x86   :  { %p4890_p11 = pnand %p4889_p10, %p4883_p7 }
  0x88   :  { %4893 = shalt.err (!%p4890_p11)
}
  0x89   :  { %91 = dma.hbm_to_vmem [thread:$0]  %s5080_s9, 6144, %s86_s15, [#allocation3], %s5051_s18, %s5051_s18, %s5052_s22  }
  0x8a   :  { %s4894_s24 = scalar_lea.hbm %s5110_s3, 6144 }
  0x8b   :  { %p4895_p12 = scmp.ne.s32.totalorder %s5110_s3, %s4894_s24  ;;  %p4898_p13 = scmp.lt.u32.totalorder %s4894_s24, %s5110_s3 }
  0x8d   :  { %p4900_p0 = pnand %p4898_p13, %p4895_p12 }
  0x8f   :  { %4903 = shalt.err (!%p4900_p0)
}
  0x90   :  { %s4904_s21 = scalar_lea.vmem %s5284_s0, 6144  ;;  %p4909_p2 = scmp.lt.s32.totalorder %s5284_s0, %s5284_s0 }
  0x91   :  { %p4905_p1 = scmp.ne.s32.totalorder %s5284_s0, %s4904_s21  ;;  %p4910_p3 = scmp.lt.s32.totalorder %s4904_s21, %s4904_s21 }
  0x93   :  { %p4911_p4 = por %p4910_p3, %p4909_p2 }
  0x95   :  { %p4912_p5 = pnand %p4911_p4, %p4905_p1 }
  0x97   :  { %4915 = shalt.err (!%p4912_p5)
}
  0x98   :  { %123 = dma.hbm_to_vmem [thread:$0]  %s5110_s3, 6144, %s5284_s0, [#allocation6], %s5051_s18, %s5051_s18, %s5052_s22  }
  0x99   :  { %s5057_s9 = smov [#allocation10]   ;;  %s5058_s1 = smov [#allocation13]  }
  0x9a   :  { %s149_s28 = sshll.u32 %s5057_s9, 4  ;;  %s183_s2 = sshll.u32 %s5058_s1, 4  ;;  %s150_s28 = int_to_ptr.vmem [resolvable:$true] %s149_s28  ;;  %s5305_s2 = int_to_ptr.vmem [resolvable:$true] %s183_s2 }
  0x9b   :  { %s4916_s7 = scalar_lea.hbm %s5140_s6, 6144 }
  0x9c   :  { %p4917_p6 = scmp.ne.s32.totalorder %s5140_s6, %s4916_s7  ;;  %p4920_p7 = scmp.lt.u32.totalorder %s4916_s7, %s5140_s6 }
  0x9e   :  { %p4922_p8 = pnand %p4920_p7, %p4917_p6 }
  0xa0   :  { %4925 = shalt.err (!%p4922_p8)
}
  0xa1   :  { %s4926_s10 = scalar_lea.vmem %s150_s28, 6144  ;;  %p4931_p10 = scmp.lt.s32.totalorder %s150_s28, %s150_s28 }
  0xa2   :  { %p4927_p9 = scmp.ne.s32.totalorder %s150_s28, %s4926_s10  ;;  %p4932_p11 = scmp.lt.s32.totalorder %s4926_s10, %s4926_s10 }
  0xa4   :  { %p4933_p12 = por %p4932_p11, %p4931_p10 }
  0xa6   :  { %p4934_p13 = pnand %p4933_p12, %p4927_p9 }
  0xa8   :  { %4937 = shalt.err (!%p4934_p13)
}
  0xa9   :  { %155 = dma.hbm_to_vmem [thread:$0]  %s5140_s6, 6144, %s150_s28, [#allocation9], %s5051_s18, %s5051_s18, %s5052_s22  }
  0xaa   :  { %s4938_s3 = scalar_lea.hbm %s5175_s30, 6144 }
  0xab   :  { %p4939_p0 = scmp.ne.s32.totalorder %s5175_s30, %s4938_s3  ;;  %p4942_p1 = scmp.lt.u32.totalorder %s4938_s3, %s5175_s30 }
  0xad   :  { %p4944_p2 = pnand %p4942_p1, %p4939_p0 }
  0xaf   :  { %4947 = shalt.err (!%p4944_p2)
}
  0xb0   :  { %s4948_s19 = scalar_lea.vmem %s5305_s2, 6144  ;;  %p4953_p4 = scmp.lt.s32.totalorder %s5305_s2, %s5305_s2 }
  0xb1   :  { %p4949_p3 = scmp.ne.s32.totalorder %s5305_s2, %s4948_s19  ;;  %p4954_p5 = scmp.lt.s32.totalorder %s4948_s19, %s4948_s19 }
  0xb3   :  { %p4955_p6 = por %p4954_p5, %p4953_p4 }
  0xb5   :  { %p4956_p7 = pnand %p4955_p6, %p4949_p3 }
  0xb7   :  { %4959 = shalt.err (!%p4956_p7)
}
  0xb8   :  { %189 = dma.hbm_to_vmem [thread:$0]  %s5175_s30, 6144, %s5305_s2, [#allocation12], %s5051_s18, %s5051_s18, %s5052_s22  }
  0xb9   :  { %s5059_s6 = smov [#allocation16]   ;;  %s4960_s27 = scalar_lea.hbm %s5205_s12, 2048 }
  0xba   :  { %s215_s11 = sshll.u32 %s5059_s6, 4  ;;  %p4961_p8 = scmp.ne.s32.totalorder %s5205_s12, %s4960_s27  ;;  %s216_s11 = int_to_ptr.vmem [resolvable:$true] %s215_s11 }
  0xbb   :  { %p4964_p9 = scmp.lt.u32.totalorder %s4960_s27, %s5205_s12 }
  0xbd   :  { %p4966_p10 = pnand %p4964_p9, %p4961_p8 }
  0xbf   :  { %4969 = shalt.err (!%p4966_p10)
}
  0xc0   :  { %s4970_s15 = scalar_lea.vmem %s216_s11, 2048  ;;  %p4975_p12 = scmp.lt.s32.totalorder %s216_s11, %s216_s11 }
  0xc1   :  { %p4971_p11 = scmp.ne.s32.totalorder %s216_s11, %s4970_s15  ;;  %p4976_p13 = scmp.lt.s32.totalorder %s4970_s15, %s4970_s15 }
  0xc3   :  { %p4977_p0 = por %p4976_p13, %p4975_p12 }
  0xc5   :  { %p4978_p1 = pnand %p4977_p0, %p4971_p11 }
  0xc7   :  { %4981 = shalt.err (!%p4978_p1)
}
  0xc8   :  { %221 = dma.hbm_to_vmem [thread:$0]  %s5205_s12, 2048, %s216_s11, [#allocation15], %s5051_s18, %s5051_s18, %s5052_s22  }
  0xc9   :  { %5004 = dma.done.wait [#allocation3], 6144  }
  0xca   :  { %5005 = vsyncadd [#allocation3], 4294961152 }
  0xcb   :  { %5006 = dma.done.wait [#allocation6], 12288  }
  0xcc   :  { %5007 = vsyncadd [#allocation6], 4294955008 }
  0xcd   :  { %5008 = dma.done.wait [#allocation9], 12288  }
  0xce   :  { %5009 = vsyncadd [#allocation9], 4294955008 }
  0xcf   :  { %5010 = dma.done.wait [#allocation12], 8192  }
  0xd0   :  { %5011 = vsyncadd [#allocation12], 4294959104 }
  0xd1   :  { %5012 = dma.done.wait [#allocation15], 8192  }
  0xd2   :  { %5013 = vsyncadd [#allocation15], 4294959104  ;;  %v5060_v0 = vmov 0.0|0.0   ;;  %vm268_vm0 = vcmask 1040384   ;;  %vm276_vm1 = vcmask 1042432   ;;  %vm5061_vm2 = vmmov 0  }
  0xd3   :  { %4267 = vmatprep.subr.bf16.mxu1 %v5060_v0  ;;  %v5062_v1 = vmov 0.0   ;;  %vm284_vm3 = vcmask 1041408   ;;  %vm306_vm4 = vcmask 1044480   ;;  %v5063_v3 = vmov 0   ;;  %v356_v12 = vld [vmem:[#allocation2 + $0x80] sm:$0xff]  ;;  %v357_v13 = vld [vmem:[#allocation2 + $0x88] sm:$0xff]  ;;  %vm5382_vm7 = vmneg %vm268_vm0 }
  0xd4   :  { %3776 = vmatprep.mubr.msk.f32.mxu1 %vm5061_vm2, %v5062_v1  ;;  %v598_v2 = vsel %vm268_vm0, 1.0, %v5062_v1  ;;  %4782 = vset.pattern.permute.xlu0 %v5063_v3  ;;  %v5064_v4 = vmov 1.0   ;;  %v601_v7 = vsel %vm276_vm1, 1.0, %v5062_v1  ;;  %vm325_vm5 = vcmask 1045504   ;;  %v340_v14 = vld [vmem:[#allocation2] sm:$0xff]  ;;  %v341_v16 = vld [vmem:[#allocation2 + $0x8] sm:$0xff] }
  0xd5   :  { %v597_v5 = vsel %vm268_vm0, 0.0, %v5064_v4  ;;  %v599_v6 = vsel %vm284_vm3, %v598_v2, 0.0  ;;  %4783 = vset.pattern.permute.xlu1 %v5063_v3  ;;  %vm310_vm6 = vcmask 1046528   ;;  %v4235_v15 = vpack.c.bf16 %v357_v13, %v356_v12  ;;  %v372_v17 = vld [vmem:[#allocation2 + $0x100] sm:$0xff]  ;;  %v373_v18 = vld [vmem:[#allocation2 + $0x108] sm:$0xff]  ;;  %v358_v21 = vld [vmem:[#allocation2 + $0x90] sm:$0xff] }
  0xd6   :  { %604 = vperm.xlu0 %4782, %v597_v5   ;;  %v2137_v8 = vsel %vm306_vm4, %v597_v5, 0.0  ;;  %619 = vperm.xlu1 %4783, %v601_v7   ;;  %v600_v10 = vsel %vm276_vm1, %v599_v6, 1.0  ;;  %v4237_v19 = vpack.c.bf16 %v341_v16, %v340_v14  ;;  %v4268_v20 = vpack.c.bf16 %v373_v18, %v372_v17  ;;  %v359_v22 = vld [vmem:[#allocation2 + $0x98] sm:$0xff]  ;;  %v342_v23 = vld [vmem:[#allocation2 + $0x10] sm:$0xff]  ;;  %v360_v30 = vld [vmem:[#allocation2 + $0xa0] sm:$0xff]  ;;  %s5864_s30 = sld [smem:[#allocation28_spill]] }
  0xd7   :  { %v2138_v9 = vsel %vm325_vm5, %v2137_v8, 0.0  ;;  %4236 = vmatprep.subr.bf16.mxu0 %v4235_v15  ;;  %v4239_v24 = vpack.c.bf16 %v359_v22, %v358_v21  ;;  %v343_v25 = vld [vmem:[#allocation2 + $0x18] sm:$0xff]  ;;  %v374_v26 = vld [vmem:[#allocation2 + $0x110] sm:$0xff]  ;;  %v361_v31 = vld [vmem:[#allocation2 + $0xa8] sm:$0xff]  ;;  %vm1550_vm8 = vcmask 1043456   ;;  %vm1540_vm9 = vcmask 293888  }
  0xd8   :  { %v2139_v11 = vsel %vm310_vm6, %v2138_v9, 1.0  ;;  %v375_v27 = vld [vmem:[#allocation2 + $0x118] sm:$0xff]  ;;  %4238 = vmatpush3.bf16.msra.mxu0 %v4237_v19  ;;  %4269 = vmatpush3.bf16.msra.mxu1 %v4268_v20  ;;  %v4241_v28 = vpack.c.bf16 %v343_v25, %v342_v23  ;;  %v344_v32 = vld [vmem:[#allocation2 + $0x20] sm:$0xff]  ;;  %v4243_v33 = vpack.c.bf16 %v361_v31, %v360_v30  ;;  %v345_v34 = vld [vmem:[#allocation2 + $0x28] sm:$0xff]  ;;  %s5865_s12 = sld [smem:[#allocation30_spill]]  ;;  %s5866_s18 = sld [smem:[#allocation29_spill]] }
  0xd9   :  { %v4271_v29 = vpack.c.bf16 %v375_v27, %v374_v26  ;;  %4240 = vmatprep.subr.bf16.mxu0 %v4239_v24  ;;  %4270 = vmatprep.subr.bf16.mxu1 %v5060_v0  ;;  %v376_v35 = vld [vmem:[#allocation2 + $0x120] sm:$0xff]  ;;  %v377_v36 = vld [vmem:[#allocation2 + $0x128] sm:$0xff]  ;;  %v362_v37 = vld [vmem:[#allocation2 + $0xb0] sm:$0xff]  ;;  %v4245_v39 = vpack.c.bf16 %v345_v34, %v344_v32  ;;  %s5867_s22 = sld [smem:[#allocation31_spill]]  ;;  %vm2381_vm10 = vcmask 162816   ;;  %s5869_s0 = sld [smem:[#allocation33_spill]] }
  0xda   :  { %614 = vperm.xlu0 %4782, %v600_v10   ;;  %2488 = vperm.xlu1 %4783, %v2139_v11   ;;  %v363_v38 = vld [vmem:[#allocation2 + $0xb8] sm:$0xff]  ;;  %v4274_v40 = vpack.c.bf16 %v377_v36, %v376_v35  ;;  %v346_v41 = vld [vmem:[#allocation2 + $0x30] sm:$0xff]  ;;  %v364_v46 = vld [vmem:[#allocation2 + $0xc0] sm:$0xff]  ;;  %s5868_s16 = sld [smem:[#allocation39_spill]]  ;;  %s5870_s23 = sld [smem:[#allocation34_spill]]  ;;  %vm5065_vm11 = vmmov 1  }
  0xdb   :  { %v4247_v42 = vpack.c.bf16 %v363_v38, %v362_v37  ;;  %v347_v43 = vld [vmem:[#allocation2 + $0x38] sm:$0xff]  ;;  %v378_v44 = vld [vmem:[#allocation2 + $0x130] sm:$0xff]  ;;  %v365_v47 = vld [vmem:[#allocation2 + $0xc8] sm:$0xff]  ;;  %s5871_s26 = sld [smem:[#allocation35_spill]]  ;;  %s5872_s24 = sld [smem:[#allocation37_spill]]  ;;  %vm2929_vm13 = vcmask 97280  }
  0xdc   :  { %4242 = vmatpush3.bf16.msra.mxu0 %v4241_v28  ;;  %4272 = vmatpush3.bf16.msra.mxu1 %v4271_v29  ;;  %v379_v45 = vld [vmem:[#allocation2 + $0x138] sm:$0xff]  ;;  %v4249_v48 = vpack.c.bf16 %v347_v43, %v346_v41  ;;  %v348_v50 = vld [vmem:[#allocation2 + $0x40] sm:$0xff]  ;;  %v4251_v51 = vpack.c.bf16 %v365_v47, %v364_v46  ;;  %v349_v52 = vld [vmem:[#allocation2 + $0x48] sm:$0xff]  ;;  %s5873_s21 = sld [smem:[#allocation38_spill]]  ;;  %s5874_s9 = sld [smem:[#allocation36_spill]] }
  0xdd   :  { %4244 = vmatprep.subr.bf16.mxu0 %v4243_v33  ;;  %4273 = vmatprep.subr.bf16.mxu1 %v5060_v0  ;;  %v4277_v49 = vpack.c.bf16 %v379_v45, %v378_v44  ;;  %v380_v53 = vld [vmem:[#allocation2 + $0x140] sm:$0xff]  ;;  %v381_v54 = vld [vmem:[#allocation2 + $0x148] sm:$0xff]  ;;  %v366_v55 = vld [vmem:[#allocation2 + $0xd0] sm:$0xff]  ;;  %v4253_v59 = vpack.c.bf16 %v349_v52, %v348_v50 }
  0xde   :  { %v367_v56 = vld [vmem:[#allocation2 + $0xd8] sm:$0xff]  ;;  %v261_v57 = vld [vmem:[%s5075_s5] sm:$0xff]  ;;  %v262_v58 = vld [vmem:[%s5075_s5 + $0x8] sm:$0xff]  ;;  %v4280_v60 = vpack.c.bf16 %v381_v54, %v380_v53 }
  0xdf   :  { %v350_v61 = vld [vmem:[#allocation2 + $0x50] sm:$0xff]  ;;  %v351_v62 = vld [vmem:[#allocation2 + $0x58] sm:$0xff]  ;;  %v269_v63 = vrot.slane %v261_v57, 7  ;;  %v270_v2 = vrot.slane %v262_v58, 7  ;;  %v4255_v4 = vpack.c.bf16 %v367_v56, %v366_v55  ;;  %v368_v9 = vld [vmem:[#allocation2 + $0xe0] sm:$0xff] }
  0xe0   :  { %4246 = vmatpush3.bf16.msra.mxu0 %v4245_v39  ;;  %4275 = vmatpush3.bf16.msra.mxu1 %v4274_v40  ;;  %v3152_v3 = vld [vmem:[%s5075_s5 + $0x10] sm:$0xff]  ;;  %v383_v6 = vld [vmem:[#allocation2 + $0x158] sm:$0xff]  ;;  %v369_v10 = vld [vmem:[#allocation2 + $0xe8] sm:$0xff]  ;;  %v4257_v18 = vpack.c.bf16 %v351_v62, %v350_v61 }
  0xe1   :  { %4248 = vmatprep.subr.bf16.mxu0 %v4247_v42  ;;  %4276 = vmatprep.subr.bf16.mxu1 %v5060_v0  ;;  %v382_v5 = vld [vmem:[#allocation2 + $0x150] sm:$0xff]  ;;  %v277_v7 = vrot.slane %v3152_v3, 5  ;;  %v3153_v8 = vld [vmem:[%s5075_s5 + $0x18] sm:$0xff]  ;;  %v271_v11 = vsel %vm268_vm0, %v269_v63, %v270_v2  ;;  %v282_v12 = vsel %vm268_vm0, 0.0, %v269_v63  ;;  %v283_v13 = vsel %vm268_vm0, %v270_v2, 0.0  ;;  %v352_v20 = vld [vmem:[#allocation2 + $0x60] sm:$0xff] }
  0xe2   :  { %v5357_v14 = vrot.slane %v282_v12, 7  ;;  %v292_v15 = vrot.slane %v271_v11, 7  ;;  %v285_v16 = vsel %vm284_vm3, %v283_v13, 0.0  ;;  %v278_v17 = vrot.slane %v3153_v8, 5  ;;  %v353_v23 = vld [vmem:[#allocation2 + $0x68] sm:$0xff]  ;;  %v384_v24 = vld [vmem:[#allocation2 + $0x160] sm:$0xff]  ;;  %vm4705_vm12 = vmpackc.low %vm1550_vm8, %vm5065_vm11 }
  0xe3   :  { %v4283_v19 = vpack.c.bf16 %v383_v6, %v382_v5  ;;  %v286_v21 = vsel %vm276_vm1, %v285_v16, %v277_v7  ;;  %v4259_v22 = vpack.c.bf16 %v369_v10, %v368_v9  ;;  %v385_v25 = vld [vmem:[#allocation2 + $0x168] sm:$0xff]  ;;  %v370_v28 = vld [vmem:[#allocation2 + $0xf0] sm:$0xff]  ;;  %v371_v29 = vld [vmem:[#allocation2 + $0xf8] sm:$0xff]  ;;  %v4261_v34 = vpack.c.bf16 %v353_v23, %v352_v20  ;;  %s5859_s5 = sld [smem:[#allocation24_spill]] }
  0xe4   :  { %4250 = vmatpush3.bf16.msra.mxu0 %v4249_v48  ;;  %4278 = vmatpush3.bf16.msra.mxu1 %v4277_v49  ;;  %v5364_v26 = vsel %vm268_vm0, %v5357_v14, %v292_v15  ;;  %v305_v27 = vsel %vm268_vm0, 0.0, %v5357_v14  ;;  %v294_v32 = vrot.slane %v286_v21, 7  ;;  %v279_v33 = vsel %vm276_vm1, %v277_v7, %v278_v17  ;;  %v354_v36 = vld [vmem:[#allocation2 + $0x70] sm:$0xff]  ;;  %v355_v40 = vld [vmem:[#allocation2 + $0x78] sm:$0xff]  ;;  %v694_v45 = vld [vmem:[#allocation5 + $0x80] sm:$0xff] }
  0xe5   :  { %4252 = vmatprep.subr.bf16.mxu0 %v4251_v51  ;;  %4279 = vmatprep.subr.bf16.mxu1 %v5060_v0  ;;  %v311_v30 = vrot.slane %v305_v27, 1  ;;  %v312_v31 = vrot.slane %v5364_v26, 1  ;;  %v4286_v35 = vpack.c.bf16 %v385_v25, %v384_v24  ;;  %v287_v38 = vsel %vm276_vm1, %v278_v17, 0.0  ;;  %v386_v41 = vld [vmem:[#allocation2 + $0x170] sm:$0xff]  ;;  %v387_v42 = vld [vmem:[#allocation2 + $0x178] sm:$0xff]  ;;  %v695_v46 = vld [vmem:[#allocation5 + $0x88] sm:$0xff] }
  0xe6   :  { %v4263_v39 = vpack.c.bf16 %v371_v29, %v370_v28  ;;  %v5374_v43 = vsel %vm268_vm0, %v292_v15, %v294_v32  ;;  %v296_v44 = vrot.slane %v279_v33, 7  ;;  %v298_v47 = vrot.slane %v287_v38, 7  ;;  %v710_v54 = vld [vmem:[#allocation5 + $0x100] sm:$0xff]  ;;  %v711_v56 = vld [vmem:[#allocation5 + $0x108] sm:$0xff]  ;;  %v697_v61 = vld [vmem:[#allocation5 + $0x98] sm:$0xff] }
  0xe7   :  { %v313_v37 = vsel %vm310_vm6, %v311_v30, %v312_v31  ;;  %v4265_v48 = vpack.c.bf16 %v355_v40, %v354_v36  ;;  %v4289_v49 = vpack.c.bf16 %v387_v42, %v386_v41  ;;  %v326_v50 = vrot.slane %v305_v27, 2  ;;  %v678_v57 = vld [vmem:[#allocation5] sm:$0xff]  ;;  %v679_v58 = vld [vmem:[#allocation5 + $0x8] sm:$0xff]  ;;  %v712_v7 = vld [vmem:[#allocation5 + $0x110] sm:$0xff] }
  0xe8   :  { %4254 = vmatpush3.bf16.msra.mxu0 %v4253_v59  ;;  %4281 = vmatpush3.bf16.msra.mxu1 %v4280_v60  ;;  %v327_v51 = vrot.slane %v5364_v26, 2  ;;  %v314_v52 = vrot.slane %v5374_v43, 1  ;;  %v4291_v53 = vpack.c.bf16 %v695_v46, %v694_v45  ;;  %v297_v55 = vsel %vm268_vm0, %v294_v32, %v296_v44  ;;  %v696_v60 = vld [vmem:[#allocation5 + $0x90] sm:$0xff]  ;;  %v713_v10 = vld [vmem:[#allocation5 + $0x118] sm:$0xff]  ;;  %v698_v13 = vld [vmem:[#allocation5 + $0xa0] sm:$0xff] }
  0xe9   :  { %4256 = vmatprep.subr.bf16.mxu0 %v4255_v4  ;;  %4282 = vmatprep.subr.bf16.mxu1 %v5060_v0  ;;  %v299_v59 = vsel %vm268_vm0, %v296_v44, %v298_v47  ;;  %v329_v2 = vrot.slane %v5374_v43, 2  ;;  %v316_v4 = vrot.slane %v297_v55, 1  ;;  %v4324_v5 = vpack.c.bf16 %v711_v56, %v710_v54  ;;  %v680_v11 = vld [vmem:[#allocation5 + $0x10] sm:$0xff]  ;;  %v681_v12 = vld [vmem:[#allocation5 + $0x18] sm:$0xff]  ;;  %v699_v15 = vld [vmem:[#allocation5 + $0xa8] sm:$0xff] }
  0xea   :  { %452 = vmatprep.mubr.f32.mxu0 %v313_v37  ;;  %v328_v63 = vsel %vm325_vm5, %v326_v50, %v327_v51  ;;  %v315_v3 = vsel %vm310_vm6, %v312_v31, %v314_v52  ;;  %v4293_v6 = vpack.c.bf16 %v679_v58, %v678_v57  ;;  %v307_v8 = vsel %vm306_vm4, %v299_v59, 0.0  ;;  %v715_v23 = vld [vmem:[#allocation5 + $0x128] sm:$0xff]  ;;  %v682_v29 = vld [vmem:[#allocation5 + $0x20] sm:$0xff]  ;;  %v700_v32 = vld [vmem:[#allocation5 + $0xb0] sm:$0xff] }
  0xeb   :  { %v4295_v9 = vpack.c.bf16 %v697_v61, %v696_v60  ;;  %v330_v16 = vsel %vm325_vm5, %v327_v51, %v329_v2  ;;  %v331_v17 = vrot.slane %v297_v55, 2  ;;  %v4327_v20 = vpack.c.bf16 %v713_v10, %v712_v7  ;;  %v683_v30 = vld [vmem:[#allocation5 + $0x28] sm:$0xff]  ;;  %v701_v33 = vld [vmem:[#allocation5 + $0xb8] sm:$0xff]  ;;  %v684_v37 = vld [vmem:[#allocation5 + $0x30] sm:$0xff] }
  0xec   :  { %4258 = vmatpush3.bf16.msra.mxu0 %v4257_v18  ;;  %4284 = vmatpush3.bf16.msra.mxu1 %v4283_v19  ;;  %v317_v18 = vsel %vm310_vm6, %v314_v52, %v316_v4  ;;  %v318_v19 = vrot.slane %v307_v8, 1  ;;  %v4297_v21 = vpack.c.bf16 %v681_v12, %v680_v11  ;;  %v333_v25 = vrot.slane %v307_v8, 2  ;;  %v717_v36 = vld [vmem:[#allocation5 + $0x138] sm:$0xff]  ;;  %v702_v41 = vld [vmem:[#allocation5 + $0xc0] sm:$0xff]  ;;  %v703_v42 = vld [vmem:[#allocation5 + $0xc8] sm:$0xff] }
  0xed   :  { %4260 = vmatprep.subr.bf16.mxu0 %v4259_v22  ;;  %4285 = vmatprep.subr.bf16.mxu1 %v5060_v0  ;;  %v714_v22 = vld [vmem:[#allocation5 + $0x120] sm:$0xff]  ;;  %v332_v24 = vsel %vm325_vm5, %v329_v2, %v331_v17  ;;  %v4301_v31 = vpack.c.bf16 %v683_v30, %v682_v29  ;;  %v685_v38 = vld [vmem:[#allocation5 + $0x38] sm:$0xff]  ;;  %v719_v45 = vld [vmem:[#allocation5 + $0x148] sm:$0xff] }
  0xee   :  { %v319_v27 = vsel %vm310_vm6, %v316_v4, %v318_v19  ;;  %v4330_v28 = vpack.c.bf16 %v715_v23, %v714_v22  ;;  %v4305_v40 = vpack.c.bf16 %v685_v38, %v684_v37  ;;  %v718_v44 = vld [vmem:[#allocation5 + $0x140] sm:$0xff]  ;;  %v704_v50 = vld [vmem:[#allocation5 + $0xd0] sm:$0xff]  ;;  %v705_v51 = vld [vmem:[#allocation5 + $0xd8] sm:$0xff] }
  0xef   :  { %v686_v46 = vld [vmem:[#allocation5 + $0x40] sm:$0xff]  ;;  %v4336_v47 = vpack.c.bf16 %v719_v45, %v718_v44  ;;  %v720_v52 = vld [vmem:[#allocation5 + $0x150] sm:$0xff]  ;;  %v721_v54 = vld [vmem:[#allocation5 + $0x158] sm:$0xff] }
  0xf0   :  { %4262 = vmatpush3.bf16.msra.mxu0 %v4261_v34  ;;  %4287 = vmatpush3.bf16.msra.mxu1 %v4286_v35  ;;  %v716_v34 = vld [vmem:[#allocation5 + $0x130] sm:$0xff]  ;;  %v4303_v35 = vpack.c.bf16 %v701_v33, %v700_v32  ;;  %v689_v56 = vld [vmem:[#allocation5 + $0x58] sm:$0xff]  ;;  %v4339_v57 = vpack.c.bf16 %v721_v54, %v720_v52  ;;  %v707_v60 = vld [vmem:[#allocation5 + $0xe8] sm:$0xff] }
  0xf1   :  { %4264 = vmatprep.subr.bf16.mxu0 %v4263_v39  ;;  %4288 = vmatprep.subr.bf16.mxu1 %v5060_v0  ;;  %v4333_v39 = vpack.c.bf16 %v717_v36, %v716_v34  ;;  %v722_v61 = vld [vmem:[#allocation5 + $0x160] sm:$0xff]  ;;  %v723_v2 = vld [vmem:[#allocation5 + $0x168] sm:$0xff]  ;;  %v708_v7 = vld [vmem:[#allocation5 + $0xf0] sm:$0xff] }
  0xf2   :  { %v691_v4 = vld [vmem:[#allocation5 + $0x68] sm:$0xff]  ;;  %v709_v8 = vld [vmem:[#allocation5 + $0xf8] sm:$0xff]  ;;  %v692_v12 = vld [vmem:[#allocation5 + $0x70] sm:$0xff] }
  0xf3   :  { %v4319_v10 = vpack.c.bf16 %v709_v8, %v708_v7  ;;  %v725_v11 = vld [vmem:[#allocation5 + $0x178] sm:$0xff]  ;;  %v1023_v54 = vld [vmem:[#allocation7 + $0x100] sm:$0xff]  ;;  %v2736_v62 = vld [vmem:[#allocation16 + $0x30] sm:$0xff] }
  0xf4   :  { %4266 = vmatpush3.bf16.msra.mxu0 %v4265_v48  ;;  %4290 = vmatpush3.bf16.msra.mxu1 %v4289_v49  ;;  %v687_v48 = vld [vmem:[#allocation5 + $0x48] sm:$0xff] }
  0xf5   :  { %4323 = vmatprep.subr.bf16.mxu1 %v5060_v0  ;;  %4292 = vmatprep.subr.bf16.mxu0 %v4291_v53  ;;  %v4309_v49 = vpack.c.bf16 %v687_v48, %v686_v46  ;;  %v4311_v53 = vpack.c.bf16 %v705_v51, %v704_v50 }
  0xf7   :  { %3155 = vmatmul.mubr.msk.f32.vlgmr.msra.gmra.mrb[0].mxu0 %vm5382_vm7, %v5357_v14  ;;  %3777 = vmatmul.mubr.f32.vlgmr.msra.gmra.mrb[0].mxu1 %v328_v63  ;;  %v4299_v14 = vpack.c.bf16 %v699_v15, %v698_v13  ;;  %v693_v13 = vld [vmem:[#allocation5 + $0x78] sm:$0xff] }
  0xf8   :  { %457 = vmatprep.mubr.f32.mxu0 %v315_v3  ;;  %3779 = vmatprep.mubr.msk.f32.mxu1 %vm5061_vm2, %v5062_v1  ;;  %v690_v3 = vld [vmem:[#allocation5 + $0x60] sm:$0xff] }
  0xf9   :  { %4325 = vmatpush3.bf16.msra.mxu1 %v4324_v5  ;;  %4294 = vmatpush3.bf16.msra.mxu0 %v4293_v6  ;;  %v4342_v5 = vpack.c.bf16 %v723_v2, %v722_v61  ;;  %v4317_v6 = vpack.c.bf16 %v691_v4, %v690_v3  ;;  %v991_v4 = vld [vmem:[#allocation7] sm:$0xff] }
  0xfa   :  { %4326 = vmatprep.subr.bf16.mxu1 %v5060_v0  ;;  %4296 = vmatprep.subr.bf16.mxu0 %v4295_v9  ;;  %v724_v9 = vld [vmem:[#allocation5 + $0x170] sm:$0xff] }
  0xfb   :  { %458 = vmatmul.mubr.f32.gmra.mrb[2].mxu0 %v5364_v26  ;;  %3780 = vmatmul.mubr.f32.gmra.mrb[2].mxu1 %v330_v16  ;;  %v334_v26 = vsel %vm325_vm5, %v331_v17, %v333_v25  ;;  %v4345_v15 = vpack.c.bf16 %v725_v11, %v724_v9  ;;  %v4321_v16 = vpack.c.bf16 %v693_v13, %v692_v12  ;;  %v1007_v17 = vld [vmem:[#allocation7 + $0x80] sm:$0xff]  ;;  %v1010_v11 = vld [vmem:[#allocation7 + $0x98] sm:$0xff] }
  0xfc   :  { %462 = vmatprep.mubr.f32.mxu0 %v317_v18  ;;  %3782 = vmatprep.mubr.msk.f32.mxu1 %vm5061_vm2, %v5062_v1  ;;  %v1008_v18 = vld [vmem:[#allocation7 + $0x88] sm:$0xff] }
  0xfd   :  { %4328 = vmatpush3.bf16.msra.mxu1 %v4327_v20  ;;  %4298 = vmatpush3.bf16.msra.mxu0 %v4297_v21 }
  0xfe   :  { %4329 = vmatprep.subr.bf16.mxu1 %v5060_v0  ;;  %4300 = vmatprep.subr.bf16.mxu0 %v4299_v14 }
  0xff   :  { %463 = vmatmul.mubr.f32.gmra.mrb[4].mxu0 %v5374_v43  ;;  %3783 = vmatmul.mubr.f32.gmra.mrb[4].mxu1 %v332_v24  ;;  %v4307_v43 = vpack.c.bf16 %v703_v42, %v702_v41  ;;  %v5421_v24 = vld [vmem:[%s5085_s13] ss:$0 sm:$0xff]  ;;  %s5860_s13 = sld [smem:[#allocation25_spill]] }
 0x100   :  { %467 = vmatprep.mubr.f32.mxu0 %v319_v27  ;;  %3785 = vmatprep.mubr.msk.f32.mxu1 %vm5061_vm2, %v5062_v1 }
 0x101   :  { %4331 = vmatpush3.bf16.msra.mxu1 %v4330_v28  ;;  %4302 = vmatpush3.bf16.msra.mxu0 %v4301_v31 }
 0x102   :  { %4332 = vmatprep.subr.bf16.mxu1 %v5060_v0  ;;  %4304 = vmatprep.subr.bf16.mxu0 %v4303_v35 }
 0x103   :  { %468 = vmatmul.mubr.f32.gmra.mrb[6].mxu0 %v297_v55  ;;  %3786 = vmatmul.mubr.f32.gmra.mrb[6].mxu1 %v334_v26  ;;  %v688_v55 = vld [vmem:[#allocation5 + $0x50] sm:$0xff]  ;;  %v5424_v26 = vld [vmem:[%s5090_s17] ss:$0 sm:$0xff]  ;;  %s5861_s17 = sld [smem:[#allocation32_spill]] }
 0x104   :  { %472 = vmatprep.mubr.f32.mxu0 %v318_v19  ;;  %3788 = vmatprep.mubr.msk.f32.mxu1 %vm5061_vm2, %v5062_v1  ;;  %v4313_v58 = vpack.c.bf16 %v689_v56, %v688_v55  ;;  %v4347_v19 = vpack.c.bf16 %v1008_v18, %v1007_v17  ;;  %v1024_v55 = vld [vmem:[#allocation7 + $0x108] sm:$0xff] }
 0x105   :  { %4334 = vmatpush3.bf16.msra.mxu1 %v4333_v39  ;;  %4306 = vmatpush3.bf16.msra.mxu0 %v4305_v40  ;;  %v4380_v3 = vpack.c.bf16 %v1024_v55, %v1023_v54 }
 0x106   :  { %4335 = vmatprep.subr.bf16.mxu1 %v5060_v0  ;;  %4308 = vmatprep.subr.bf16.mxu0 %v4307_v43 }
 0x107   :  { %3156 = vmatmul.mubr.msk.f32.gmra.mrb[8].mxu0 %vm306_vm4, %v299_v59  ;;  %3789 = vmatmul.mubr.f32.gmra.mrb[8].mxu1 %v333_v25  ;;  %v706_v59 = vld [vmem:[#allocation5 + $0xe0] sm:$0xff] }
 0x108   :  { %3823 = vmatprep.mubr.msk.f32.mxu1 %vm5061_vm2, %v5062_v1  ;;  %v4315_v63 = vpack.c.bf16 %v707_v60, %v706_v59 }
 0x109   :  { %4337 = vmatpush3.bf16.msra.mxu1 %v4336_v47  ;;  %4310 = vmatpush3.bf16.msra.mxu0 %v4309_v49 }
 0x10a   :  { %4338 = vmatprep.subr.bf16.mxu1 %v5060_v0  ;;  %4312 = vmatprep.subr.bf16.mxu0 %v4311_v53 }
 0x10d   :  { %4340 = vmatpush3.bf16.msra.mxu1 %v4339_v57  ;;  %4314 = vmatpush3.bf16.msra.mxu0 %v4313_v58 }
 0x10e   :  { %4341 = vmatprep.subr.bf16.mxu1 %v5060_v0  ;;  %4316 = vmatprep.subr.bf16.mxu0 %v4315_v63 }
 0x111   :  { %4343 = vmatpush3.bf16.msra.mxu1 %v4342_v5  ;;  %4318 = vmatpush3.bf16.msra.mxu0 %v4317_v6  ;;  %v992_v5 = vld [vmem:[#allocation7 + $0x8] sm:$0xff] }
 0x112   :  { %4344 = vmatprep.subr.bf16.mxu1 %v5060_v0  ;;  %4320 = vmatprep.subr.bf16.mxu0 %v4319_v10  ;;  %v1009_v10 = vld [vmem:[#allocation7 + $0x90] sm:$0xff] }
 0x115   :  { %4346 = vmatpush3.bf16.msra.mxu1 %v4345_v15  ;;  %4322 = vmatpush3.bf16.msra.mxu0 %v4321_v16 }
 0x116   :  { %4379 = vmatprep.subr.bf16.mxu1 %v5060_v0  ;;  %4348 = vmatprep.subr.bf16.mxu0 %v4347_v19 }
 0x155   :  { %v5427_v33 = vpop.permute.xlu0 %604 }
 0x159   :  { %v5446_v12 = vpop.permute.xlu0 %614 }
 0x1ca   :  { %v3242_v20 = vpop.f32.mrb[0].mxu0  ;;  %v544_v21 = vpop.f32.mrb[0].mxu1 }
 0x1cb   :  { %v3243_v14 = vpop.f32.mrb[1].mxu0  ;;  %v3778_v22 = vpop.f32.mrb[1].mxu1 }
 0x1cc   :  { %v3244_v23 = vadd.f32 %v3243_v14, %v3242_v20 }
 0x1ce   :  { %v545_v25 = vadd.f32 %v3244_v23, %v544_v21  ;;  %v3245_v27 = vpop.f32.mrb[2].mxu0  ;;  %v549_v28 = vpop.f32.mrb[2].mxu1  ;;  %v4349_v21 = vpack.c.bf16 %v992_v5, %v991_v4  ;;  %v4351_v23 = vpack.c.bf16 %v1010_v11, %v1009_v10  ;;  %v996_v4 = vld [vmem:[#allocation7 + $0x28] sm:$0xff]  ;;  %v1030_v11 = vld [vmem:[#allocation7 + $0x138] sm:$0xff] }
 0x1cf   :  { %v3246_v29 = vpop.f32.mrb[3].mxu0  ;;  %v3781_v30 = vpop.f32.mrb[3].mxu1 }
 0x1d0   :  { %v575_v31 = vmul.f32 %v5421_v24, %v545_v25  ;;  %v3247_v32 = vadd.f32 %v3246_v29, %v3245_v27  ;;  %v1025_v29 = vld [vmem:[#allocation7 + $0x110] sm:$0xff]  ;;  %v1026_v30 = vld [vmem:[#allocation7 + $0x118] sm:$0xff] }
 0x1d2   :  { %v587_v34 = vadd.f32 %v5424_v26, %v575_v31  ;;  %v550_v35 = vadd.f32 %v3247_v32, %v549_v28  ;;  %v3248_v36 = vpop.f32.mrb[4].mxu0  ;;  %v554_v37 = vpop.f32.mrb[4].mxu1  ;;  %v993_v31 = vld [vmem:[#allocation7 + $0x10] sm:$0xff]  ;;  %v994_v32 = vld [vmem:[#allocation7 + $0x18] sm:$0xff] }
 0x1d3   :  { %v3249_v38 = vpop.f32.mrb[5].mxu0  ;;  %v3784_v39 = vpop.f32.mrb[5].mxu1 }
 0x1d4   :  { %v592_v40 = vmax.f32 %v587_v34, 0.0  ;;  %v576_v41 = vmul.f32 %v5421_v24, %v550_v35  ;;  %v3250_v42 = vadd.f32 %v3249_v38, %v3248_v36 }
 0x1d6   :  { %v5432_v43 = vadd.f32 %v5424_v26, %v576_v41  ;;  %v555_v44 = vadd.f32 %v3250_v42, %v554_v37  ;;  %v5435_v45 = vmul.f32 %v5427_v33, %v592_v40  ;;  %v3251_v46 = vpop.f32.mrb[6].mxu0  ;;  %v559_v47 = vpop.f32.mrb[6].mxu1  ;;  %v4383_v40 = vpack.c.bf16 %v1026_v30, %v1025_v29  ;;  %v1000_v29 = vld [vmem:[#allocation7 + $0x48] sm:$0xff] }
 0x1d7   :  { %v3252_v48 = vpop.f32.mrb[7].mxu0  ;;  %v3787_v49 = vpop.f32.mrb[7].mxu1  ;;  %v4353_v41 = vpack.c.bf16 %v994_v32, %v993_v31  ;;  %v1017_v31 = vld [vmem:[#allocation7 + $0xd0] sm:$0xff]  ;;  %v1018_v32 = vld [vmem:[#allocation7 + $0xd8] sm:$0xff] }
 0x1d8   :  { %v593_v50 = vmax.f32 %v5432_v43, 0.0  ;;  %v577_v51 = vmul.f32 %v5421_v24, %v555_v44  ;;  %v632_v52 = vrot.slane %v5435_v45, 7  ;;  %v3253_v53 = vadd.f32 %v3252_v48, %v3251_v46  ;;  %v5469_v42 = vpop.permute.xlu1 %619 }
 0x1da   :  { %v633_v56 = vrot.slane %v593_v50, 7  ;;  %v589_v57 = vadd.f32 %v5424_v26, %v577_v51  ;;  %v560_v58 = vadd.f32 %v3253_v53, %v559_v47  ;;  %v3254_v59 = vpop.f32.mrb[8].mxu0  ;;  %v564_v60 = vpop.f32.mrb[8].mxu1  ;;  %v646_v61 = vsel %vm268_vm0, 0.0, %v632_v52 }
 0x1db   :  { %v3255_v63 = vpop.f32.mrb[9].mxu0  ;;  %v3790_v2 = vpop.f32.mrb[9].mxu1  ;;  %v650_v13 = vrot.slane %v646_v61, 1  ;;  %v664_v16 = vrot.slane %v646_v61, 2  ;;  %v1027_v61 = vld [vmem:[#allocation7 + $0x120] sm:$0xff] }
 0x1dc   :  { %v594_v6 = vmax.f32 %v589_v57, 0.0  ;;  %v578_v7 = vmul.f32 %v5421_v24, %v560_v58  ;;  %v3256_v8 = vadd.f32 %v3255_v63, %v3254_v59  ;;  %v634_v9 = vsel %vm268_vm0, %v632_v52, %v633_v56  ;;  %v1011_v59 = vld [vmem:[#allocation7 + $0xa0] sm:$0xff]  ;;  %v1028_v2 = vld [vmem:[#allocation7 + $0x128] sm:$0xff] }
 0x1dd   :  { %v651_v15 = vrot.slane %v634_v9, 1  ;;  %v665_v17 = vrot.slane %v634_v9, 2  ;;  %v4386_v5 = vpack.c.bf16 %v1028_v2, %v1027_v61  ;;  %v1326_v2 = vld [vmem:[#allocation8 + $0x88] sm:$0xff] }
 0x1de   :  { %v5449_v18 = vadd.f32 %v5424_v26, %v578_v7  ;;  %v5452_v19 = vmul.f32 %v5446_v12, %v594_v6  ;;  %v565_v20 = vadd.f32 %v3256_v8, %v564_v60  ;;  %v1012_v60 = vld [vmem:[#allocation7 + $0xa8] sm:$0xff]  ;;  %v1013_v7 = vld [vmem:[#allocation7 + $0xb0] sm:$0xff]  ;;  %v1014_v8 = vld [vmem:[#allocation7 + $0xb8] sm:$0xff] }
 0x1df   :  { %v652_v14 = vsel %vm310_vm6, %v650_v13, %v651_v15  ;;  %v666_v22 = vsel %vm325_vm5, %v664_v16, %v665_v17  ;;  %v4355_v63 = vpack.c.bf16 %v1012_v60, %v1011_v59  ;;  %v4359_v10 = vpack.c.bf16 %v1014_v8, %v1013_v7  ;;  %v997_v13 = vld [vmem:[#allocation7 + $0x30] sm:$0xff]  ;;  %v1006_v59 = vld [vmem:[#allocation7 + $0x78] sm:$0xff] }
 0x1e0   :  { %v595_v25 = vmax.f32 %v5449_v18, 0.0  ;;  %v635_v27 = vrot.slane %v5452_v19, 7  ;;  %v579_v28 = vmul.f32 %v5421_v24, %v565_v20  ;;  %790 = vmatprep.mubr.f32.mxu0 %v652_v14  ;;  %3824 = vmatmul.mubr.f32.vlgmr.msra.gmra.mrb[10].mxu1 %v666_v22  ;;  %v1015_v20 = vld [vmem:[#allocation7 + $0xc0] sm:$0xff] }
 0x1e1   :  { %3160 = vmatmul.mubr.msk.f32.vlgmr.msra.gmra.mrb[10].mxu0 %vm5382_vm7, %v632_v52  ;;  %3826 = vmatprep.mubr.msk.f32.mxu1 %vm5061_vm2, %v5062_v1  ;;  %v1031_v22 = vld [vmem:[#allocation7 + $0x140] sm:$0xff] }
 0x1e2   :  { %v637_v34 = vrot.slane %v595_v25, 7  ;;  %v591_v35 = vadd.f32 %v5424_v26, %v579_v28  ;;  %v636_v36 = vsel %vm268_vm0, %v633_v56, %v635_v27  ;;  %4381 = vmatpush3.bf16.msra.mxu1 %v4380_v3  ;;  %4350 = vmatpush3.bf16.msra.mxu0 %v4349_v21  ;;  %v995_v3 = vld [vmem:[#allocation7 + $0x20] sm:$0xff]  ;;  %v1016_v21 = vld [vmem:[#allocation7 + $0xc8] sm:$0xff] }
 0x1e3   :  { %v653_v24 = vrot.slane %v636_v36, 1  ;;  %v667_v37 = vrot.slane %v636_v36, 2  ;;  %4382 = vmatprep.subr.bf16.mxu1 %v5060_v0  ;;  %4352 = vmatprep.subr.bf16.mxu0 %v4351_v23  ;;  %v4357_v6 = vpack.c.bf16 %v996_v4, %v995_v3  ;;  %v4363_v14 = vpack.c.bf16 %v1016_v21, %v1015_v20  ;;  %v1032_v23 = vld [vmem:[#allocation7 + $0x148] sm:$0xff] }
 0x1e4   :  { %v596_v38 = vmax.f32 %v591_v35, 0.0  ;;  %v638_v39 = vsel %vm268_vm0, %v635_v27, %v637_v34  ;;  %v999_v27 = vld [vmem:[#allocation7 + $0x40] sm:$0xff]  ;;  %v4392_v28 = vpack.c.bf16 %v1032_v23, %v1031_v22  ;;  %v4367_v35 = vpack.c.bf16 %v1018_v32, %v1017_v31 }
 0x1e5   :  { %v654_v44 = vsel %vm310_vm6, %v651_v15, %v653_v24  ;;  %v668_v26 = vsel %vm325_vm5, %v665_v17, %v667_v37  ;;  %v655_v46 = vrot.slane %v638_v39, 1  ;;  %v669_v47 = vrot.slane %v638_v39, 2  ;;  %v998_v15 = vld [vmem:[#allocation7 + $0x38] sm:$0xff] }
 0x1e6   :  { %795 = vmatprep.mubr.f32.mxu0 %v654_v44  ;;  %3827 = vmatmul.mubr.f32.gmra.mrb[12].mxu1 %v668_v26  ;;  %v5474_v48 = vmul.f32 %v5469_v42, %v596_v38  ;;  %v4361_v17 = vpack.c.bf16 %v998_v15, %v997_v13  ;;  %v4365_v30 = vpack.c.bf16 %v1000_v29, %v999_v27  ;;  %v1035_v44 = vld [vmem:[#allocation7 + $0x160] sm:$0xff] }
 0x1e7   :  { %796 = vmatmul.mubr.f32.gmra.mrb[12].mxu0 %v634_v9  ;;  %v656_v49 = vsel %vm310_vm6, %v653_v24, %v655_v46  ;;  %3829 = vmatprep.mubr.msk.f32.mxu1 %vm5061_vm2, %v5062_v1  ;;  %v670_v52 = vsel %vm325_vm5, %v667_v37, %v669_v47  ;;  %v1029_v9 = vld [vmem:[#allocation7 + $0x130] sm:$0xff]  ;;  %v1002_v37 = vld [vmem:[#allocation7 + $0x58] sm:$0xff] }
 0x1e8   :  { %800 = vmatprep.mubr.f32.mxu0 %v656_v49  ;;  %v639_v51 = vrot.slane %v5474_v48, 7  ;;  %4384 = vmatpush3.bf16.msra.mxu1 %v4383_v40  ;;  %v4389_v16 = vpack.c.bf16 %v1030_v11, %v1029_v9  ;;  %v1001_v24 = vld [vmem:[#allocation7 + $0x50] sm:$0xff]  ;;  %v1019_v40 = vld [vmem:[#allocation7 + $0xe0] sm:$0xff]  ;;  %v1004_v49 = vld [vmem:[#allocation7 + $0x68] sm:$0xff] }
 0x1e9   :  { %4354 = vmatpush3.bf16.msra.mxu0 %v4353_v41  ;;  %4385 = vmatprep.subr.bf16.mxu1 %v5060_v0  ;;  %v1020_v41 = vld [vmem:[#allocation7 + $0xe8] sm:$0xff]  ;;  %v3162_v9 = vld [vmem:[%s5100_s25] ss:$0 sm:$0xff]  ;;  %s5862_s25 = sld [smem:[#allocation26_spill]] }
 0x1ea   :  { %3830 = vmatmul.mubr.f32.gmra.mrb[14].mxu1 %v670_v52  ;;  %v640_v53 = vsel %vm268_vm0, %v637_v34, %v639_v51  ;;  %4356 = vmatprep.subr.bf16.mxu0 %v4355_v63  ;;  %v1033_v34 = vld [vmem:[#allocation7 + $0x150] sm:$0xff]  ;;  %v4371_v26 = vpack.c.bf16 %v1020_v41, %v1019_v40  ;;  %v1325_v63 = vld [vmem:[#allocation8 + $0x80] sm:$0xff] }
 0x1eb   :  { %801 = vmatmul.mubr.f32.gmra.mrb[14].mxu0 %v636_v36  ;;  %3832 = vmatprep.mubr.msk.f32.mxu1 %vm5061_vm2, %v5062_v1  ;;  %v647_v54 = vsel %vm306_vm4, %v640_v53, 0.0  ;;  %v1034_v36 = vld [vmem:[#allocation7 + $0x158] sm:$0xff]  ;;  %v4403_v3 = vpack.c.bf16 %v1326_v2, %v1325_v63  ;;  %v5501_v11 = vld [vmem:[%s5105_s29] ss:$0 sm:$0xff]  ;;  %s5863_s29 = sld [smem:[#allocation27_spill]] }
 0x1ec   :  { %v657_v55 = vrot.slane %v647_v54, 1  ;;  %v671_v56 = vrot.slane %v647_v54, 2  ;;  %4387 = vmatpush3.bf16.msra.mxu1 %v4386_v5  ;;  %v4395_v38 = vpack.c.bf16 %v1034_v36, %v1033_v34  ;;  %v1022_v54 = vld [vmem:[#allocation7 + $0xf8] sm:$0xff] }
 0x1ed   :  { %4358 = vmatpush3.bf16.msra.mxu0 %v4357_v6  ;;  %4388 = vmatprep.subr.bf16.mxu1 %v5060_v0 }
 0x1ee   :  { %v658_v57 = vsel %vm310_vm6, %v655_v46, %v657_v55  ;;  %v672_v58 = vsel %vm325_vm5, %v669_v47, %v671_v56  ;;  %4360 = vmatprep.subr.bf16.mxu0 %v4359_v10  ;;  %v1036_v46 = vld [vmem:[#allocation7 + $0x168] sm:$0xff]  ;;  %v1003_v47 = vld [vmem:[#allocation7 + $0x60] sm:$0xff] }
 0x1ef   :  { %805 = vmatprep.mubr.f32.mxu0 %v658_v57  ;;  %3833 = vmatmul.mubr.f32.gmra.mrb[16].mxu1 %v672_v58  ;;  %v4398_v51 = vpack.c.bf16 %v1036_v46, %v1035_v44  ;;  %v4373_v52 = vpack.c.bf16 %v1004_v49, %v1003_v47  ;;  %v1038_v57 = vld [vmem:[#allocation7 + $0x178] sm:$0xff]  ;;  %v1005_v58 = vld [vmem:[#allocation7 + $0x70] sm:$0xff] }
 0x1f0   :  { %806 = vmatmul.mubr.f32.gmra.mrb[16].mxu0 %v638_v39  ;;  %3835 = vmatprep.mubr.msk.f32.mxu1 %vm5061_vm2, %v5062_v1  ;;  %v4369_v39 = vpack.c.bf16 %v1002_v37, %v1001_v24  ;;  %v4377_v61 = vpack.c.bf16 %v1006_v59, %v1005_v58  ;;  %v1310_v58 = vld [vmem:[#allocation8 + $0x8] sm:$0xff] }
 0x1f1   :  { %810 = vmatprep.mubr.f32.mxu0 %v657_v55  ;;  %4390 = vmatpush3.bf16.msra.mxu1 %v4389_v16  ;;  %v1037_v55 = vld [vmem:[#allocation7 + $0x170] sm:$0xff] }
 0x1f2   :  { %4362 = vmatpush3.bf16.msra.mxu0 %v4361_v17  ;;  %4391 = vmatprep.subr.bf16.mxu1 %v5060_v0  ;;  %v4401_v60 = vpack.c.bf16 %v1038_v57, %v1037_v55  ;;  %v1309_v57 = vld [vmem:[#allocation8] sm:$0xff] }
 0x1f3   :  { %3836 = vmatmul.mubr.f32.gmra.mrb[18].mxu1 %v671_v56  ;;  %4364 = vmatprep.subr.bf16.mxu0 %v4363_v14 }
 0x1f4   :  { %3161 = vmatmul.mubr.msk.f32.gmra.mrb[18].mxu0 %vm306_vm4, %v640_v53  ;;  %3870 = vmatprep.mubr.msk.f32.mxu1 %vm5061_vm2, %v5062_v1  ;;  %v1021_v53 = vld [vmem:[#allocation7 + $0xf0] sm:$0xff] }
 0x1f5   :  { %4393 = vmatpush3.bf16.msra.mxu1 %v4392_v28  ;;  %v4375_v56 = vpack.c.bf16 %v1022_v54, %v1021_v53 }
 0x1f6   :  { %4366 = vmatpush3.bf16.msra.mxu0 %v4365_v30  ;;  %4394 = vmatprep.subr.bf16.mxu1 %v5060_v0 }
 0x1f7   :  { %4368 = vmatprep.subr.bf16.mxu0 %v4367_v35 }
 0x1f9   :  { %4396 = vmatpush3.bf16.msra.mxu1 %v4395_v38 }
 0x1fa   :  { %4370 = vmatpush3.bf16.msra.mxu0 %v4369_v39  ;;  %4397 = vmatprep.subr.bf16.mxu1 %v5060_v0 }
 0x1fb   :  { %4372 = vmatprep.subr.bf16.mxu0 %v4371_v26 }
 0x1fd   :  { %4399 = vmatpush3.bf16.msra.mxu1 %v4398_v51 }
 0x1fe   :  { %4374 = vmatpush3.bf16.msra.mxu0 %v4373_v52  ;;  %4400 = vmatprep.subr.bf16.mxu1 %v5060_v0  ;;  %v1341_v52 = vld [vmem:[#allocation8 + $0x100] sm:$0xff] }
 0x1ff   :  { %4376 = vmatprep.subr.bf16.mxu0 %v4375_v56  ;;  %v1342_v56 = vld [vmem:[#allocation8 + $0x108] sm:$0xff] }
 0x201   :  { %4402 = vmatpush3.bf16.msra.mxu1 %v4401_v60 }
 0x202   :  { %4378 = vmatpush3.bf16.msra.mxu0 %v4377_v61  ;;  %4435 = vmatprep.subr.bf16.mxu1 %v5060_v0 }
 0x203   :  { %4404 = vmatprep.subr.bf16.mxu0 %v4403_v3 }
 0x2b3   :  { %v882_v4 = vpop.f32.mrb[10].mxu1 }
 0x2b4   :  { %v3310_v5 = vpop.f32.mrb[10].mxu0  ;;  %v3825_v6 = vpop.f32.mrb[11].mxu1 }
 0x2b5   :  { %v3311_v7 = vpop.f32.mrb[11].mxu0 }
 0x2b6   :  { %v3312_v8 = vadd.f32 %v3311_v7, %v3310_v5 }
 0x2b8   :  { %v883_v10 = vadd.f32 %v3312_v8, %v882_v4  ;;  %v4436_v8 = vpack.c.bf16 %v1342_v56, %v1341_v52  ;;  %v1344_v52 = vld [vmem:[#allocation8 + $0x118] sm:$0xff] }
 0x2b9   :  { %v887_v13 = vpop.f32.mrb[12].mxu1 }
 0x2ba   :  { %v913_v15 = vmul.f32 %v3162_v9, %v883_v10  ;;  %v3313_v16 = vpop.f32.mrb[12].mxu0  ;;  %v3828_v17 = vpop.f32.mrb[13].mxu1  ;;  %v4405_v10 = vpack.c.bf16 %v1310_v58, %v1309_v57  ;;  %v1329_v57 = vld [vmem:[#allocation8 + $0xa0] sm:$0xff]  ;;  %v1330_v58 = vld [vmem:[#allocation8 + $0xa8] sm:$0xff] }
 0x2bb   :  { %v3314_v20 = vpop.f32.mrb[13].mxu0 }
 0x2bc   :  { %v925_v21 = vadd.f32 %v5501_v11, %v913_v15  ;;  %v3315_v14 = vadd.f32 %v3314_v20, %v3313_v16 }
 0x2bd   :  { %v892_v22 = vpop.f32.mrb[14].mxu1 }
 0x2be   :  { %v930_v23 = vmax.f32 %v925_v21, 0.0  ;;  %v888_v27 = vadd.f32 %v3315_v14, %v887_v13  ;;  %v3316_v28 = vpop.f32.mrb[14].mxu0  ;;  %v3831_v29 = vpop.f32.mrb[15].mxu1 }
 0x2bf   :  { %v3317_v30 = vpop.f32.mrb[15].mxu0 }
 0x2c0   :  { %v935_v31 = vmul.f32 %v930_v23, %v5427_v33  ;;  %v914_v32 = vmul.f32 %v3162_v9, %v888_v27  ;;  %v3318_v34 = vadd.f32 %v3317_v30, %v3316_v28 }
 0x2c2   :  { %v945_v35 = vrot.slane %v935_v31, 7  ;;  %v926_v36 = vadd.f32 %v5501_v11, %v914_v32  ;;  %v893_v24 = vadd.f32 %v3318_v34, %v892_v22  ;;  %v897_v37 = vpop.f32.mrb[16].mxu1 }
 0x2c3   :  { %v3319_v38 = vpop.f32.mrb[16].mxu0  ;;  %v3834_v39 = vpop.f32.mrb[17].mxu1 }
 0x2c4   :  { %v931_v40 = vmax.f32 %v926_v36, 0.0  ;;  %v915_v41 = vmul.f32 %v3162_v9, %v893_v24  ;;  %v3320_v44 = vpop.f32.mrb[17].mxu0  ;;  %v959_v46 = vsel %vm268_vm0, 0.0, %v945_v35 }
 0x2c5   :  { %v3321_v26 = vadd.f32 %v3320_v44, %v3319_v38  ;;  %v963_v63 = vrot.slane %v959_v46, 1  ;;  %v977_v2 = vrot.slane %v959_v46, 2  ;;  %v1327_v46 = vld [vmem:[#allocation8 + $0x90] sm:$0xff] }
 0x2c6   :  { %v946_v47 = vrot.slane %v931_v40, 7  ;;  %v927_v49 = vadd.f32 %v5501_v11, %v915_v41  ;;  %v902_v51 = vpop.f32.mrb[18].mxu1 }
 0x2c7   :  { %v898_v53 = vadd.f32 %v3321_v26, %v897_v37  ;;  %v3322_v54 = vpop.f32.mrb[18].mxu0  ;;  %v3837_v55 = vpop.f32.mrb[19].mxu1 }
 0x2c8   :  { %v932_v59 = vmax.f32 %v927_v49, 0.0  ;;  %v3323_v60 = vpop.f32.mrb[19].mxu0  ;;  %v947_v61 = vsel %vm268_vm0, %v945_v35, %v946_v47  ;;  %v1343_v49 = vld [vmem:[#allocation8 + $0x110] sm:$0xff] }
 0x2c9   :  { %v916_v3 = vmul.f32 %v3162_v9, %v898_v53  ;;  %v3324_v4 = vadd.f32 %v3323_v60, %v3322_v54  ;;  %v964_v5 = vrot.slane %v947_v61, 1  ;;  %v978_v6 = vrot.slane %v947_v61, 2  ;;  %v1311_v53 = vld [vmem:[#allocation8 + $0x10] sm:$0xff]  ;;  %v1312_v54 = vld [vmem:[#allocation8 + $0x18] sm:$0xff] }
 0x2ca   :  { %v937_v7 = vmul.f32 %v932_v59, %v5446_v12  ;;  %v4439_v55 = vpack.c.bf16 %v1344_v52, %v1343_v49  ;;  %v4409_v56 = vpack.c.bf16 %v1312_v54, %v1311_v53  ;;  %v1345_v59 = vld [vmem:[#allocation8 + $0x120] sm:$0xff]  ;;  %v4411_v60 = vpack.c.bf16 %v1330_v58, %v1329_v57  ;;  %v1340_v52 = vld [vmem:[#allocation8 + $0xf8] sm:$0xff]  ;;  %v1355_v53 = vld [vmem:[#allocation8 + $0x170] sm:$0xff] }
 0x2cb   :  { %v928_v13 = vadd.f32 %v5501_v11, %v916_v3  ;;  %v903_v15 = vadd.f32 %v3324_v4, %v902_v51  ;;  %v965_v16 = vsel %vm310_vm6, %v963_v63, %v964_v5  ;;  %v979_v17 = vsel %vm325_vm5, %v977_v2, %v978_v6  ;;  %v1313_v63 = vld [vmem:[#allocation8 + $0x20] sm:$0xff]  ;;  %v1314_v2 = vld [vmem:[#allocation8 + $0x28] sm:$0xff]  ;;  %v1324_v57 = vld [vmem:[#allocation8 + $0x78] sm:$0xff] }
 0x2cc   :  { %v948_v20 = vrot.slane %v937_v7, 7  ;;  %1103 = vmatprep.mubr.f32.mxu0 %v965_v16  ;;  %3871 = vmatmul.mubr.f32.vlgmr.msra.gmra.mrb[20].mxu1 %v979_v17  ;;  %v4413_v4 = vpack.c.bf16 %v1314_v2, %v1313_v63  ;;  %v1316_v16 = vld [vmem:[#allocation8 + $0x38] sm:$0xff] }
 0x2cd   :  { %v933_v21 = vmax.f32 %v928_v13, 0.0  ;;  %v917_v14 = vmul.f32 %v3162_v9, %v903_v15  ;;  %3165 = vmatmul.mubr.msk.f32.vlgmr.msra.gmra.mrb[20].mxu0 %vm5382_vm7, %v945_v35  ;;  %3873 = vmatprep.mubr.msk.f32.mxu1 %vm5061_vm2, %v5062_v1  ;;  %v1315_v13 = vld [vmem:[#allocation8 + $0x30] sm:$0xff] }
 0x2ce   :  { %v949_v22 = vsel %vm268_vm0, %v946_v47, %v948_v20  ;;  %4437 = vmatpush3.bf16.msra.mxu1 %v4436_v8  ;;  %4406 = vmatpush3.bf16.msra.mxu0 %v4405_v10  ;;  %v1328_v47 = vld [vmem:[#allocation8 + $0x98] sm:$0xff]  ;;  %v1347_v8 = vld [vmem:[#allocation8 + $0x130] sm:$0xff]  ;;  %v4417_v17 = vpack.c.bf16 %v1316_v16, %v1315_v13 }
 0x2cf   :  { %v950_v23 = vrot.slane %v933_v21, 7  ;;  %v929_v27 = vadd.f32 %v5501_v11, %v917_v14  ;;  %v966_v28 = vrot.slane %v949_v22, 1  ;;  %v980_v29 = vrot.slane %v949_v22, 2  ;;  %4438 = vmatprep.subr.bf16.mxu1 %v5060_v0  ;;  %v1348_v10 = vld [vmem:[#allocation8 + $0x138] sm:$0xff]  ;;  %v1334_v21 = vld [vmem:[#allocation8 + $0xc8] sm:$0xff]  ;;  %v1349_v14 = vld [vmem:[#allocation8 + $0x140] sm:$0xff] }
 0x2d0   :  { %v4407_v51 = vpack.c.bf16 %v1328_v47, %v1327_v46  ;;  %v4445_v15 = vpack.c.bf16 %v1348_v10, %v1347_v8  ;;  %v1322_v46 = vld [vmem:[#allocation8 + $0x68] sm:$0xff] }
 0x2d1   :  { %v934_v30 = vmax.f32 %v929_v27, 0.0  ;;  %v967_v9 = vsel %vm310_vm6, %v964_v5, %v966_v28  ;;  %v981_v31 = vsel %vm325_vm5, %v978_v6, %v980_v29  ;;  %v951_v32 = vsel %vm268_vm0, %v948_v20, %v950_v23  ;;  %v1331_v5 = vld [vmem:[#allocation8 + $0xb0] sm:$0xff]  ;;  %v1332_v6 = vld [vmem:[#allocation8 + $0xb8] sm:$0xff]  ;;  %v1333_v20 = vld [vmem:[#allocation8 + $0xc0] sm:$0xff] }
 0x2d2   :  { %1108 = vmatprep.mubr.f32.mxu0 %v967_v9  ;;  %3874 = vmatmul.mubr.f32.gmra.mrb[22].mxu1 %v981_v31  ;;  %v968_v34 = vrot.slane %v951_v32, 1  ;;  %v982_v35 = vrot.slane %v951_v32, 2  ;;  %v4415_v7 = vpack.c.bf16 %v1332_v6, %v1331_v5  ;;  %v1317_v27 = vld [vmem:[#allocation8 + $0x40] sm:$0xff]  ;;  %v1335_v9 = vld [vmem:[#allocation8 + $0xd0] sm:$0xff]  ;;  %v1336_v31 = vld [vmem:[#allocation8 + $0xd8] sm:$0xff] }
 0x2d3   :  { %v939_v36 = vmul.f32 %v934_v30, %v5469_v42  ;;  %1109 = vmatmul.mubr.f32.gmra.mrb[22].mxu0 %v947_v61  ;;  %3876 = vmatprep.mubr.msk.f32.mxu1 %vm5061_vm2, %v5062_v1  ;;  %v1346_v61 = vld [vmem:[#allocation8 + $0x128] sm:$0xff]  ;;  %v3168_v6 = vld [vmem:[%s5860_s13] ss:$0 sm:$0xff] }
 0x2d4   :  { %v969_v11 = vsel %vm310_vm6, %v966_v28, %v968_v34  ;;  %v983_v24 = vsel %vm325_vm5, %v980_v29, %v982_v35  ;;  %4408 = vmatprep.subr.bf16.mxu0 %v4407_v51  ;;  %4440 = vmatpush3.bf16.msra.mxu1 %v4439_v55  ;;  %v4442_v3 = vpack.c.bf16 %v1346_v61, %v1345_v59  ;;  %v1318_v28 = vld [vmem:[#allocation8 + $0x48] sm:$0xff]  ;;  %v1339_v51 = vld [vmem:[#allocation8 + $0xf0] sm:$0xff]  ;;  %v1356_v55 = vld [vmem:[#allocation8 + $0x178] sm:$0xff] }
 0x2d5   :  { %v952_v37 = vrot.slane %v939_v36, 7  ;;  %1113 = vmatprep.mubr.f32.mxu0 %v969_v11  ;;  %4410 = vmatpush3.bf16.msra.mxu0 %v4409_v56  ;;  %v4421_v30 = vpack.c.bf16 %v1318_v28, %v1317_v27  ;;  %v1319_v36 = vld [vmem:[#allocation8 + $0x50] sm:$0xff]  ;;  %v1320_v11 = vld [vmem:[#allocation8 + $0x58] sm:$0xff]  ;;  %v4431_v54 = vpack.c.bf16 %v1340_v52, %v1339_v51  ;;  %v4457_v58 = vpack.c.bf16 %v1356_v55, %v1355_v53 }
 0x2d6   :  { %3877 = vmatmul.mubr.f32.gmra.mrb[24].mxu1 %v983_v24  ;;  %4441 = vmatprep.subr.bf16.mxu1 %v5060_v0  ;;  %v1323_v56 = vld [vmem:[#allocation8 + $0x70] sm:$0xff] }
 0x2d7   :  { %1114 = vmatmul.mubr.f32.gmra.mrb[24].mxu0 %v949_v22  ;;  %3879 = vmatprep.mubr.msk.f32.mxu1 %vm5061_vm2, %v5062_v1  ;;  %v953_v38 = vsel %vm268_vm0, %v950_v23, %v952_v37  ;;  %v4419_v22 = vpack.c.bf16 %v1334_v21, %v1333_v20  ;;  %v1350_v23 = vld [vmem:[#allocation8 + $0x148] sm:$0xff]  ;;  %v4425_v37 = vpack.c.bf16 %v1320_v11, %v1319_v36 }
 0x2d8   :  { %v960_v39 = vsel %vm306_vm4, %v953_v38, 0.0  ;;  %4412 = vmatprep.subr.bf16.mxu0 %v4411_v60  ;;  %4443 = vmatpush3.bf16.msra.mxu1 %v4442_v3  ;;  %v4448_v29 = vpack.c.bf16 %v1350_v23, %v1349_v14  ;;  %v4433_v59 = vpack.c.bf16 %v1324_v57, %v1323_v56 }
 0x2d9   :  { %v970_v40 = vrot.slane %v960_v39, 1  ;;  %v984_v41 = vrot.slane %v960_v39, 2  ;;  %4414 = vmatpush3.bf16.msra.mxu0 %v4413_v4  ;;  %4444 = vmatprep.subr.bf16.mxu1 %v5060_v0  ;;  %v1338_v39 = vld [vmem:[#allocation8 + $0xe8] sm:$0xff]  ;;  %v3167_v4 = vld [vmem:[%s5859_s5] ss:$0 sm:$0xff] }
 0x2da   :  { %4416 = vmatprep.subr.bf16.mxu0 %v4415_v7 }
 0x2db   :  { %v971_v44 = vsel %vm310_vm6, %v968_v34, %v970_v40  ;;  %v985_v26 = vsel %vm325_vm5, %v982_v35, %v984_v41  ;;  %v4423_v34 = vpack.c.bf16 %v1336_v31, %v1335_v9  ;;  %v1352_v35 = vld [vmem:[#allocation8 + $0x158] sm:$0xff] }
 0x2dc   :  { %1118 = vmatprep.mubr.f32.mxu0 %v971_v44  ;;  %3880 = vmatmul.mubr.f32.gmra.mrb[26].mxu1 %v985_v26  ;;  %v1354_v44 = vld [vmem:[#allocation8 + $0x168] sm:$0xff]  ;;  %v1321_v26 = vld [vmem:[#allocation8 + $0x60] sm:$0xff] }
 0x2dd   :  { %1119 = vmatmul.mubr.f32.gmra.mrb[26].mxu0 %v951_v32  ;;  %3882 = vmatprep.mubr.msk.f32.mxu1 %vm5061_vm2, %v5062_v1  ;;  %v1351_v32 = vld [vmem:[#allocation8 + $0x150] sm:$0xff]  ;;  %v4429_v49 = vpack.c.bf16 %v1322_v46, %v1321_v26 }
 0x2de   :  { %1123 = vmatprep.mubr.f32.mxu0 %v970_v40  ;;  %4446 = vmatpush3.bf16.msra.mxu1 %v4445_v15  ;;  %v4451_v24 = vpack.c.bf16 %v1352_v35, %v1351_v32  ;;  %v1353_v40 = vld [vmem:[#allocation8 + $0x160] sm:$0xff] }
 0x2df   :  { %4418 = vmatpush3.bf16.msra.mxu0 %v4417_v17  ;;  %4447 = vmatprep.subr.bf16.mxu1 %v5060_v0  ;;  %v4454_v47 = vpack.c.bf16 %v1354_v44, %v1353_v40 }
 0x2e0   :  { %3883 = vmatmul.mubr.f32.gmra.mrb[28].mxu1 %v984_v41  ;;  %4420 = vmatprep.subr.bf16.mxu0 %v4419_v22 }
 0x2e1   :  { %3166 = vmatmul.mubr.msk.f32.gmra.mrb[28].mxu0 %vm306_vm4, %v953_v38  ;;  %3917 = vmatprep.mubr.msk.f32.mxu1 %vm5061_vm2, %v5062_v1  ;;  %v1337_v38 = vld [vmem:[#allocation8 + $0xe0] sm:$0xff] }
 0x2e2   :  { %4449 = vmatpush3.bf16.msra.mxu1 %v4448_v29  ;;  %v4427_v41 = vpack.c.bf16 %v1338_v39, %v1337_v38 }
 0x2e3   :  { %4422 = vmatpush3.bf16.msra.mxu0 %v4421_v30  ;;  %4450 = vmatprep.subr.bf16.mxu1 %v5060_v0 }
 0x2e4   :  { %4424 = vmatprep.subr.bf16.mxu0 %v4423_v34 }
 0x2e6   :  { %4452 = vmatpush3.bf16.msra.mxu1 %v4451_v24 }
 0x2e7   :  { %4426 = vmatpush3.bf16.msra.mxu0 %v4425_v37  ;;  %4453 = vmatprep.subr.bf16.mxu1 %v5060_v0 }
 0x2e8   :  { %4428 = vmatprep.subr.bf16.mxu0 %v4427_v41 }
 0x2ea   :  { %4455 = vmatpush3.bf16.msra.mxu1 %v4454_v47 }
 0x2eb   :  { %4430 = vmatpush3.bf16.msra.mxu0 %v4429_v49  ;;  %4456 = vmatprep.subr.bf16.mxu1 %v5060_v0 }
 0x2ec   :  { %4432 = vmatprep.subr.bf16.mxu0 %v4431_v54 }
 0x2ee   :  { %4458 = vmatpush3.bf16.msra.mxu1 %v4457_v58 }
 0x2ef   :  { %4434 = vmatpush3.bf16.msra.mxu0 %v4433_v59 }
 0x2f0   :  { %4459 = vmatprep.subr.bf16.mxu0 %v5060_v0 }
 0x39f   :  { %v1195_v60 = vpop.f32.mrb[20].mxu1 }
 0x3a0   :  { %v3378_v61 = vpop.f32.mrb[20].mxu0  ;;  %v3872_v63 = vpop.f32.mrb[21].mxu1 }
 0x3a1   :  { %v3379_v2 = vpop.f32.mrb[21].mxu0 }
 0x3a2   :  { %v3380_v3 = vadd.f32 %v3379_v2, %v3378_v61 }
 0x3a4   :  { %v1196_v5 = vadd.f32 %v3380_v3, %v1195_v60 }
 0x3a5   :  { %v1200_v7 = vpop.f32.mrb[22].mxu1 }
 0x3a6   :  { %v1226_v8 = vmul.f32 %v3167_v4, %v1196_v5  ;;  %v3381_v10 = vpop.f32.mrb[22].mxu0  ;;  %v3875_v13 = vpop.f32.mrb[23].mxu1 }
 0x3a7   :  { %v3382_v15 = vpop.f32.mrb[23].mxu0 }
 0x3a8   :  { %v1238_v16 = vadd.f32 %v3168_v6, %v1226_v8  ;;  %v3383_v17 = vadd.f32 %v3382_v15, %v3381_v10 }
 0x3a9   :  { %v1205_v20 = vpop.f32.mrb[24].mxu1 }
 0x3aa   :  { %v1243_v21 = vadd.f32 %v1238_v16, %v5435_v45  ;;  %v1201_v14 = vadd.f32 %v3383_v17, %v1200_v7  ;;  %v3384_v22 = vpop.f32.mrb[24].mxu0  ;;  %v3878_v23 = vpop.f32.mrb[25].mxu1 }
 0x3ab   :  { %v3385_v27 = vpop.f32.mrb[25].mxu0 }
 0x3ac   :  { %v1248_v28 = vmax.f32 %v1243_v21, 0.0  ;;  %v1227_v29 = vmul.f32 %v3167_v4, %v1201_v14  ;;  %v3386_v30 = vadd.f32 %v3385_v27, %v3384_v22 }
 0x3ae   :  { %v5550_v9 = vmul.f32 %v1248_v28, %v5427_v33  ;;  %v1239_v31 = vadd.f32 %v3168_v6, %v1227_v29  ;;  %v1206_v32 = vadd.f32 %v3386_v30, %v1205_v20 }
 0x3af   :  { %v1210_v34 = vpop.f32.mrb[26].mxu1 }
 0x3b0   :  { %v5554_v35 = vadd.f32 %v1239_v31, %v593_v50  ;;  %v1228_v36 = vmul.f32 %v3167_v4, %v1206_v32  ;;  %v3387_v11 = vpop.f32.mrb[26].mxu0  ;;  %v3881_v45 = vpop.f32.mrb[27].mxu1  ;;  %v1263_v24 = vrot.slane %v5550_v9, 7 }
 0x3b1   :  { %v3388_v37 = vpop.f32.mrb[27].mxu0 }
 0x3b2   :  { %v1249_v38 = vmax.f32 %v5554_v35, 0.0  ;;  %v1240_v39 = vadd.f32 %v3168_v6, %v1228_v36  ;;  %v3389_v40 = vadd.f32 %v3388_v37, %v3387_v11  ;;  %v1277_v47 = vsel %vm268_vm0, 0.0, %v1263_v24  ;;  %v1708_v36 = vld [vmem:[#allocation10 + $0x88] sm:$0xff]  ;;  %v1691_v11 = vld [vmem:[#allocation10] sm:$0xff] }
 0x3b3   :  { %v1215_v41 = vpop.f32.mrb[28].mxu1  ;;  %v1281_v55 = vrot.slane %v1277_v47, 1  ;;  %v1295_v57 = vrot.slane %v1277_v47, 2  ;;  %v2204_v35 = vld [vmem:[#allocation13 + $0x108] sm:$0xff] }
 0x3b4   :  { %v1264_v44 = vrot.slane %v1249_v38, 7  ;;  %v1245_v26 = vadd.f32 %v1240_v39, %v5452_v19  ;;  %v1211_v46 = vadd.f32 %v3389_v40, %v1210_v34  ;;  %v3390_v43 = vpop.f32.mrb[28].mxu0  ;;  %v3884_v50 = vpop.f32.mrb[29].mxu1  ;;  %v1707_v34 = vld [vmem:[#allocation10 + $0x80] sm:$0xff]  ;;  %v1709_v39 = vld [vmem:[#allocation10 + $0x90] sm:$0xff]  ;;  %v1710_v40 = vld [vmem:[#allocation10 + $0x98] sm:$0xff] }
 0x3b5   :  { %v3391_v49 = vpop.f32.mrb[29].mxu0  ;;  %v4465_v45 = vpack.c.bf16 %v1708_v36, %v1707_v34  ;;  %v1712_v50 = vld [vmem:[#allocation10 + $0xa8] sm:$0xff]  ;;  %v1723_v36 = vld [vmem:[#allocation10 + $0x100] sm:$0xff] }
 0x3b6   :  { %v1250_v51 = vmax.f32 %v1245_v26, 0.0  ;;  %v1229_v52 = vmul.f32 %v3167_v4, %v1211_v46  ;;  %v3392_v53 = vadd.f32 %v3391_v49, %v3390_v43  ;;  %v1265_v54 = vsel %vm268_vm0, %v1263_v24, %v1264_v44  ;;  %v1694_v26 = vld [vmem:[#allocation10 + $0x18] sm:$0xff]  ;;  %v1711_v43 = vld [vmem:[#allocation10 + $0xa0] sm:$0xff] }
 0x3b7   :  { %v1282_v56 = vrot.slane %v1265_v54, 1  ;;  %v1296_v58 = vrot.slane %v1265_v54, 2  ;;  %4466 = vmatprep.subr.bf16.mxu1 %v4465_v45  ;;  %v4473_v47 = vpack.c.bf16 %v1712_v50, %v1711_v43  ;;  %v1695_v49 = vld [vmem:[#allocation10 + $0x20] sm:$0xff]  ;;  %v5624_v43 = vld [vmem:[%s5861_s17 + $0x10] sm:$0xf] }
 0x3b8   :  { %v5564_v59 = vmul.f32 %v1250_v51, %v5446_v12  ;;  %v1241_v60 = vadd.f32 %v3168_v6, %v1229_v52  ;;  %v1216_v19 = vadd.f32 %v3392_v53, %v1215_v41  ;;  %v1693_v41 = vld [vmem:[#allocation10 + $0x10] sm:$0xff]  ;;  %v1696_v51 = vld [vmem:[#allocation10 + $0x28] sm:$0xff]  ;;  %v1714_v53 = vld [vmem:[#allocation10 + $0xb8] sm:$0xff] }
 0x3b9   :  { %v1283_v61 = vsel %vm310_vm6, %v1281_v55, %v1282_v56  ;;  %v1297_v63 = vsel %vm325_vm5, %v1295_v57, %v1296_v58  ;;  %v4471_v46 = vpack.c.bf16 %v1694_v26, %v1693_v41  ;;  %v1713_v52 = vld [vmem:[#allocation10 + $0xb0] sm:$0xff]  ;;  %v5616_v41 = vld [vmem:[%s5861_s17 + $0x8] sm:$0xff]  ;;  %v1727_v26 = vld [vmem:[#allocation10 + $0x120] sm:$0xff] }
 0x3ba   :  { %v5570_v2 = vadd.f32 %v1241_v60, %v595_v25  ;;  %v1230_v3 = vmul.f32 %v3167_v4, %v1216_v19  ;;  %1421 = vmatprep.mubr.f32.mxu0 %v1283_v61  ;;  %3918 = vmatmul.mubr.f32.vlgmr.msra.gmra.mrb[30].mxu1 %v1297_v63  ;;  %v1266_v5 = vrot.slane %v5564_v59, 7  ;;  %v4477_v55 = vpack.c.bf16 %v1714_v53, %v1713_v52  ;;  %v1730_v53 = vld [vmem:[#allocation10 + $0x138] sm:$0xff] }
 0x3bb   :  { %3170 = vmatmul.mubr.msk.f32.vlgmr.msra.gmra.mrb[30].mxu0 %vm5382_vm7, %v1263_v24  ;;  %3920 = vmatprep.mubr.msk.f32.mxu1 %vm5061_vm2, %v5062_v1  ;;  %v1692_v24 = vld [vmem:[#allocation10 + $0x8] sm:$0xff] }
 0x3bc   :  { %v1251_v7 = vmax.f32 %v5570_v2, 0.0  ;;  %v1242_v8 = vadd.f32 %v3168_v6, %v1230_v3  ;;  %v1267_v10 = vsel %vm268_vm0, %v1264_v44, %v1266_v5  ;;  %v4467_v37 = vpack.c.bf16 %v1692_v24, %v1691_v11  ;;  %v1724_v11 = vld [vmem:[#allocation10 + $0x108] sm:$0xff]  ;;  %v5607_v24 = vld [vmem:[%s5861_s17] sm:$0xff] }
 0x3bd   :  { %v1284_v13 = vrot.slane %v1267_v10, 1  ;;  %v1298_v18 = vrot.slane %v1267_v10, 2  ;;  %v4469_v44 = vpack.c.bf16 %v1710_v40, %v1709_v39  ;;  %v1725_v39 = vld [vmem:[#allocation10 + $0x110] sm:$0xff]  ;;  %v1726_v40 = vld [vmem:[#allocation10 + $0x118] sm:$0xff]  ;;  %v2208_v2 = vld [vmem:[#allocation13 + $0x128] sm:$0xff] }
 0x3be   :  { %v1268_v25 = vrot.slane %v1251_v7, 7  ;;  %v1247_v4 = vadd.f32 %v1242_v8, %v5474_v48  ;;  %4468 = vmatpush3.bf16.msra.mxu1 %v4467_v37  ;;  %v4498_v37 = vpack.c.bf16 %v1724_v11, %v1723_v36  ;;  %v1737_v36 = vld [vmem:[#allocation10 + $0x170] sm:$0xff] }
 0x3bf   :  { %v1285_v15 = vsel %vm310_vm6, %v1282_v56, %v1284_v13  ;;  %v1299_v16 = vsel %vm325_vm5, %v1296_v58, %v1298_v18  ;;  %4470 = vmatprep.subr.bf16.mxu1 %v4469_v44  ;;  %v4501_v44 = vpack.c.bf16 %v1726_v40, %v1725_v39  ;;  %v3176_v39 = vld [vmem:[%s5862_s25] ss:$0 sm:$0xff] }
 0x3c0   :  { %v1252_v17 = vmax.f32 %v1247_v4, 0.0  ;;  %1426 = vmatprep.mubr.f32.mxu0 %v1285_v15  ;;  %3921 = vmatmul.mubr.f32.gmra.mrb[32].mxu1 %v1299_v16  ;;  %v1269_v20 = vsel %vm268_vm0, %v1266_v5, %v1268_v25 }
 0x3c1   :  { %1427 = vmatmul.mubr.f32.gmra.mrb[32].mxu0 %v1265_v54  ;;  %3923 = vmatprep.mubr.msk.f32.mxu1 %vm5061_vm2, %v5062_v1  ;;  %v1286_v6 = vrot.slane %v1269_v20, 1  ;;  %v1300_v21 = vrot.slane %v1269_v20, 2  ;;  %v4475_v54 = vpack.c.bf16 %v1696_v51, %v1695_v49  ;;  %v1698_v49 = vld [vmem:[#allocation10 + $0x38] sm:$0xff]  ;;  %v1729_v51 = vld [vmem:[#allocation10 + $0x130] sm:$0xff] }
 0x3c2   :  { %v5588_v14 = vmul.f32 %v1252_v17, %v5469_v42  ;;  %4472 = vmatpush3.bf16.msra.mxu1 %v4471_v46  ;;  %v1728_v46 = vld [vmem:[#allocation10 + $0x128] sm:$0xff] }
 0x3c3   :  { %v1287_v48 = vsel %vm310_vm6, %v1284_v13, %v1286_v6  ;;  %v1301_v22 = vsel %vm325_vm5, %v1298_v18, %v1300_v21  ;;  %4474 = vmatprep.subr.bf16.mxu1 %v4473_v47  ;;  %v4504_v50 = vpack.c.bf16 %v1728_v46, %v1727_v26  ;;  %v1697_v47 = vld [vmem:[#allocation10 + $0x30] sm:$0xff] }
 0x3c4   :  { %1431 = vmatprep.mubr.f32.mxu0 %v1287_v48  ;;  %3924 = vmatmul.mubr.f32.gmra.mrb[34].mxu1 %v1301_v22  ;;  %v1270_v23 = vrot.slane %v5588_v14, 7  ;;  %v4479_v52 = vpack.c.bf16 %v1698_v49, %v1697_v47 }
 0x3c5   :  { %1432 = vmatmul.mubr.f32.gmra.mrb[34].mxu0 %v1267_v10  ;;  %3926 = vmatprep.mubr.msk.f32.mxu1 %vm5061_vm2, %v5062_v1 }
 0x3c6   :  { %v1271_v27 = vsel %vm268_vm0, %v1268_v25, %v1270_v23  ;;  %4476 = vmatpush3.bf16.msra.mxu1 %v4475_v54  ;;  %v4507_v54 = vpack.c.bf16 %v1730_v53, %v1729_v51 }
 0x3c7   :  { %v1278_v28 = vsel %vm306_vm4, %v1271_v27, 0.0  ;;  %4478 = vmatprep.subr.bf16.mxu1 %v4477_v55  ;;  %v1715_v55 = vld [vmem:[#allocation10 + $0xc0] sm:$0xff] }
 0x3c8   :  { %v1288_v29 = vrot.slane %v1278_v28, 1  ;;  %v1302_v30 = vrot.slane %v1278_v28, 2 }
 0x3ca   :  { %v1289_v31 = vsel %vm310_vm6, %v1286_v6, %v1288_v29  ;;  %v1303_v32 = vsel %vm325_vm5, %v1300_v21, %v1302_v30  ;;  %4480 = vmatpush3.bf16.msra.mxu1 %v4479_v52 }
 0x3cb   :  { %1436 = vmatprep.mubr.f32.mxu0 %v1289_v31  ;;  %3927 = vmatmul.mubr.f32.gmra.mrb[36].mxu1 %v1303_v32 }
 0x3cc   :  { %1437 = vmatmul.mubr.f32.gmra.mrb[36].mxu0 %v1269_v20  ;;  %3929 = vmatprep.mubr.msk.f32.mxu1 %vm5061_vm2, %v5062_v1 }
 0x3cd   :  { %1441 = vmatprep.mubr.f32.mxu0 %v1288_v29 }
 0x3cf   :  { %3930 = vmatmul.mubr.f32.gmra.mrb[38].mxu1 %v1302_v30 }
 0x3d0   :  { %3171 = vmatmul.mubr.msk.f32.gmra.mrb[38].mxu0 %vm306_vm4, %v1271_v27 }
 0x3d1   :  { %3942 = vmatprep.mubr.msk.f32.mxu0 %vm5061_vm2, %v5062_v1 }
 0x48d   :  { %v1513_v56 = vpop.f32.mrb[30].mxu1 }
 0x48e   :  { %v3446_v57 = vpop.f32.mrb[30].mxu0  ;;  %v3919_v58 = vpop.f32.mrb[31].mxu1 }
 0x48f   :  { %v3447_v60 = vpop.f32.mrb[31].mxu0  ;;  %v1699_v58 = vld [vmem:[#allocation10 + $0x40] sm:$0xff] }
 0x490   :  { %v3448_v19 = vadd.f32 %v3447_v60, %v3446_v57  ;;  %v1700_v60 = vld [vmem:[#allocation10 + $0x48] sm:$0xff] }
 0x492   :  { %v1514_v61 = vadd.f32 %v3448_v19, %v1513_v56  ;;  %v1716_v56 = vld [vmem:[#allocation10 + $0xc8] sm:$0xff]  ;;  %v4483_v19 = vpack.c.bf16 %v1700_v60, %v1699_v58 }
 0x493   :  { %v1518_v63 = vpop.f32.mrb[32].mxu1  ;;  %v4481_v57 = vpack.c.bf16 %v1716_v56, %v1715_v55 }
 0x494   :  { %v3449_v3 = vpop.f32.mrb[32].mxu0  ;;  %v3922_v5 = vpop.f32.mrb[33].mxu1 }
 0x495   :  { %v3450_v8 = vpop.f32.mrb[33].mxu0  ;;  %4482 = vmatprep.subr.bf16.mxu1 %v4481_v57  ;;  %v1717_v5 = vld [vmem:[#allocation10 + $0xd0] sm:$0xff] }
 0x496   :  { %v3451_v10 = vadd.f32 %v3450_v8, %v3449_v3  ;;  %4484 = vmatpush3.bf16.msra.mxu1 %v4483_v19  ;;  %v1718_v8 = vld [vmem:[#allocation10 + $0xd8] sm:$0xff] }
 0x497   :  { %v1523_v13 = vpop.f32.mrb[34].mxu1 }
 0x498   :  { %v1519_v18 = vadd.f32 %v3451_v10, %v1518_v63  ;;  %v3452_v25 = vpop.f32.mrb[34].mxu0  ;;  %v3925_v4 = vpop.f32.mrb[35].mxu1  ;;  %v1732_v63 = vld [vmem:[#allocation10 + $0x148] sm:$0xff]  ;;  %v4485_v10 = vpack.c.bf16 %v1718_v8, %v1717_v5  ;;  %v1919_v8 = vld [vmem:[#allocation11] sm:$0xff] }
 0x499   :  { %v3453_v15 = vpop.f32.mrb[35].mxu0 }
 0x49a   :  { %v4460_v16 = vpack.c.bf16 %v1519_v18, %v1514_v61  ;;  %v3454_v17 = vadd.f32 %v3453_v15, %v3452_v25  ;;  %v1731_v61 = vld [vmem:[#allocation10 + $0x140] sm:$0xff]  ;;  %v1702_v18 = vld [vmem:[#allocation10 + $0x58] sm:$0xff]  ;;  %v1733_v25 = vld [vmem:[#allocation10 + $0x150] sm:$0xff]  ;;  %4486 = vmatprep.subr.bf16.mxu1 %v4485_v10 }
 0x49b   :  { %v4510_v3 = vpack.c.bf16 %v1732_v63, %v1731_v61  ;;  %v1734_v15 = vld [vmem:[#allocation10 + $0x158] sm:$0xff]  ;;  %v1920_v10 = vld [vmem:[#allocation11 + $0x8] sm:$0xff] }
 0x49c   :  { %v1524_v20 = vadd.f32 %v3454_v17, %v1523_v13  ;;  %4461 = vmatpush3.bf16.msra.mxu0 %v4460_v16  ;;  %v1701_v13 = vld [vmem:[#allocation10 + $0x50] sm:$0xff]  ;;  %v4513_v16 = vpack.c.bf16 %v1734_v15, %v1733_v25  ;;  %v1719_v17 = vld [vmem:[#allocation10 + $0xe0] sm:$0xff] }
 0x49d   :  { %4462 = vmatprep.subr.bf16.mxu0 %v5060_v0  ;;  %v4487_v4 = vpack.c.bf16 %v1702_v18, %v1701_v13 }
 0x49e   :  { %v1528_v6 = vpop.f32.mrb[36].mxu1 }
 0x49f   :  { %v3455_v21 = vpop.f32.mrb[36].mxu0  ;;  %v3928_v48 = vpop.f32.mrb[37].mxu1  ;;  %4488 = vmatpush3.bf16.msra.mxu1 %v4487_v4 }
 0x4a0   :  { %v3456_v22 = vpop.f32.mrb[37].mxu0  ;;  %v1704_v48 = vld [vmem:[#allocation10 + $0x68] sm:$0xff] }
 0x4a1   :  { %v3457_v23 = vadd.f32 %v3456_v22, %v3455_v21  ;;  %v1703_v21 = vld [vmem:[#allocation10 + $0x60] sm:$0xff] }
 0x4a2   :  { %v1533_v27 = vpop.f32.mrb[38].mxu1  ;;  %v1735_v22 = vld [vmem:[#allocation10 + $0x160] sm:$0xff] }
 0x4a3   :  { %v1529_v28 = vadd.f32 %v3457_v23, %v1528_v6  ;;  %v3458_v29 = vpop.f32.mrb[38].mxu0  ;;  %v3931_v30 = vpop.f32.mrb[39].mxu1  ;;  %v4491_v23 = vpack.c.bf16 %v1704_v48, %v1703_v21  ;;  %v1921_v48 = vld [vmem:[#allocation11 + $0x10] sm:$0xff] }
 0x4a4   :  { %v3459_v31 = vpop.f32.mrb[39].mxu0  ;;  %v1722_v30 = vld [vmem:[#allocation10 + $0xf8] sm:$0xff] }
 0x4a5   :  { %v4463_v32 = vpack.c.bf16 %v1529_v28, %v1524_v20  ;;  %v3460_v34 = vadd.f32 %v3459_v31, %v3458_v29  ;;  %v1720_v20 = vld [vmem:[#allocation10 + $0xe8] sm:$0xff]  ;;  %v1721_v29 = vld [vmem:[#allocation10 + $0xf0] sm:$0xff] }
 0x4a6   :  { %v4489_v6 = vpack.c.bf16 %v1720_v20, %v1719_v17  ;;  %v4493_v31 = vpack.c.bf16 %v1722_v30, %v1721_v29  ;;  %v4522_v20 = vpack.c.bf16 %v1920_v10, %v1919_v8 }
 0x4a7   :  { %v1534_v45 = vadd.f32 %v3460_v34, %v1533_v27  ;;  %4464 = vmatpush3.bf16.msra.mxu0 %v4463_v32  ;;  %v1736_v27 = vld [vmem:[#allocation10 + $0x168] sm:$0xff]  ;;  %v1705_v32 = vld [vmem:[#allocation10 + $0x70] sm:$0xff]  ;;  %v1706_v34 = vld [vmem:[#allocation10 + $0x78] sm:$0xff] }
 0x4a8   :  { %3940 = vmatprep.subr.mxu0 %v5062_v1  ;;  %4490 = vmatprep.subr.bf16.mxu1 %v4489_v6  ;;  %v4516_v28 = vpack.c.bf16 %v1736_v27, %v1735_v22  ;;  %v4495_v11 = vpack.c.bf16 %v1706_v34, %v1705_v32  ;;  %v1922_v22 = vld [vmem:[#allocation11 + $0x18] sm:$0xff]  ;;  %v1924_v32 = vld [vmem:[#allocation11 + $0x28] sm:$0xff] }
 0x4a9   :  { %4492 = vmatpush3.bf16.msra.mxu1 %v4491_v23  ;;  %v4525_v30 = vpack.c.bf16 %v1922_v22, %v1921_v48 }
 0x4aa   :  { %4494 = vmatprep.subr.bf16.mxu1 %v4493_v31  ;;  %v1923_v31 = vld [vmem:[#allocation11 + $0x20] sm:$0xff] }
 0x4ab   :  { %3941 = vmatpush3.msk.msra.mxu0 %vm1550_vm8, %v1534_v45  ;;  %v1738_v45 = vld [vmem:[#allocation10 + $0x178] sm:$0xff] }
 0x4ac   :  { %3943 = vmatmul.mubr.msk.f32.vlgmr.msra.gmra.mrb[40].mxu0 %vm1540_vm9, %v5607_v24  ;;  %4497 = vmatprep.subr.bf16.mxu0 %v5060_v0 }
 0x4ad   :  { %3945 = vmatprep.mubr.msk.f32.mxu0 %vm5061_vm2, %v5062_v1  ;;  %4499 = vmatpush3.bf16.msra.mxu0 %v4498_v37  ;;  %v4519_v37 = vpack.c.bf16 %v1738_v45, %v1737_v36  ;;  %v1925_v45 = vld [vmem:[#allocation11 + $0x30] sm:$0xff] }
 0x4ae   :  { %4500 = vmatprep.subr.bf16.mxu0 %v5060_v0  ;;  %4496 = vmatpush3.bf16.msra.mxu1 %v4495_v11  ;;  %v4528_v11 = vpack.c.bf16 %v1924_v32, %v1923_v31 }
 0x4af   :  { %4521 = vmatprep.subr.bf16.mxu1 %v5060_v0 }
 0x4b0   :  { %3946 = vmatmul.mubr.msk.f32.gmra.mrb[42].mxu0 %vm1540_vm9, %v5616_v41 }
 0x4b1   :  { %3948 = vmatprep.mubr.msk.f32.mxu0 %vm5061_vm2, %v5062_v1  ;;  %4502 = vmatpush3.bf16.msra.mxu0 %v4501_v44  ;;  %v3177_v44 = vld [vmem:[%s5863_s29] ss:$0 sm:$0xff] }
 0x4b2   :  { %4503 = vmatprep.subr.bf16.mxu0 %v5060_v0 }
 0x4b4   :  { %3949 = vmatmul.mubr.msk.f32.gmra.mrb[44].mxu0 %vm1540_vm9, %v5624_v43 }
 0x4b5   :  { %4505 = vmatpush3.bf16.msra.mxu0 %v4504_v50  ;;  %3983 = vmatprep.mubr.msk.f32.mxu0 %vm5061_vm2, %v5062_v1 }
 0x4b6   :  { %4506 = vmatprep.subr.bf16.mxu0 %v5060_v0 }
 0x4b9   :  { %4508 = vmatpush3.bf16.msra.mxu0 %v4507_v54 }
 0x4ba   :  { %4509 = vmatprep.subr.bf16.mxu0 %v5060_v0 }
 0x4bd   :  { %4511 = vmatpush3.bf16.msra.mxu0 %v4510_v3 }
 0x4be   :  { %4512 = vmatprep.subr.bf16.mxu0 %v5060_v0 }
 0x4c1   :  { %4514 = vmatpush3.bf16.msra.mxu0 %v4513_v16 }
 0x4c2   :  { %4515 = vmatprep.subr.bf16.mxu0 %v5060_v0 }
 0x4c5   :  { %4517 = vmatpush3.bf16.msra.mxu0 %v4516_v28 }
 0x4c6   :  { %4518 = vmatprep.subr.bf16.mxu0 %v5060_v0 }
 0x4c9   :  { %4520 = vmatpush3.bf16.msra.mxu0 %v4519_v37  ;;  %v1926_v37 = vld [vmem:[#allocation11 + $0x38] sm:$0xff] }
 0x4ca   :  { %4545 = vmatprep.subr.bf16.mxu0 %v5060_v0 }
 0x57f   :  { %v1620_v40 = vpop.f32.mrb[40].mxu0 }
 0x580   :  { %v1641_v26 = vmul.f32 %v3176_v39, %v1620_v40  ;;  %v3944_v46 = vpop.f32.mrb[41].mxu0  ;;  %v1927_v40 = vld [vmem:[#allocation11 + $0x40] sm:$0xff] }
 0x581   :  { %v1929_v46 = vld [vmem:[#allocation11 + $0x50] sm:$0xff] }
 0x582   :  { %v1651_v50 = vadd.f32 %v3177_v44, %v1641_v26 }
 0x583   :  { %v1625_v47 = vpop.f32.mrb[42].mxu0 }
 0x584   :  { %v1654_v49 = vmax.f32 %v1651_v50, 0.0  ;;  %v1642_v51 = vmul.f32 %v3176_v39, %v1625_v47  ;;  %v3947_v52 = vpop.f32.mrb[43].mxu0  ;;  %v1930_v50 = vld [vmem:[#allocation11 + $0x58] sm:$0xff] }
 0x585   :  { %v4537_v47 = vpack.c.bf16 %v1930_v50, %v1929_v46 }
 0x586   :  { %v1657_v53 = vmul.f32 %v1654_v49, %v5427_v33  ;;  %v1652_v54 = vadd.f32 %v3177_v44, %v1642_v51  ;;  %v1931_v49 = vld [vmem:[#allocation11 + $0x60] sm:$0xff]  ;;  %v1932_v51 = vld [vmem:[#allocation11 + $0x68] sm:$0xff] }
 0x587   :  { %v1630_v55 = vpop.f32.mrb[44].mxu0  ;;  %v4540_v52 = vpack.c.bf16 %v1932_v51, %v1931_v49  ;;  %v2174_v49 = vld [vmem:[#allocation13 + $0x18] sm:$0xff]  ;;  %v2191_v51 = vld [vmem:[#allocation13 + $0xa0] sm:$0xff] }
 0x588   :  { %v1663_v56 = vrot.slane %v1657_v53, 7  ;;  %v1655_v57 = vmax.f32 %v1652_v54, 0.0  ;;  %v1643_v58 = vmul.f32 %v3176_v39, %v1630_v55  ;;  %v3950_v60 = vpop.f32.mrb[45].mxu0  ;;  %v4531_v39 = vpack.c.bf16 %v1926_v37, %v1925_v45  ;;  %v1933_v53 = vld [vmem:[#allocation11 + $0x70] sm:$0xff]  ;;  %v1934_v54 = vld [vmem:[#allocation11 + $0x78] sm:$0xff]  ;;  %v2172_v45 = vld [vmem:[#allocation13 + $0x8] sm:$0xff] }
 0x589   :  { %v4543_v55 = vpack.c.bf16 %v1934_v54, %v1933_v53  ;;  %v2189_v37 = vld [vmem:[#allocation13 + $0x90] sm:$0xff] }
 0x58a   :  { %v1658_v19 = vmul.f32 %v1655_v57, %v5446_v12  ;;  %v1653_v61 = vadd.f32 %v3177_v44, %v1643_v58  ;;  %v1671_v5 = vsel %vm268_vm0, 0.0, %v1663_v56  ;;  %v1928_v44 = vld [vmem:[#allocation11 + $0x48] sm:$0xff]  ;;  %v2206_v57 = vld [vmem:[#allocation13 + $0x118] sm:$0xff]  ;;  %v2207_v58 = vld [vmem:[#allocation13 + $0x120] sm:$0xff] }
 0x58b   :  { %v1675_v25 = vrot.slane %v1671_v5, 1  ;;  %v1683_v15 = vrot.slane %v1671_v5, 2  ;;  %v4534_v26 = vpack.c.bf16 %v1928_v44, %v1927_v40 }
 0x58c   :  { %v1664_v63 = vrot.slane %v1658_v19, 7  ;;  %v1656_v3 = vmax.f32 %v1653_v61, 0.0 }
 0x58e   :  { %v1659_v13 = vmul.f32 %v1656_v3, %v5469_v42  ;;  %v1665_v18 = vsel %vm268_vm0, %v1663_v56, %v1664_v63 }
 0x58f   :  { %v1676_v4 = vrot.slane %v1665_v18, 1  ;;  %v1684_v16 = vrot.slane %v1665_v18, 2 }
 0x590   :  { %v1666_v17 = vrot.slane %v1659_v13, 7 }
 0x591   :  { %v1677_v6 = vsel %vm310_vm6, %v1675_v25, %v1676_v4  ;;  %v1685_v21 = vsel %vm325_vm5, %v1683_v15, %v1684_v16 }
 0x592   :  { %1803 = vmatprep.mubr.f32.mxu1 %v1677_v6  ;;  %3984 = vmatmul.mubr.f32.vlgmr.msra.gmra.mrb[46].mxu0 %v1685_v21  ;;  %v1667_v23 = vsel %vm268_vm0, %v1664_v63, %v1666_v17 }
 0x593   :  { %3179 = vmatmul.mubr.msk.f32.vlgmr.msra.gmra.mrb[40].mxu1 %vm5382_vm7, %v1663_v56  ;;  %3986 = vmatprep.mubr.msk.f32.mxu0 %vm5061_vm2, %v5062_v1  ;;  %v1672_v27 = vsel %vm306_vm4, %v1667_v23, 0.0  ;;  %v2205_v56 = vld [vmem:[#allocation13 + $0x110] sm:$0xff] }
 0x594   :  { %4523 = vmatpush3.bf16.msra.mxu1 %v4522_v20  ;;  %v1678_v28 = vrot.slane %v1672_v27, 1  ;;  %v1686_v29 = vrot.slane %v1672_v27, 2 }
 0x595   :  { %4524 = vmatprep.subr.bf16.mxu1 %v5060_v0 }
 0x596   :  { %v1679_v34 = vsel %vm310_vm6, %v1676_v4, %v1678_v28  ;;  %v1687_v36 = vsel %vm325_vm5, %v1684_v16, %v1686_v29 }
 0x597   :  { %1808 = vmatprep.mubr.f32.mxu1 %v1679_v34  ;;  %3987 = vmatmul.mubr.f32.gmra.mrb[48].mxu0 %v1687_v36  ;;  %v2187_v34 = vld [vmem:[#allocation13 + $0x80] sm:$0xff]  ;;  %v2188_v36 = vld [vmem:[#allocation13 + $0x88] sm:$0xff] }
 0x598   :  { %4526 = vmatpush3.bf16.msra.mxu1 %v4525_v30  ;;  %3989 = vmatprep.mubr.msk.f32.mxu0 %vm5061_vm2, %v5062_v1  ;;  %v4551_v44 = vpack.c.bf16 %v2188_v36, %v2187_v34  ;;  %v2201_v36 = vld [vmem:[#allocation13 + $0xf0] sm:$0xff] }
 0x599   :  { %1809 = vmatmul.mubr.f32.gmra.mrb[42].mxu1 %v1665_v18  ;;  %4527 = vmatprep.subr.bf16.mxu1 %v5060_v0 }
 0x59a   :  { %1813 = vmatprep.mubr.f32.mxu1 %v1678_v28 }
 0x59b   :  { %3990 = vmatmul.mubr.f32.gmra.mrb[50].mxu0 %v1686_v29 }
 0x59c   :  { %4529 = vmatpush3.bf16.msra.mxu1 %v4528_v11  ;;  %4049 = vmatprep.mubr.msk.f32.mxu0 %vm5061_vm2, %v5062_v1  ;;  %v2171_v11 = vld [vmem:[#allocation13] sm:$0xff] }
 0x59d   :  { %3180 = vmatmul.mubr.msk.f32.gmra.mrb[44].mxu1 %vm306_vm4, %v1667_v23  ;;  %4530 = vmatprep.subr.bf16.mxu1 %v5060_v0  ;;  %v4553_v46 = vpack.c.bf16 %v2172_v45, %v2171_v11  ;;  %v2202_v11 = vld [vmem:[#allocation13 + $0xf8] sm:$0xff]  ;;  %v2217_v45 = vld [vmem:[#allocation13 + $0x170] sm:$0xff] }
 0x59e   :  { %4024 = vmatprep.mubr.msk.f32.mxu1 %vm5061_vm2, %v5062_v1 }
 0x5a0   :  { %4532 = vmatpush3.bf16.msra.mxu1 %v4531_v39  ;;  %v2190_v39 = vld [vmem:[#allocation13 + $0x98] sm:$0xff] }
 0x5a1   :  { %4533 = vmatprep.subr.bf16.mxu1 %v5060_v0  ;;  %v4555_v50 = vpack.c.bf16 %v2190_v39, %v2189_v37  ;;  %v4579_v37 = vpack.c.bf16 %v2202_v11, %v2201_v36  ;;  %v2218_v39 = vld [vmem:[#allocation13 + $0x178] sm:$0xff]  ;;  %v2514_v36 = vld [vmem:[#allocation14] sm:$0xff] }
 0x5a4   :  { %4535 = vmatpush3.bf16.msra.mxu1 %v4534_v26 }
 0x5a5   :  { %4536 = vmatprep.subr.bf16.mxu1 %v5060_v0 }
 0x5a8   :  { %4538 = vmatpush3.bf16.msra.mxu1 %v4537_v47  ;;  %v2173_v47 = vld [vmem:[#allocation13 + $0x10] sm:$0xff] }
 0x5a9   :  { %4539 = vmatprep.subr.bf16.mxu1 %v5060_v0  ;;  %v4557_v53 = vpack.c.bf16 %v2174_v49, %v2173_v47  ;;  %v3187_v47 = vld [vmem:[%s5865_s12] ss:$0 sm:$0xff] }
 0x5ac   :  { %4541 = vmatpush3.bf16.msra.mxu1 %v4540_v52  ;;  %v2192_v52 = vld [vmem:[#allocation13 + $0xa8] sm:$0xff] }
 0x5ad   :  { %4542 = vmatprep.subr.bf16.mxu1 %v5060_v0  ;;  %v4559_v54 = vpack.c.bf16 %v2192_v52, %v2191_v51  ;;  %v3182_v51 = vld [vmem:[%s5866_s18] ss:$0 sm:$0xff] }
 0x5b0   :  { %4544 = vmatpush3.bf16.msra.mxu1 %v4543_v55  ;;  %v2175_v55 = vld [vmem:[#allocation13 + $0x20] sm:$0xff] }
 0x5b1   :  { %4583 = vmatprep.subr.bf16.mxu1 %v5060_v0 }
 0x5b3   :  { %4025 = vmatmul.mubr.f32.vlgmr.msra.gmra.mrb[46].mxu1 %v5550_v9  ;;  %v2203_v9 = vld [vmem:[#allocation13 + $0x100] sm:$0xff] }
 0x5b4   :  { %4027 = vmatprep.mubr.msk.f32.mxu1 %vm5061_vm2, %v5062_v1 }
 0x5b7   :  { %4028 = vmatmul.mubr.f32.gmra.mrb[48].mxu1 %v1249_v38  ;;  %v4584_v38 = vpack.c.bf16 %v2204_v35, %v2203_v9  ;;  %v2176_v9 = vld [vmem:[#allocation13 + $0x28] sm:$0xff] }
 0x5b8   :  { %4030 = vmatprep.mubr.msk.f32.mxu1 %vm5061_vm2, %v5062_v1  ;;  %v4561_v35 = vpack.c.bf16 %v2176_v9, %v2175_v55 }
 0x5b9   :  { %4585 = vmatpush3.bf16.msra.mxu1 %v4584_v38  ;;  %v2194_v38 = vld [vmem:[#allocation13 + $0xb8] sm:$0xff] }
 0x5ba   :  { %4586 = vmatprep.subr.bf16.mxu1 %v5060_v0 }
 0x5bb   :  { %4031 = vmatmul.mubr.f32.gmra.mrb[50].mxu1 %v5564_v59  ;;  %v4587_v59 = vpack.c.bf16 %v2206_v57, %v2205_v56  ;;  %v2209_v56 = vld [vmem:[#allocation13 + $0x130] sm:$0xff] }
 0x5bc   :  { %4033 = vmatprep.mubr.msk.f32.mxu1 %vm5061_vm2, %v5062_v1 }
 0x5bd   :  { %4588 = vmatpush3.bf16.msra.mxu1 %v4587_v59  ;;  %v2210_v59 = vld [vmem:[#allocation13 + $0x138] sm:$0xff] }
 0x5be   :  { %4589 = vmatprep.subr.bf16.mxu1 %v5060_v0 }
 0x5bf   :  { %4034 = vmatmul.mubr.f32.gmra.mrb[52].mxu1 %v1251_v7  ;;  %v4590_v7 = vpack.c.bf16 %v2208_v2, %v2207_v58  ;;  %v2177_v58 = vld [vmem:[#allocation13 + $0x30] sm:$0xff]  ;;  %v4593_v2 = vpack.c.bf16 %v2210_v59, %v2209_v56 }
 0x5c0   :  { %4036 = vmatprep.mubr.msk.f32.mxu1 %vm5061_vm2, %v5062_v1 }
 0x5c1   :  { %4591 = vmatpush3.bf16.msra.mxu1 %v4590_v7  ;;  %v2178_v7 = vld [vmem:[#allocation13 + $0x38] sm:$0xff] }
 0x5c2   :  { %4592 = vmatprep.subr.bf16.mxu1 %v5060_v0 }
 0x5c3   :  { %4037 = vmatmul.mubr.f32.gmra.mrb[54].mxu1 %v5588_v14 }
 0x5c4   :  { %4090 = vmatprep.mubr.msk.f32.mxu1 %vm5061_vm2, %v5062_v1 }
 0x5c5   :  { %4594 = vmatpush3.bf16.msra.mxu1 %v4593_v2 }
 0x5c6   :  { %4595 = vmatprep.subr.bf16.mxu1 %v5060_v0 }
 0x665   :  { %v1885_v14 = vpop.f32.mrb[46].mxu0 }
 0x666   :  { %v3522_v60 = vpop.f32.mrb[40].mxu1  ;;  %v3985_v19 = vpop.f32.mrb[47].mxu0 }
 0x667   :  { %v3523_v61 = vpop.f32.mrb[41].mxu1  ;;  %v2211_v19 = vld [vmem:[#allocation13 + $0x140] sm:$0xff] }
 0x668   :  { %v3524_v63 = vadd.f32 %v3523_v61, %v3522_v60  ;;  %v2196_v60 = vld [vmem:[#allocation13 + $0xc8] sm:$0xff] }
 0x66a   :  { %v5690_v3 = vadd.f32 %v3524_v63, %v1885_v14  ;;  %v1890_v5 = vpop.f32.mrb[48].mxu0  ;;  %v2195_v14 = vld [vmem:[#allocation13 + $0xc0] sm:$0xff] }
 0x66b   :  { %v3988_v8 = vpop.f32.mrb[49].mxu0  ;;  %v4567_v61 = vpack.c.bf16 %v2196_v60, %v2195_v14  ;;  %v2179_v63 = vld [vmem:[#allocation13 + $0x40] sm:$0xff] }
 0x66c   :  { %v3525_v10 = vpop.f32.mrb[42].mxu1 }
 0x66d   :  { %v3526_v13 = vpop.f32.mrb[43].mxu1 }
 0x66e   :  { %v3527_v18 = vadd.f32 %v3526_v13, %v3525_v10  ;;  %v1895_v25 = vpop.f32.mrb[50].mxu0  ;;  %v2197_v13 = vld [vmem:[#allocation13 + $0xd0] sm:$0xff] }
 0x66f   :  { %v3991_v4 = vpop.f32.mrb[51].mxu0 }
 0x670   :  { %v5692_v15 = vadd.f32 %v3527_v18, %v1890_v5  ;;  %v3528_v16 = vpop.f32.mrb[44].mxu1  ;;  %v2180_v5 = vld [vmem:[#allocation13 + $0x48] sm:$0xff]  ;;  %v2198_v18 = vld [vmem:[#allocation13 + $0xd8] sm:$0xff] }
 0x671   :  { %v3529_v17 = vpop.f32.mrb[45].mxu1  ;;  %v4569_v10 = vpack.c.bf16 %v2180_v5, %v2179_v63  ;;  %v4571_v4 = vpack.c.bf16 %v2198_v18, %v2197_v13 }
 0x672   :  { %v3530_v20 = vadd.f32 %v3529_v17, %v3528_v16  ;;  %v2214_v16 = vld [vmem:[#allocation13 + $0x158] sm:$0xff]  ;;  %v2181_v17 = vld [vmem:[#allocation13 + $0x50] sm:$0xff] }
 0x674   :  { %v5694_v6 = vadd.f32 %v3530_v20, %v1895_v25  ;;  %v2213_v25 = vld [vmem:[#allocation13 + $0x150] sm:$0xff]  ;;  %v2182_v20 = vld [vmem:[#allocation13 + $0x58] sm:$0xff] }
 0x686   :  { %v2001_v21 = vpop.f32.mrb[46].mxu1 }
 0x687   :  { %v4026_v48 = vpop.f32.mrb[47].mxu1 }
 0x688   :  { %v4573_v48 = vpack.c.bf16 %v2182_v20, %v2181_v17 }
 0x68a   :  { %v2006_v22 = vpop.f32.mrb[48].mxu1 }
 0x68b   :  { %v4546_v23 = vpack.c.bf16 %v2006_v22, %v2001_v21  ;;  %v4029_v27 = vpop.f32.mrb[49].mxu1  ;;  %v4599_v21 = vpack.c.bf16 %v2214_v16, %v2213_v25  ;;  %v2199_v22 = vld [vmem:[#allocation13 + $0xe0] sm:$0xff] }
 0x68c   :  { %v2215_v27 = vld [vmem:[#allocation13 + $0x160] sm:$0xff] }
 0x68d   :  { %4547 = vmatpush3.bf16.msra.mxu0 %v4546_v23  ;;  %v2200_v23 = vld [vmem:[#allocation13 + $0xe8] sm:$0xff] }
 0x68e   :  { %v2011_v28 = vpop.f32.mrb[50].mxu1  ;;  %4548 = vmatprep.subr.bf16.mxu0 %v5060_v0 }
 0x68f   :  { %v4032_v29 = vpop.f32.mrb[51].mxu1 }
 0x690   :  { %v2216_v29 = vld [vmem:[#allocation13 + $0x168] sm:$0xff] }
 0x692   :  { %v2016_v30 = vpop.f32.mrb[52].mxu1 }
 0x693   :  { %v4549_v31 = vpack.c.bf16 %v2016_v30, %v2011_v28  ;;  %v4035_v32 = vpop.f32.mrb[53].mxu1  ;;  %v4575_v28 = vpack.c.bf16 %v2200_v23, %v2199_v22  ;;  %v2183_v30 = vld [vmem:[#allocation13 + $0x60] sm:$0xff] }
 0x694   :  { %v4602_v32 = vpack.c.bf16 %v2216_v29, %v2215_v27 }
 0x695   :  { %4550 = vmatpush3.bf16.msra.mxu0 %v4549_v31  ;;  %v2184_v31 = vld [vmem:[#allocation13 + $0x68] sm:$0xff] }
 0x696   :  { %v2021_v40 = vpop.f32.mrb[54].mxu1  ;;  %4047 = vmatprep.subr.mxu0 %v5062_v1  ;;  %v4577_v34 = vpack.c.bf16 %v2184_v31, %v2183_v30  ;;  %v5748_v31 = vld [vmem:[%s5868_s16] sm:$0xff] }
 0x697   :  { %v4038_v26 = vpop.f32.mrb[55].mxu1 }
 0x698   :  { %v4605_v26 = vpack.c.bf16 %v2218_v39, %v2217_v45  ;;  %v2515_v45 = vld [vmem:[#allocation14 + $0x8] sm:$0xff]  ;;  %v2532_v39 = vld [vmem:[#allocation14 + $0x90] sm:$0xff] }
 0x699   :  { %4048 = vmatpush3.msk.msra.mxu0 %vm1550_vm8, %v2021_v40  ;;  %v2185_v40 = vld [vmem:[#allocation13 + $0x70] sm:$0xff] }
 0x69a   :  { %4050 = vmatmul.mubr.msk.f32.vlgmr.msra.gmra.mrb[52].mxu0 %vm1540_vm9, %v5607_v24  ;;  %4552 = vmatprep.subr.bf16.mxu0 %v4551_v44  ;;  %v2193_v24 = vld [vmem:[#allocation13 + $0xb0] sm:$0xff]  ;;  %v2186_v44 = vld [vmem:[#allocation13 + $0x78] sm:$0xff] }
 0x69b   :  { %4052 = vmatprep.mubr.msk.f32.mxu0 %vm5061_vm2, %v5062_v1  ;;  %4554 = vmatpush3.bf16.msra.mxu0 %v4553_v46  ;;  %v4563_v57 = vpack.c.bf16 %v2194_v38, %v2193_v24  ;;  %v4581_v46 = vpack.c.bf16 %v2186_v44, %v2185_v40  ;;  %v2533_v40 = vld [vmem:[#allocation14 + $0x98] sm:$0xff]  ;;  %v2516_v44 = vld [vmem:[#allocation14 + $0x10] sm:$0xff] }
 0x69c   :  { %4556 = vmatprep.subr.bf16.mxu0 %v4555_v50  ;;  %v3181_v50 = vld [vmem:[%s5864_s30] ss:$0 sm:$0xff] }
 0x69d   :  { %v1906_v49 = vmul.f32 %v3181_v50, %v5690_v3  ;;  %v1907_v9 = vmul.f32 %v3181_v50, %v5692_v15 }
 0x69e   :  { %4053 = vmatmul.mubr.msk.f32.gmra.mrb[54].mxu0 %vm1540_vm9, %v5616_v41  ;;  %v4565_v41 = vpack.c.bf16 %v2178_v7, %v2177_v58  ;;  %v1908_v58 = vmul.f32 %v3181_v50, %v5694_v6 }
 0x69f   :  { %4055 = vmatprep.mubr.msk.f32.mxu0 %vm5061_vm2, %v5062_v1  ;;  %4558 = vmatpush3.bf16.msra.mxu0 %v4557_v53  ;;  %v3188_v53 = vld [vmem:[%s5867_s22] ss:$0 sm:$0xff]  ;;  %v1917_v7 = vadd.f32 %v3182_v51, %v1907_v9  ;;  %v2537_v9 = vld [vmem:[#allocation14 + $0xb8] sm:$0xff] }
 0x6a0   :  { %4560 = vmatprep.subr.bf16.mxu0 %v4559_v54  ;;  %v1918_v63 = vadd.f32 %v3182_v51, %v1908_v58 }
 0x6a2   :  { %4056 = vmatmul.mubr.msk.f32.gmra.mrb[56].mxu0 %vm1540_vm9, %v5624_v43  ;;  %v2212_v43 = vld [vmem:[#allocation13 + $0x148] sm:$0xff] }
 0x6a3   :  { %4562 = vmatpush3.bf16.msra.mxu0 %v4561_v35  ;;  %v4596_v8 = vpack.c.bf16 %v2212_v43, %v2211_v19  ;;  %v1916_v35 = vadd.f32 %v3182_v51, %v1906_v49  ;;  %v2535_v49 = vld [vmem:[#allocation14 + $0xa8] sm:$0xff]  ;;  %v2518_v51 = vld [vmem:[#allocation14 + $0x20] sm:$0xff] }
 0x6a4   :  { %4564 = vmatprep.subr.bf16.mxu0 %v4563_v57 }
 0x6a5   :  { %4597 = vmatpush3.bf16.msra.mxu1 %v4596_v8 }
 0x6a6   :  { %4598 = vmatprep.subr.bf16.mxu1 %v5060_v0 }
 0x6a7   :  { %4566 = vmatpush3.bf16.msra.mxu0 %v4565_v41 }
 0x6a8   :  { %4568 = vmatprep.subr.bf16.mxu0 %v4567_v61 }
 0x6a9   :  { %4600 = vmatpush3.bf16.msra.mxu1 %v4599_v21 }
 0x6aa   :  { %4601 = vmatprep.subr.bf16.mxu1 %v5060_v0 }
 0x6ab   :  { %4570 = vmatpush3.bf16.msra.mxu0 %v4569_v10 }
 0x6ac   :  { %4572 = vmatprep.subr.bf16.mxu0 %v4571_v4 }
 0x6ad   :  { %4603 = vmatpush3.bf16.msra.mxu1 %v4602_v32  ;;  %v2530_v32 = vld [vmem:[#allocation14 + $0x80] sm:$0xff] }
 0x6ae   :  { %4604 = vmatprep.subr.bf16.mxu1 %v5060_v0 }
 0x6af   :  { %4574 = vmatpush3.bf16.msra.mxu0 %v4573_v48 }
 0x6b0   :  { %4576 = vmatprep.subr.bf16.mxu0 %v4575_v28 }
 0x6b1   :  { %4606 = vmatpush3.bf16.msra.mxu1 %v4605_v26  ;;  %v4615_v26 = vpack.c.bf16 %v2533_v40, %v2532_v39  ;;  %v2555_v40 = vld [vmem:[#allocation14 + $0x148] sm:$0xff] }
 0x6b3   :  { %4578 = vmatpush3.bf16.msra.mxu0 %v4577_v34  ;;  %v2531_v34 = vld [vmem:[#allocation14 + $0x88] sm:$0xff] }
 0x6b4   :  { %4580 = vmatprep.subr.bf16.mxu0 %v4579_v37  ;;  %v4611_v11 = vpack.c.bf16 %v2531_v34, %v2530_v32  ;;  %v4613_v37 = vpack.c.bf16 %v2515_v45, %v2514_v36  ;;  %v2538_v32 = vld [vmem:[#allocation14 + $0xc0] sm:$0xff]  ;;  %v2539_v34 = vld [vmem:[#allocation14 + $0xc8] sm:$0xff] }
 0x6b5   :  { %v4627_v36 = vpack.c.bf16 %v2539_v34, %v2538_v32  ;;  %v2523_v45 = vld [vmem:[#allocation14 + $0x48] sm:$0xff] }
 0x6b6   :  { %4612 = vmatprep.subr.bf16.mxu1 %v4611_v11  ;;  %v2522_v11 = vld [vmem:[#allocation14 + $0x40] sm:$0xff] }
 0x6b7   :  { %4582 = vmatpush3.bf16.msra.mxu0 %v4581_v46  ;;  %v2517_v46 = vld [vmem:[#allocation14 + $0x18] sm:$0xff]  ;;  %v4629_v39 = vpack.c.bf16 %v2523_v45, %v2522_v11 }
 0x6b8   :  { %v4617_v50 = vpack.c.bf16 %v2517_v46, %v2516_v44  ;;  %v2541_v46 = vld [vmem:[#allocation14 + $0xd8] sm:$0xff] }
 0x76d   :  { %v2094_v52 = vpop.f32.mrb[52].mxu0 }
 0x76e   :  { %v2115_v54 = vmul.f32 %v3187_v47, %v2094_v52  ;;  %v4051_v55 = vpop.f32.mrb[53].mxu0 }
 0x76f   :  { %v2536_v55 = vld [vmem:[#allocation14 + $0xb0] sm:$0xff] }
 0x770   :  { %v2125_v24 = vadd.f32 %v3188_v53, %v2115_v54 }
 0x771   :  { %v2099_v38 = vpop.f32.mrb[54].mxu0 }
 0x772   :  { %v2128_v56 = vadd.f32 %v2125_v24, %v1916_v35  ;;  %v2116_v57 = vmul.f32 %v3187_v47, %v2099_v38  ;;  %v4054_v59 = vpop.f32.mrb[55].mxu0  ;;  %v2520_v35 = vld [vmem:[#allocation14 + $0x30] sm:$0xff]  ;;  %v4623_v24 = vpack.c.bf16 %v2537_v9, %v2536_v55  ;;  %v2521_v38 = vld [vmem:[#allocation14 + $0x38] sm:$0xff]  ;;  %v2542_v55 = vld [vmem:[#allocation14 + $0xe0] sm:$0xff] }
 0x773   :  { %v2543_v9 = vld [vmem:[#allocation14 + $0xe8] sm:$0xff] }
 0x774   :  { %v2131_v2 = vmax.f32 %v2128_v56, 0.0  ;;  %v2126_v41 = vadd.f32 %v3188_v53, %v2116_v57  ;;  %v4625_v56 = vpack.c.bf16 %v2521_v38, %v2520_v35  ;;  %v4635_v35 = vpack.c.bf16 %v2543_v9, %v2542_v55  ;;  %v2527_v38 = vld [vmem:[#allocation14 + $0x68] sm:$0xff]  ;;  %v2740_v9 = vld [vmem:[#allocation16 + $0x50] sm:$0xff] }
 0x775   :  { %v2104_v14 = vpop.f32.mrb[56].mxu0 }
 0x776   :  { %v5721_v3 = vmul.f32 %v2131_v2, %v5427_v33  ;;  %v2129_v60 = vadd.f32 %v2126_v41, %v1917_v7  ;;  %v2117_v19 = vmul.f32 %v3187_v47, %v2104_v14  ;;  %v4057_v61 = vpop.f32.mrb[57].mxu0  ;;  %v2534_v47 = vld [vmem:[#allocation14 + $0xa0] sm:$0xff] }
 0x777   :  { %v4619_v52 = vpack.c.bf16 %v2535_v49, %v2534_v47  ;;  %v2524_v47 = vld [vmem:[#allocation14 + $0x50] sm:$0xff]  ;;  %v2525_v49 = vld [vmem:[#allocation14 + $0x58] sm:$0xff] }
 0x778   :  { %v2143_v15 = vrot.slane %v5721_v3, 7  ;;  %v2132_v43 = vmax.f32 %v2129_v60, 0.0  ;;  %v2127_v5 = vadd.f32 %v3188_v53, %v2117_v19  ;;  %v2519_v53 = vld [vmem:[#allocation14 + $0x28] sm:$0xff] }
 0x779   :  { %v4621_v54 = vpack.c.bf16 %v2519_v53, %v2518_v51  ;;  %v2556_v51 = vld [vmem:[#allocation14 + $0x150] sm:$0xff]  ;;  %v2557_v53 = vld [vmem:[#allocation14 + $0x158] sm:$0xff] }
 0x77a   :  { %v5725_v8 = vmul.f32 %v2132_v43, %v5446_v12  ;;  %v2130_v10 = vadd.f32 %v2127_v5, %v1918_v63  ;;  %v2151_v18 = vsel %vm268_vm0, 0.0, %v2143_v15 }
 0x77b   :  { %v2155_v4 = vrot.slane %v2151_v18, 1  ;;  %v2163_v17 = vrot.slane %v2151_v18, 2 }
 0x77c   :  { %v2144_v6 = vrot.slane %v5725_v8, 7  ;;  %v2133_v13 = vmax.f32 %v2130_v10, 0.0 }
 0x77e   :  { %v5730_v33 = vmul.f32 %v2133_v13, %v5469_v42  ;;  %v2145_v25 = vsel %vm268_vm0, %v2143_v15, %v2144_v6 }
 0x77f   :  { %v2156_v16 = vrot.slane %v2145_v25, 1  ;;  %v2164_v20 = vrot.slane %v2145_v25, 2 }
 0x780   :  { %v2146_v21 = vrot.slane %v5730_v33, 7 }
 0x781   :  { %v2157_v12 = vsel %vm310_vm6, %v2155_v4, %v2156_v16  ;;  %v2165_v48 = vsel %vm325_vm5, %v2163_v17, %v2164_v20  ;;  %v2547_v4 = vld [vmem:[#allocation14 + $0x108] sm:$0xff]  ;;  %v2548_v17 = vld [vmem:[#allocation14 + $0x110] sm:$0xff] }
 0x782   :  { %2283 = vmatprep.mubr.f32.mxu0 %v2157_v12  ;;  %4091 = vmatmul.mubr.f32.vlgmr.msra.gmra.mrb[56].mxu1 %v2165_v48  ;;  %v2147_v22 = vsel %vm268_vm0, %v2144_v6, %v2146_v21  ;;  %v5754_v12 = vld [vmem:[%s5868_s16 + $0x8] sm:$0xf] }
 0x783   :  { %3190 = vmatmul.mubr.msk.f32.vlgmr.msra.gmra.mrb[58].mxu0 %vm5382_vm7, %v2143_v15  ;;  %4093 = vmatprep.mubr.msk.f32.mxu1 %vm5061_vm2, %v5062_v1  ;;  %v2152_v23 = vsel %vm306_vm4, %v2147_v22, 0.0 }
 0x784   :  { %v2158_v27 = vrot.slane %v2152_v23, 1  ;;  %v2166_v28 = vrot.slane %v2152_v23, 2  ;;  %4614 = vmatpush3.bf16.msra.mxu1 %v4613_v37  ;;  %v2551_v23 = vld [vmem:[#allocation14 + $0x128] sm:$0xff]  ;;  %v2554_v37 = vld [vmem:[#allocation14 + $0x140] sm:$0xff] }
 0x785   :  { %4616 = vmatprep.subr.bf16.mxu1 %v4615_v26  ;;  %v4659_v44 = vpack.c.bf16 %v2555_v40, %v2554_v37  ;;  %v2540_v26 = vld [vmem:[#allocation14 + $0xd0] sm:$0xff] }
 0x786   :  { %v2159_v29 = vsel %vm310_vm6, %v2156_v16, %v2158_v27  ;;  %v2167_v30 = vsel %vm325_vm5, %v2164_v20, %v2166_v28  ;;  %v2549_v20 = vld [vmem:[#allocation14 + $0x118] sm:$0xff] }
 0x787   :  { %2288 = vmatprep.mubr.f32.mxu0 %v2159_v29  ;;  %4094 = vmatmul.mubr.f32.gmra.mrb[58].mxu1 %v2167_v30  ;;  %v4647_v48 = vpack.c.bf16 %v2549_v20, %v2548_v17  ;;  %v2553_v29 = vld [vmem:[#allocation14 + $0x138] sm:$0xff]  ;;  %v5763_v20 = vpop.permute.xlu1 %2488 }
 0x788   :  { %2289 = vmatmul.mubr.f32.gmra.mrb[60].mxu0 %v2145_v25  ;;  %4096 = vmatprep.mubr.msk.f32.mxu1 %vm5061_vm2, %v5062_v1  ;;  %v2546_v25 = vld [vmem:[#allocation14 + $0x100] sm:$0xff] }
 0x789   :  { %2293 = vmatprep.mubr.f32.mxu0 %v2158_v27  ;;  %4618 = vmatpush3.bf16.msra.mxu1 %v4617_v50  ;;  %v4643_v21 = vpack.c.bf16 %v2547_v4, %v2546_v25  ;;  %v4631_v50 = vpack.c.bf16 %v2541_v46, %v2540_v26  ;;  %v2733_v26 = vld [vmem:[#allocation16 + $0x18] sm:$0xff] }
 0x78a   :  { %4620 = vmatprep.subr.bf16.mxu1 %v4619_v52  ;;  %v4633_v52 = vpack.c.bf16 %v2525_v49, %v2524_v47  ;;  %v2735_v47 = vld [vmem:[#allocation16 + $0x28] sm:$0xff] }
 0x78b   :  { %4097 = vmatmul.mubr.f32.gmra.mrb[60].mxu1 %v2166_v28  ;;  %v2552_v28 = vld [vmem:[#allocation14 + $0x130] sm:$0xff] }
 0x78c   :  { %3191 = vmatmul.mubr.msk.f32.gmra.mrb[62].mxu0 %vm306_vm4, %v2147_v22  ;;  %v2550_v22 = vld [vmem:[#allocation14 + $0x120] sm:$0xff]  ;;  %v4655_v30 = vpack.c.bf16 %v2553_v29, %v2552_v28 }
 0x78d   :  { %4105 = vmatprep.mubr.msk.f32.mxu0 %vm2381_vm10, %v5748_v31  ;;  %4622 = vmatpush3.bf16.msra.mxu1 %v4621_v54  ;;  %v4651_v27 = vpack.c.bf16 %v2551_v23, %v2550_v22  ;;  %v4663_v54 = vpack.c.bf16 %v2557_v53, %v2556_v51  ;;  %v2730_v29 = vld [vmem:[#allocation16] sm:$0xff]  ;;  %v2737_v51 = vld [vmem:[#allocation16 + $0x38] sm:$0xff] }
 0x78e   :  { %4624 = vmatprep.subr.bf16.mxu1 %v4623_v24  ;;  %v2526_v24 = vld [vmem:[#allocation14 + $0x60] sm:$0xff] }
 0x78f   :  { %v2738_v53 = vld [vmem:[#allocation16 + $0x40] sm:$0xff] }
 0x791   :  { %4626 = vmatpush3.bf16.msra.mxu1 %v4625_v56  ;;  %v2558_v56 = vld [vmem:[#allocation14 + $0x160] sm:$0xff] }
 0x792   :  { %4628 = vmatprep.subr.bf16.mxu1 %v4627_v36 }
 0x795   :  { %4630 = vmatpush3.bf16.msra.mxu1 %v4629_v39 }
 0x796   :  { %4632 = vmatprep.subr.bf16.mxu1 %v4631_v50  ;;  %v2734_v50 = vld [vmem:[#allocation16 + $0x20] sm:$0xff] }
 0x797   :  { %v4682_v49 = vpack.c.bf16 %v2735_v47, %v2734_v50  ;;  %v3008_v50 = vld [vmem:[%s5230_s14 + $0x10] sm:$0xff]  ;;  %v3010_v47 = vld [vmem:[%s5230_s14 + $0x20] sm:$0xff] }
 0x799   :  { %4634 = vmatpush3.bf16.msra.mxu1 %v4633_v52  ;;  %v4685_v52 = vpack.c.bf16 %v2737_v51, %v2736_v62  ;;  %v3012_v51 = vld [vmem:[%s5230_s14 + $0x30] sm:$0xff] }
 0x79a   :  { %4636 = vmatprep.subr.bf16.mxu1 %v4635_v35  ;;  %v2741_v35 = vld [vmem:[#allocation16 + $0x58] sm:$0xff] }
 0x855   :  { %v2365_v57 = vpop.f32.mrb[56].mxu1 }
 0x856   :  { %v3611_v59 = vpop.f32.mrb[58].mxu0  ;;  %v4092_v58 = vpop.f32.mrb[57].mxu1 }
 0x857   :  { %v3612_v2 = vpop.f32.mrb[59].mxu0 }
 0x858   :  { %v3613_v7 = vadd.f32 %v3612_v2, %v3611_v59  ;;  %v2559_v59 = vld [vmem:[#allocation14 + $0x168] sm:$0xff]  ;;  %v2544_v2 = vld [vmem:[#allocation14 + $0xf0] sm:$0xff] }
 0x859   :  { %v4667_v58 = vpack.c.bf16 %v2559_v59, %v2558_v56  ;;  %v2743_v56 = vld [vmem:[#allocation16 + $0x68] sm:$0xff]  ;;  %v2744_v59 = vld [vmem:[#allocation16 + $0x70] sm:$0xff] }
 0x85a   :  { %v2366_v41 = vadd.f32 %v3613_v7, %v2365_v57  ;;  %v2370_v14 = vpop.f32.mrb[58].mxu1  ;;  %v4637_v57 = vpack.c.bf16 %v2527_v38, %v2526_v24  ;;  %v2545_v7 = vld [vmem:[#allocation14 + $0xf8] sm:$0xff]  ;;  %v4691_v24 = vpack.c.bf16 %v2741_v35, %v2740_v9  ;;  %v2742_v38 = vld [vmem:[#allocation16 + $0x60] sm:$0xff]  ;;  %v3016_v9 = vld [vmem:[%s5230_s14 + $0x50] sm:$0xff] }
 0x85b   :  { %v3614_v60 = vpop.f32.mrb[60].mxu0  ;;  %v4095_v19 = vpop.f32.mrb[59].mxu1  ;;  %v3017_v35 = vld [vmem:[%s5230_s14 + $0x58] sm:$0xff] }
 0x85c   :  { %v3615_v61 = vpop.f32.mrb[61].mxu0  ;;  %4638 = vmatpush3.bf16.msra.mxu1 %v4637_v57  ;;  %v2560_v19 = vld [vmem:[#allocation14 + $0x170] sm:$0xff]  ;;  %v4694_v57 = vpack.c.bf16 %v2743_v56, %v2742_v38  ;;  %v3018_v38 = vld [vmem:[%s5230_s14 + $0x60] sm:$0xff]  ;;  %v3019_v56 = vld [vmem:[%s5230_s14 + $0x68] sm:$0xff] }
 0x85d   :  { %v3616_v15 = vadd.f32 %v3615_v61, %v3614_v60  ;;  %v2529_v60 = vld [vmem:[#allocation14 + $0x78] sm:$0xff] }
 0x85e   :  { %v2375_v43 = vpop.f32.mrb[60].mxu1  ;;  %v2561_v61 = vld [vmem:[#allocation14 + $0x178] sm:$0xff] }
 0x85f   :  { %v2371_v63 = vadd.f32 %v3616_v15, %v2370_v14  ;;  %v3617_v5 = vpop.f32.mrb[62].mxu0  ;;  %v4098_v10 = vpop.f32.mrb[61].mxu1  ;;  %v4639_v14 = vpack.c.bf16 %v2545_v7, %v2544_v2 }
 0x860   :  { %v3618_v6 = vpop.f32.mrb[63].mxu0  ;;  %v3196_v10 = vld [vmem:[%s5870_s23] ss:$0 sm:$0xff] }
 0x861   :  { %v3619_v13 = vadd.f32 %v3618_v6, %v3617_v5  ;;  %v4607_v18 = vpack.c.bf16 %v2371_v63, %v2366_v41  ;;  %v2528_v41 = vld [vmem:[#allocation14 + $0x70] sm:$0xff]  ;;  %4640 = vmatprep.subr.bf16.mxu1 %v4639_v14  ;;  %v3195_v63 = vld [vmem:[%s5869_s0] ss:$0 sm:$0xff] }
 0x862   :  { %v4641_v15 = vpack.c.bf16 %v2529_v60, %v2528_v41 }
 0x863   :  { %v2376_v16 = vadd.f32 %v3619_v13, %v2375_v43  ;;  %4608 = vmatprep.subr.bf16.mxu0 %v4607_v18  ;;  %v4671_v43 = vpack.c.bf16 %v2561_v61, %v2560_v19 }
 0x864   :  { %4610 = vmatpush3.bf16.msra.mxu0 %v4607_v18  ;;  %4642 = vmatpush3.bf16.msra.mxu1 %v4641_v15 }
 0x865   :  { %4103 = vmatprep.subr.msk.mxu0 %vm1550_vm8, %v2376_v16  ;;  %4675 = vmatprep.subr.bf16.mxu1 %v5060_v0 }
 0x868   :  { %4104 = vmatpush3.msk.msra.mxu0 %vm1550_vm8, %v2376_v16 }
 0x869   :  { %4106 = vmatmul.mubr.msk.f32.vlgmr.msra.gmra.mrb[64].mxu0 %vm2381_vm10, %v5754_v12  ;;  %4644 = vmatprep.subr.bf16.mxu0 %v4643_v21 }
 0x86a   :  { %4646 = vmatpush3.bf16.msra.mxu0 %v4643_v21 }
 0x86b   :  { %4648 = vmatprep.subr.bf16.mxu0 %v4647_v48 }
 0x86e   :  { %4650 = vmatpush3.bf16.msra.mxu0 %v4647_v48 }
 0x86f   :  { %4652 = vmatprep.subr.bf16.mxu0 %v4651_v27 }
 0x872   :  { %4654 = vmatpush3.bf16.msra.mxu0 %v4651_v27 }
 0x873   :  { %4656 = vmatprep.subr.bf16.mxu0 %v4655_v30 }
 0x876   :  { %4658 = vmatpush3.bf16.msra.mxu0 %v4655_v30  ;;  %v2731_v30 = vld [vmem:[#allocation16 + $0x8] sm:$0xff] }
 0x877   :  { %4660 = vmatprep.subr.bf16.mxu0 %v4659_v44  ;;  %v4676_v37 = vpack.c.bf16 %v2731_v30, %v2730_v29 }
 0x87a   :  { %4662 = vmatpush3.bf16.msra.mxu0 %v4659_v44  ;;  %v2732_v44 = vld [vmem:[#allocation16 + $0x10] sm:$0xff] }
 0x87b   :  { %4664 = vmatprep.subr.bf16.mxu0 %v4663_v54  ;;  %v4679_v46 = vpack.c.bf16 %v2733_v26, %v2732_v44  ;;  %v2928_v26 = vld [vmem:[%s5225_s8] sm:$0x3]  ;;  %s5066_s8 = smov [#allocation17]  }
 0x87c   :  { %s3106_s28 = sshll.u32 %s5066_s8, 4  ;;  %s3107_s28 = int_to_ptr.vmem [resolvable:$true] %s3106_s28 }
 0x87d   :  { %s4982_s1 = scalar_lea.vmem %s3107_s28, 32  ;;  %p4987_p3 = scmp.lt.s32.totalorder %s3107_s28, %s3107_s28 }
 0x87e   :  { %4666 = vmatpush3.bf16.msra.mxu0 %v4663_v54  ;;  %v2739_v54 = vld [vmem:[#allocation16 + $0x48] sm:$0xff]  ;;  %p4983_p2 = scmp.ne.s32.totalorder %s3107_s28, %s4982_s1  ;;  %p4988_p4 = scmp.lt.s32.totalorder %s4982_s1, %s4982_s1 }
 0x87f   :  { %4668 = vmatprep.subr.bf16.mxu0 %v4667_v58  ;;  %v4688_v55 = vpack.c.bf16 %v2739_v54, %v2738_v53  ;;  %v3015_v54 = vld [vmem:[%s5230_s14 + $0x48] sm:$0xff] }
 0x880   :  { %p4989_p5 = por %p4988_p4, %p4987_p3 }
 0x882   :  { %4670 = vmatpush3.bf16.msra.mxu0 %v4667_v58  ;;  %v2745_v58 = vld [vmem:[#allocation16 + $0x78] sm:$0xff]  ;;  %p4990_p6 = pnand %p4989_p5, %p4983_p2 }
 0x883   :  { %4672 = vmatprep.subr.bf16.mxu0 %v4671_v43  ;;  %v4697_v2 = vpack.c.bf16 %v2745_v58, %v2744_v59  ;;  %v3020_v59 = vld [vmem:[%s5230_s14 + $0x70] sm:$0xff]  ;;  %v3021_v58 = vld [vmem:[%s5230_s14 + $0x78] sm:$0xff] }
 0x886   :  { %4674 = vmatpush3.bf16.msra.mxu0 %v4671_v43 }
 0x887   :  { %4703 = vmatprep.subr.bf16.mxu0 %v5060_v0 }
 0x93c   :  { %v4107_v5 = vpop.f32.mrb[64].mxu0 }
 0x93d   :  { %v2474_v6 = vmul.f32 %v4107_v5, %v3195_v63  ;;  %v2457_v13 = vpop.f32.mrb[65].mxu0 }
 0x93e   :  { %v2473_v18 = vmul.f32 %v3195_v63, %v2457_v13 }
 0x93f   :  { %v2483_v25 = vadd.f32 %v3196_v10, %v2474_v6 }
 0x940   :  { %v2482_v4 = vadd.f32 %v3196_v10, %v2473_v18  ;;  %v3200_v18 = vld [vmem:[%s5871_s26] ss:$0 sm:$0xff] }
 0x941   :  { %v2485_v16 = vmax.f32 %v2483_v25, 0.0  ;;  %v3205_v25 = vld [vmem:[%s5872_s24] ss:$0 sm:$0xff] }
 0x942   :  { %v2484_v17 = vmax.f32 %v2482_v4, 0.0 }
 0x943   :  { %v2492_v21 = vmul.f32 %v2485_v16, %v5469_v42 }
 0x944   :  { %v2491_v48 = vmul.f32 %v5763_v20, %v2484_v17 }
 0x945   :  { %v2496_v22 = vrot.slane %v2492_v21, 7  ;;  %v3206_v21 = vld [vmem:[%s5873_s21] ss:$0 sm:$0xff] }
 0x946   :  { %v2495_v23 = vrot.slane %v2491_v48, 7  ;;  %v3201_v48 = vld [vmem:[%s5874_s9] ss:$0 sm:$0xff] }
 0x948   :  { %v2497_v27 = vsel %vm268_vm0, %v2495_v23, %v2496_v22  ;;  %v2500_v28 = vsel %vm268_vm0, 0.0, %v2495_v23 }
 0x949   :  { %v2501_v32 = vsel %vm306_vm4, %v2497_v27, 0.0  ;;  %v2504_v34 = vrot.slane %v2500_v28, 1  ;;  %v2509_v36 = vrot.slane %v2500_v28, 2 }
 0x94a   :  { %v2505_v11 = vrot.slane %v2501_v32, 1  ;;  %v2510_v45 = vrot.slane %v2501_v32, 2 }
 0x94c   :  { %v2506_v39 = vsel %vm310_vm6, %v2504_v34, %v2505_v11  ;;  %v2511_v40 = vsel %vm325_vm5, %v2509_v36, %v2510_v45 }
 0x94d   :  { %2626 = vmatprep.mubr.f32.mxu1 %v2506_v39  ;;  %4140 = vmatprep.mubr.f32.mxu0 %v2511_v40  ;;  %v3006_v39 = vld [vmem:[%s5230_s14] sm:$0xff]  ;;  %v3007_v40 = vld [vmem:[%s5230_s14 + $0x8] sm:$0xff] }
 0x94e   :  { %3198 = vmatmul.mubr.msk.f32.vlgmr.msra.gmra.mrb[62].mxu1 %vm5382_vm7, %v2495_v23  ;;  %4141 = vmatmul.mubr.f32.vlgmr.msra.gmra.mrb[66].mxu0 %v2510_v45 }
 0x94f   :  { %4677 = vmatpush3.bf16.msra.mxu1 %v4676_v37  ;;  %2631 = vmatprep.mubr.f32.mxu1 %v2505_v11 }
 0x950   :  { %4678 = vmatprep.subr.bf16.mxu1 %v5060_v0  ;;  %4197 = vmatprep.mubr.msk.f32.mxu0 %vm5061_vm2, %v5062_v1 }
 0x952   :  { %3199 = vmatmul.mubr.msk.f32.gmra.mrb[64].mxu1 %vm306_vm4, %v2497_v27 }
 0x953   :  { %4680 = vmatpush3.bf16.msra.mxu1 %v4679_v46  ;;  %4175 = vmatprep.mubr.msk.f32.mxu1 %vm5061_vm2, %v5062_v1  ;;  %v4708_v46 = vpack.c.bf16 %v3007_v40, %v3006_v39 }
 0x954   :  { %4681 = vmatprep.subr.bf16.mxu1 %v5060_v0 }
 0x957   :  { %4683 = vmatpush3.bf16.msra.mxu1 %v4682_v49  ;;  %v3011_v49 = vld [vmem:[%s5230_s14 + $0x28] sm:$0xff] }
 0x958   :  { %4684 = vmatprep.subr.bf16.mxu1 %v5060_v0  ;;  %v4714_v62 = vpack.c.bf16 %v3011_v49, %v3010_v47 }
 0x95b   :  { %4686 = vmatpush3.bf16.msra.mxu1 %v4685_v52  ;;  %v3013_v52 = vld [vmem:[%s5230_s14 + $0x38] sm:$0xff] }
 0x95c   :  { %4687 = vmatprep.subr.bf16.mxu1 %v5060_v0  ;;  %v4717_v53 = vpack.c.bf16 %v3013_v52, %v3012_v51 }
 0x95f   :  { %4689 = vmatpush3.bf16.msra.mxu1 %v4688_v55 }
 0x960   :  { %4690 = vmatprep.subr.bf16.mxu1 %v5060_v0 }
 0x963   :  { %4692 = vmatpush3.bf16.msra.mxu1 %v4691_v24  ;;  %v4723_v24 = vpack.c.bf16 %v3017_v35, %v3016_v9 }
 0x964   :  { %4693 = vmatprep.subr.bf16.mxu1 %v5060_v0 }
 0x967   :  { %4695 = vmatpush3.bf16.msra.mxu1 %v4694_v57  ;;  %v4726_v57 = vpack.c.bf16 %v3019_v56, %v3018_v38 }
 0x968   :  { %4696 = vmatprep.subr.bf16.mxu1 %v5060_v0 }
 0x96b   :  { %4698 = vmatpush3.bf16.msra.mxu1 %v4697_v2  ;;  %v4729_v2 = vpack.c.bf16 %v3021_v58, %v3020_v59 }
 0x96e   :  { %4176 = vmatmul.mubr.f32.vlgmr.msra.gmra.mrb[66].mxu1 %v5721_v3 }
 0x96f   :  { %4178 = vmatprep.mubr.msk.f32.mxu1 %vm5061_vm2, %v5062_v1 }
 0x972   :  { %4179 = vmatmul.mubr.f32.gmra.mrb[68].mxu1 %v5725_v8 }
 0x973   :  { %4181 = vmatprep.mubr.msk.f32.mxu1 %vm5061_vm2, %v5062_v1 }
 0x976   :  { %4182 = vmatmul.mubr.f32.gmra.mrb[70].mxu1 %v5730_v33 }
 0x977   :  { %4190 = vmatprep.mubr.msk.f32.mxu1 %vm2381_vm10, %v5748_v31 }
 0xa21   :  { %v3676_v7 = vpop.f32.mrb[62].mxu1  ;;  %v4142_v41 = vpop.f32.mrb[66].mxu0 }
 0xa22   :  { %v3677_v14 = vpop.f32.mrb[63].mxu1  ;;  %v2703_v60 = vpop.f32.mrb[67].mxu0 }
 0xa23   :  { %v3678_v19 = vadd.f32 %v3677_v14, %v3676_v7  ;;  %v3209_v14 = vld [vmem:[%s5235_s20] ss:$0 sm:$0xff] }
 0xa25   :  { %v2704_v61 = vadd.f32 %v3678_v19, %v2703_v60  ;;  %v3679_v3 = vpop.f32.mrb[64].mxu1 }
 0xa26   :  { %v3680_v15 = vpop.f32.mrb[65].mxu1 }
 0xa27   :  { %v3681_v43 = vadd.f32 %v3680_v15, %v3679_v3  ;;  %v2719_v16 = vmul.f32 %v3200_v18, %v2704_v61 }
 0xa29   :  { %v2709_v8 = vadd.f32 %v4142_v41, %v3681_v43  ;;  %v2728_v30 = vadd.f32 %v3201_v48, %v2719_v16 }
 0xa2b   :  { %v2720_v4 = vmul.f32 %v3200_v18, %v2709_v8 }
 0xa2d   :  { %v2729_v28 = vadd.f32 %v3201_v48, %v2720_v4 }
 0xa41   :  { %v2812_v63 = vpop.f32.mrb[66].mxu1 }
 0xa42   :  { %v4177_v5 = vpop.f32.mrb[67].mxu1 }
 0xa45   :  { %v2817_v10 = vpop.f32.mrb[68].mxu1 }
 0xa46   :  { %v4699_v33 = vpack.c.bf16 %v2817_v10, %v2812_v63  ;;  %v4180_v6 = vpop.f32.mrb[69].mxu1 }
 0xa48   :  { %4700 = vmatprep.subr.bf16.mxu1 %v4699_v33 }
 0xa49   :  { %v2822_v31 = vpop.f32.mrb[70].mxu1  ;;  %4702 = vmatpush3.bf16.msra.mxu1 %v4699_v33 }
 0xa4a   :  { %v4183_v13 = vpop.f32.mrb[71].mxu1  ;;  %4188 = vmatprep.subr.msk.mxu1 %vm1550_vm8, %v2822_v31 }
 0xa4d   :  { %4189 = vmatpush3.msk.msra.mxu1 %vm1550_vm8, %v2822_v31 }
 0xa4e   :  { %4191 = vmatmul.mubr.msk.f32.vlgmr.msra.gmra.mrb[72].mxu1 %vm2381_vm10, %v5754_v12 }
 0xb21   :  { %v4192_v17 = vpop.f32.mrb[72].mxu1 }
 0xb22   :  { %v2912_v22 = vmul.f32 %v4192_v17, %v3205_v25  ;;  %v2895_v23 = vpop.f32.mrb[73].mxu1 }
 0xb23   :  { %v2911_v27 = vmul.f32 %v3205_v25, %v2895_v23 }
 0xb24   :  { %v2921_v29 = vadd.f32 %v3206_v21, %v2912_v22 }
 0xb25   :  { %v2920_v32 = vadd.f32 %v3206_v21, %v2911_v27 }
 0xb26   :  { %v2923_v34 = vadd.f32 %v2921_v29, %v2729_v28 }
 0xb27   :  { %v2922_v12 = vadd.f32 %v2920_v32, %v2728_v30 }
 0xb28   :  { %v2925_v36 = vmax.f32 %v2923_v34, 0.0 }
 0xb29   :  { %v2924_v11 = vmax.f32 %v2922_v12, 0.0 }
 0xb2a   :  { %v2927_v45 = vmul.f32 %v2925_v36, %v5469_v42  ;;  %v3009_v42 = vld [vmem:[%s5230_s14 + $0x18] sm:$0xff] }
 0xb2b   :  { %v2926_v37 = vmul.f32 %v2924_v11, %v5763_v20  ;;  %v4711_v20 = vpack.c.bf16 %v3009_v42, %v3008_v50 }
 0xb2d   :  { %v4704_v44 = vpack.c.bf16 %v2927_v45, %v2926_v37 }
 0xb2f   :  { %4706 = vmatpush3.bf16.msk.msra.mxu0 %vm4705_vm12, %v4704_v44 }
 0xb30   :  { %4707 = vmatprep.subr.bf16.mxu0 %v5060_v0 }
 0xb32   :  { %4198 = vmatmul.mubr.msk.f32.vlgmr.msra.gmra.mrb[68].mxu0 %vm2929_vm13, %v2928_v26 }
 0xb33   :  { %4709 = vmatpush3.bf16.msra.mxu0 %v4708_v46  ;;  %4232 = vmatprep.mubr.msk.f32.mxu0 %vm5061_vm2, %v5062_v1  ;;  %v3014_v1 = vld [vmem:[%s5230_s14 + $0x40] sm:$0xff] }
 0xb34   :  { %4710 = vmatprep.subr.bf16.mxu0 %v5060_v0  ;;  %v4720_v55 = vpack.c.bf16 %v3015_v54, %v3014_v1 }
 0xb37   :  { %4712 = vmatpush3.bf16.msra.mxu0 %v4711_v20 }
 0xb38   :  { %4713 = vmatprep.subr.bf16.mxu0 %v5060_v0 }
 0xb3b   :  { %4715 = vmatpush3.bf16.msra.mxu0 %v4714_v62 }
 0xb3c   :  { %4716 = vmatprep.subr.bf16.mxu0 %v5060_v0 }
 0xb3f   :  { %4718 = vmatpush3.bf16.msra.mxu0 %v4717_v53 }
 0xb40   :  { %4719 = vmatprep.subr.bf16.mxu0 %v5060_v0 }
 0xb43   :  { %4721 = vmatpush3.bf16.msra.mxu0 %v4720_v55 }
 0xb44   :  { %4722 = vmatprep.subr.bf16.mxu0 %v5060_v0 }
 0xb47   :  { %4724 = vmatpush3.bf16.msra.mxu0 %v4723_v24 }
 0xb48   :  { %4725 = vmatprep.subr.bf16.mxu0 %v5060_v0 }
 0xb4b   :  { %4727 = vmatpush3.bf16.msra.mxu0 %v4726_v57 }
 0xb4c   :  { %4728 = vmatprep.subr.bf16.mxu0 %v5060_v0 }
 0xb4f   :  { %4730 = vmatpush3.bf16.msra.mxu0 %v4729_v2 }
 0xc05   :  { %v3002_v7 = vpop.f32.mrb[68].mxu0 }
 0xc06   :  { %v4199_v41 = vpop.f32.mrb[69].mxu0  ;;  %4233 = vmatmul.mubr.f32.vlgmr.msra.gmra.mrb[70].mxu0 %v3002_v7 }
 0xcd9   :  { %v3095_v60 = vpop.f32.mrb[70].mxu0 }
 0xcda   :  { %v3096_v19 = vadd.f32 %v3209_v14, %v3095_v60  ;;  %v4234_v61 = vpop.f32.mrb[71].mxu0 }
 0xcdc   :  { %3099 = vst [vmem:[#allocation17] sm:$0x3] %v3096_v19 }
 0xcdd   :  { %4993 = shalt.err (!%p4990_p6)
}
 0xcde   :  { %s4994_s14 = scalar_lea.hbm %s5240_s4, 32 }
 0xcdf   :  { %p4995_p7 = scmp.ne.s32.totalorder %s5240_s4, %s4994_s14  ;;  %p4998_p8 = scmp.lt.u32.totalorder %s4994_s14, %s5240_s4 }
 0xce1   :  { %p5000_p9 = pnand %p4998_p8, %p4995_p7 }
 0xce3   :  { %5003 = shalt.err (!%p5000_p9)
}
 0xce4   :  { %3109 = dma.vmem_to_hbm [thread:$0]  %s3107_s28, 32, %s5240_s4, [#allocation4]  }
 0xce5   :  { %5014 = dma.done.wait [#allocation4], 32  }
 0xce6   :  { %5015 = vsyncadd [#allocation4], 4294967264 }
 0xce7   :  { %3113 = vsyncpa [#allocation3], 1 }
 0xce8   :  { %3114 = vsyncpa [#allocation6], 1 }
 0xce9   :  { %3115 = vsyncpa [#allocation9], 1 }
 0xcea   :  { %3116 = vsyncpa [#allocation12], 1 }
 0xceb   :  { %3117 = vsyncpa [#allocation15], 1 }
 0xcec   :  { %3118 = vsyncpa [#allocation4], 1 }

</bundles_post_ra>
